<compile_context>
chip_gen: v7x
topology: tpu7x:2x2x1
jax: 0.10.0
libtpu: 0.0.40
codegen_flags: <defaults>
</compile_context>

<pallas_src>
import functools
import math

import jax
import jax.numpy as jnp
from jax.experimental import pallas as pl
from jax.experimental.pallas import tpu as pltpu


def _round_up(x, m):
    return ((x + m - 1) // m) * m


# --------------------------------------------------------------------- generation-aware sizing

@functools.lru_cache(maxsize=None)
def _vmem_budget():
    """~75% of the local chip's physical VMEM (v5e/v6e: ~96 MiB, v7x: ~48 MiB)."""
    cap = 0
    try:
        info = pltpu.get_tpu_info()
        cap = int(getattr(info, "vmem_capacity_bytes", 0) or 0)
    except Exception:
        cap = 0
    if cap <= 0:
        cap = 64 * 1024 * 1024          # conservative fallback: v7x has the smallest VMEM
    return (cap * 3) // 4


@functools.lru_cache(maxsize=None)
def _tile_defaults():
    """Bigger tiles on 128 MiB-VMEM chips (v5e/v6e); tighter tiles for v7x's 64 MiB."""
    if _vmem_budget() >= 80 * 1024 * 1024:
        return dict(tm=512, tn=512, tk=1024, ln_tm=512, ln_tn=512, tq=256, tkv=512)
    return dict(tm=256, tn=512, tk=512, ln_tm=256, ln_tn=512, tq=256, tkv=256)


def _choose_tile(dim, preferred, align):
    """Pick (tile, padded_dim).  Prefers tiles that divide the real dim (no padding copy),
    uses a full-extent block for small/unaligned dims, and pads only as a last resort."""
    if dim <= preferred:
        return dim, dim                                  # full-extent block (always legal)
    if dim % align == 0:
        t = (min(preferred, dim) // align) * align
        while dim % t:
            t -= align
        return t, dim
    pd = _round_up(dim, align)
    t = (min(preferred, pd) // align) * align
    while pd % t:
        t -= align
    return t, pd


# ----------------------------------------------------------------------------- matmul kernels

def _matmul_kernel(*refs, activation, has_residual):
    """Tiled matmul accumulating directly into the f32, K-resident output block,
    with a fused bias / activation / residual epilogue on the last K step."""
    if has_residual:
        x_ref, w_ref, b_ref, res_ref, o_ref = refs
    else:
        x_ref, w_ref, b_ref, o_ref = refs
        res_ref = None
    k = pl.program_id(2)

    @pl.when(k == 0)
    def _():
        o_ref[...] = jnp.zeros_like(o_ref)

    o_ref[...] += jnp.dot(x_ref[...], w_ref[...], preferred_element_type=jnp.float32)

    @pl.when(k == pl.num_programs(2) - 1)
    def _():
        y = o_ref[...] + b_ref[...]
        if activation == "relu":
            y = jnp.maximum(y, 0.0)
        if has_residual:
            y = y + res_ref[...]
        o_ref[...] = y


def matmul(x, w, b=None, activation=None, residual=None, tm=None, tn=None, tk=None):
    """x: (M, K) @ w: (K, N) + b (1, N), optional fused ReLU / residual add.  f32 in/out."""
    M, K = x.shape
    N = w.shape[1]
    d = _tile_defaults()
    tm, Mp = _choose_tile(M, tm or d["tm"], 8)
    tk, Kp = _choose_tile(K, tk or d["tk"], 128)
    tn, Np = _choose_tile(N, tn or d["tn"], 128)

    xp = x if (Mp == M and Kp == K) else jnp.pad(x, ((0, Mp - M), (0, Kp - K)))
    wp = w if (Kp == K and Np == N) else jnp.pad(w, ((0, Kp - K), (0, Np - N)))
    if b is None:
        b = jnp.zeros((1, N), x.dtype)
    bp = b if Np == N else jnp.pad(b, ((0, 0), (0, Np - N)))

    has_res = residual is not None
    operands = [xp, wp, bp]
    in_specs = [
        pl.BlockSpec((tm, tk), lambda i, j, k: (i, k)),
        pl.BlockSpec((tk, tn), lambda i, j, k: (k, j)),
        pl.BlockSpec((1, tn), lambda i, j, k: (0, j)),
    ]
    if has_res:
        rp = residual if (Mp == M and Np == N) else jnp.pad(residual, ((0, Mp - M), (0, Np - N)))
        operands.append(rp)
        in_specs.append(pl.BlockSpec((tm, tn), lambda i, j, k: (i, j)))

    out = pl.pallas_call(
        functools.partial(_matmul_kernel, activation=activation, has_residual=has_res),
        out_shape=jax.ShapeDtypeStruct((Mp, Np), jnp.float32),
        grid=(Mp // tm, Np // tn, Kp // tk),
        in_specs=in_specs,
        out_specs=pl.BlockSpec((tm, tn), lambda i, j, k: (i, j)),
        compiler_params=pltpu.CompilerParams(
            dimension_semantics=("parallel", "parallel", "arbitrary"),
            vmem_limit_bytes=_vmem_budget()),
    )(*operands)
    if (Mp, Np) != (M, N):
        out = out[:M, :N]
    return out


def _ln_matmul_kernel(x_ref, g_ref, bl_ref, w_ref, b_ref, o_ref, xn_ref, *, eps, activation):
    """LayerNorm fused into a matmul.  LN of the (tm, D) row block is computed once (at the
    first output-column tile) and cached in VMEM scratch for all remaining column tiles."""
    @pl.when(pl.program_id(1) == 0)
    def _():
        x = x_ref[...]
        mu = jnp.mean(x, axis=-1, keepdims=True)
        var = jnp.mean((x - mu) ** 2, axis=-1, keepdims=True)
        xn_ref[...] = (x - mu) * jax.lax.rsqrt(var + eps) * g_ref[...] + bl_ref[...]

    y = jnp.dot(xn_ref[...], w_ref[...], preferred_element_type=jnp.float32) + b_ref[...]
    if activation == "relu":
        y = jnp.maximum(y, 0.0)
    o_ref[...] = y.astype(o_ref.dtype)


def ln_matmul(x, g, b_ln, w, b=None, activation=None, eps=1e-5, tm=None, tn=None):
    """LayerNorm(x) @ w + b.  x: (M, D), g/b_ln: (1, D), w: (D, N), b: (1, N)."""
    M, D = x.shape
    N = w.shape[1]
    d = _tile_defaults()
    tm, Mp = _choose_tile(M, tm or d["ln_tm"], 8)
    tn, Np = _choose_tile(N, tn or d["ln_tn"], 128)

    xp = x if Mp == M else jnp.pad(x, ((0, Mp - M), (0, 0)))
    wp = w if Np == N else jnp.pad(w, ((0, 0), (0, Np - N)))
    if b is None:
        b = jnp.zeros((1, N), x.dtype)
    bp = b if Np == N else jnp.pad(b, ((0, 0), (0, Np - N)))

    out = pl.pallas_call(
        functools.partial(_ln_matmul_kernel, eps=eps, activation=activation),
        out_shape=jax.ShapeDtypeStruct((Mp, Np), jnp.float32),
        grid=(Mp // tm, Np // tn),
        in_specs=[
            pl.BlockSpec((tm, D), lambda i, j: (i, 0)),
            pl.BlockSpec((1, D), lambda i, j: (0, 0)),
            pl.BlockSpec((1, D), lambda i, j: (0, 0)),
            pl.BlockSpec((D, tn), lambda i, j: (0, j)),
            pl.BlockSpec((1, tn), lambda i, j: (0, j)),
        ],
        out_specs=pl.BlockSpec((tm, tn), lambda i, j: (i, j)),
        scratch_shapes=[pltpu.VMEM((tm, D), jnp.float32)],      # cached LN(x) row block
        compiler_params=pltpu.CompilerParams(
            # j must be "arbitrary": tiles j>0 reuse the LN scratch written at j==0.
            dimension_semantics=("parallel", "arbitrary"),
            vmem_limit_bytes=_vmem_budget()),
    )(xp, g, b_ln, wp, bp)
    if (Mp, Np) != (M, N):
        out = out[:M, :N]
    return out


# ----------------------------------------------------------------------------- flash attention

def _flash_mha_kernel(*refs, scale, n_heads, d_model, offs, split_cols):
    """One (batch, q-tile, k-tile) step.  All heads are processed with a static unroll;
    online softmax state (m, l, acc) lives in VMEM scratch across the Tk ("arbitrary") axis."""
    if split_cols:
        q_ref, k_ref, v_ref, bias_ref, o_ref, acc_ref, m_ref, l_ref = refs
    else:
        q_ref, kv_ref, bias_ref, o_ref, acc_ref, m_ref, l_ref = refs
    ki = pl.program_id(2)
    dh = d_model // n_heads

    @pl.when(ki == 0)
    def _():
        acc_ref[...] = jnp.zeros_like(acc_ref)
        m_ref[...] = jnp.full_like(m_ref, -1e30)
        l_ref[...] = jnp.zeros_like(l_ref)

    if split_cols:
        q = q_ref[0] * scale                       # (tq, D), scaled once (not per head)
        k = k_ref[0]                               # (tk, D)
        v = v_ref[0]                               # (tk, D)
    else:
        qo, ko, vo = offs
        q = q_ref[0, :, qo:qo + d_model] * scale
        k = kv_ref[0, :, ko:ko + d_model]
        v = kv_ref[0, :, vo:vo + d_model]
    bias = bias_ref[0]                             # (tq or 1, tk), broadcasts over rows

    for h in range(n_heads):                       # static unroll; H is small
        lo, hi = h * dh, (h + 1) * dh
        s = jax.lax.dot_general(q[:, lo:hi], k[:, lo:hi], (((1,), (1,)), ((), ())),
                                preferred_element_type=jnp.float32)      # (tq, tk)
        s = s + bias
        m_prev = m_ref[h]                                                 # (tq, 1)
        m_new = jnp.maximum(m_prev, jnp.max(s, axis=-1, keepdims=True))
        alpha = jnp.exp(m_prev - m_new)
        p = jnp.exp(s - m_new)
        l_ref[h] = alpha * l_ref[h] + jnp.sum(p, axis=-1, keepdims=True)
        acc_ref[h] = alpha * acc_ref[h] + jnp.dot(p, v[:, lo:hi],
                                                  preferred_element_type=jnp.float32)
        m_ref[h] = m_new

    @pl.when(ki == pl.num_programs(2) - 1)
    def _():
        for h in range(n_heads):
            lo, hi = h * dh, (h + 1) * dh
            # Exact division (no approximate reciprocal) to track reference numerics.
            # Fully masked rows (bias = -1e9 everywhere) yield a uniform distribution,
            # matching the previous behaviour (PyTorch -inf masking would give NaN).
            o_ref[0, :, lo:hi] = (acc_ref[h] / l_ref[h]).astype(o_ref.dtype)


def mha_attention(q_or_qkv, kv, bias, *, scale, n_heads, d_model, tq=None, tk=None):
    """Flash-style multi-head attention.
    Self-attn:  q_or_qkv packed (B, T, 3D), kv=None.   Cross-attn: q (B, Tq, D), kv (B, Tk, 2D).
    bias: additive mask of shape (Bb, Tqb, Tk) with Bb in {1, B}, Tqb in {1, Tq}."""
    packed = kv is None
    q_arr = q_or_qkv
    kv_arr = q_or_qkv if packed else kv
    q_off, k_off, v_off = (0, d_model, 2 * d_model) if packed else (0, 0, d_model)

    B, Tq = q_arr.shape[:2]
    Tk = kv_arr.shape[1]
    d = _tile_defaults()
    tq, Tqp = _choose_tile(Tq, tq or d["tq"], 8)
    tk, Tkp = _choose_tile(Tk, tk or d["tkv"], 128)

    Bb, Tqb, _ = bias.shape
    if Tqp != Tq:
        q_arr = jnp.pad(q_arr, ((0, 0), (0, Tqp - Tq), (0, 0)))
        if Tqb != 1:
            bias = jnp.pad(bias, ((0, 0), (0, Tqp - Tq), (0, 0)))
    if Tkp != Tk:
        kv_arr = jnp.pad(kv_arr, ((0, 0), (0, Tkp - Tk), (0, 0)))
        bias = jnp.pad(bias, ((0, 0), (0, 0), (0, Tkp - Tk)), constant_values=-1e9)
    Tqb = bias.shape[1]

    if Bb == B and Tqb != 1:
        bias_map = lambda b, qi, ki: (b, qi, ki)
    elif Bb == B:
        bias_map = lambda b, qi, ki: (b, 0, ki)
    elif Tqb != 1:
        bias_map = lambda b, qi, ki: (0, qi, ki)
    else:
        bias_map = lambda b, qi, ki: (0, 0, ki)
    bias_spec = pl.BlockSpec((1, tq if Tqb != 1 else 1, tk), bias_map)

    # When D is lane-aligned, fetch Q / K / V as separate (.., D) column blocks of the packed
    # projection (no over-fetch of unused columns); otherwise fall back to full-width blocks
    # with static in-kernel column offsets.
    split_cols = (d_model % 128 == 0)
    if split_cols:
        qc, kc, vc = q_off // d_model, k_off // d_model, v_off // d_model
        operands = [q_arr, kv_arr, kv_arr, bias]
        in_specs = [
            pl.BlockSpec((1, tq, d_model), lambda b, qi, ki, c=qc: (b, qi, c)),
            pl.BlockSpec((1, tk, d_model), lambda b, qi, ki, c=kc: (b, ki, c)),
            pl.BlockSpec((1, tk, d_model), lambda b, qi, ki, c=vc: (b, ki, c)),
            bias_spec,
        ]
        offs = (0, 0, 0)
    else:
        operands = [q_arr, kv_arr, bias]
        in_specs = [
            pl.BlockSpec((1, tq, q_arr.shape[2]), lambda b, qi, ki: (b, qi, 0)),
            pl.BlockSpec((1, tk, kv_arr.shape[2]), lambda b, qi, ki: (b, ki, 0)),
            bias_spec,
        ]
        offs = (q_off, k_off, v_off)

    dh = d_model // n_heads
    out = pl.pallas_call(
        functools.partial(_flash_mha_kernel, scale=scale, n_heads=n_heads,
                          d_model=d_model, offs=offs, split_cols=split_cols),
        out_shape=jax.ShapeDtypeStruct((B, Tqp, d_model), jnp.float32),
        grid=(B, Tqp // tq, Tkp // tk),
        in_specs=in_specs,
        out_specs=pl.BlockSpec((1, tq, d_model), lambda b, qi, ki: (b, qi, 0)),
        scratch_shapes=[
            pltpu.VMEM((n_heads, tq, dh), jnp.float32),   # acc
            pltpu.VMEM((n_heads, tq, 1), jnp.float32),    # running max m
            pltpu.VMEM((n_heads, tq, 1), jnp.float32),    # running denom l
        ],
        compiler_params=pltpu.CompilerParams(
            dimension_semantics=("parallel", "parallel", "arbitrary"),
            vmem_limit_bytes=_vmem_budget()),
    )(*operands)
    return out if Tqp == Tq else out[:, :Tq]


# ----------------------------------------------------------------------------- model glue

def _token_embed(tokens, word_embed, pos_embed, scale):
    T = tokens.shape[1]
    # TODO(synk): embedding gather stays in plain JAX (no clean Pallas gather); dropout is identity.
    return jnp.take(word_embed, tokens, axis=0) * scale + pos_embed[:T][None, :, :]


def _encoder_block(z, p, bias, n_heads):
    B, T, D = z.shape
    zf = z.reshape(B * T, D)
    scale = 1.0 / math.sqrt(D // n_heads)

    qkv = ln_matmul(zf, p["ln1"]["g"], p["ln1"]["b"], p["attn"]["wqkv"], p["attn"]["bqkv"])
    o = mha_attention(qkv.reshape(B, T, 3 * D), None, bias,
                      scale=scale, n_heads=n_heads, d_model=D)
    zf = matmul(o.reshape(B * T, D), p["attn"]["wo"], p["attn"]["bo"], residual=zf)

    h = ln_matmul(zf, p["ln2"]["g"], p["ln2"]["b"], p["mlp"]["w1"], p["mlp"]["b1"],
                  activation="relu")
    zf = matmul(h, p["mlp"]["w2"], p["mlp"]["b2"], residual=zf)
    return zf.reshape(B, T, D)


def _decoder_block(z, mem_flat, enc_norm, p, causal_bias, mem_bias, n_heads):
    B, T, D = z.shape
    T_src = mem_flat.shape[0] // B
    zf = z.reshape(B * T, D)
    scale = 1.0 / math.sqrt(D // n_heads)

    # masked self-attention
    qkv = ln_matmul(zf, p["ln1"]["g"], p["ln1"]["b"],
                    p["self_attn"]["wqkv"], p["self_attn"]["bqkv"])
    o = mha_attention(qkv.reshape(B, T, 3 * D), None, causal_bias,
                      scale=scale, n_heads=n_heads, d_model=D)
    zf = matmul(o.reshape(B * T, D), p["self_attn"]["wo"], p["self_attn"]["bo"], residual=zf)

    # cross-attention; the final encoder LayerNorm is fused into the K/V projection prologue
    q = ln_matmul(zf, p["ln2"]["g"], p["ln2"]["b"],
                  p["cross_attn"]["wq"], p["cross_attn"]["bq"])
    mem_kv = ln_matmul(mem_flat, enc_norm["g"], enc_norm["b"],
                       p["cross_attn"]["wkv"], p["cross_attn"]["bkv"])
    o = mha_attention(q.reshape(B, T, D), mem_kv.reshape(B, T_src, 2 * D), mem_bias,
                      scale=scale, n_heads=n_heads, d_model=D)
    zf = matmul(o.reshape(B * T, D), p["cross_attn"]["wo"], p["cross_attn"]["bo"], residual=zf)

    # MLP
    h = ln_matmul(zf, p["ln3"]["g"], p["ln3"]["b"], p["mlp"]["w1"], p["mlp"]["b1"],
                  activation="relu")
    zf = matmul(h, p["mlp"]["w2"], p["mlp"]["b2"], residual=zf)
    return zf.reshape(B, T, D)


def transformer_forward(params, src, tgt, src_mask, n_heads):
    """src: (B, T_src) int32, tgt: (B, T_tgt) int32, src_mask: (B, T_src) bool (True=keep).
    Returns logits (B, T_tgt, tgt_vocab)."""
    B, T_src = src.shape
    T_tgt = tgt.shape[1]
    D = params["pos_embed"].shape[1]
    scale = params["scale"]
    NEG = jnp.float32(-1e9)

    # additive biases at minimal shape; broadcasting happens inside the attention kernel
    if src_mask is None:
        src_bias = jnp.zeros((1, 1, T_src), jnp.float32)
    else:
        src_bias = ((1.0 - src_mask.astype(jnp.float32)) * NEG)[:, None, :]              # (B, 1, T_src)
    causal_bias = ((1.0 - jnp.tril(jnp.ones((T_tgt, T_tgt), jnp.float32))) * NEG)[None]  # (1, T, T)

    # encode (the final encoder LayerNorm is fused into each decoder block's K/V projection)
    z = _token_embed(src, params["src_word_embed"], params["pos_embed"], scale)
    for blk in params["encoder_stack"]:
        z = _encoder_block(z, blk, src_bias, n_heads)
    mem_flat = z.reshape(B * T_src, D)

    # decode
    z = _token_embed(tgt, params["tgt_word_embed"], params["pos_embed"], scale)
    for blk in params["decoder_stack"]:
        z = _decoder_block(z, mem_flat, params["enc_norm"], blk, causal_bias, src_bias, n_heads)

    # final LayerNorm fused into the tied-vocab projection (weight pre-transposed + pre-padded at init)
    V = params["tgt_word_embed"].shape[0]
    logits = ln_matmul(z.reshape(B * T_tgt, D), params["dec_norm"]["g"], params["dec_norm"]["b"],
                       params["tgt_proj_weight"])
    return logits[:, :V].reshape(B, T_tgt, V)


# ----------------------------------------------------------------------------- init

def init_params(key, src_vocab, tgt_vocab, max_seq_len, d_model, n_heads, n_enc, n_dec, dim_mlp):
    keys = iter(jax.random.split(key, 512))
    scale = math.sqrt(d_model)

    def nrm(shape, std=1.0):
        return jax.random.normal(next(keys), shape, jnp.float32) * std

    def ln(d):
        return {"g": jnp.ones((1, d), jnp.float32), "b": jnp.zeros((1, d), jnp.float32)}

    def attn_self(d):
        std = 1.0 / math.sqrt(d)
        return {
            "wqkv": nrm((d, 3 * d), std), "bqkv": jnp.zeros((1, 3 * d), jnp.float32),
            "wo": nrm((d, d), std), "bo": jnp.zeros((1, d), jnp.float32),
        }

    def attn_cross(d):
        std = 1.0 / math.sqrt(d)
        return {
            "wq": nrm((d, d), std), "bq": jnp.zeros((1, d), jnp.float32),
            "wkv": nrm((d, 2 * d), std), "bkv": jnp.zeros((1, 2 * d), jnp.float32),
            "wo": nrm((d, d), std), "bo": jnp.zeros((1, d), jnp.float32),
        }

    def mlp(d, h):
        return {
            "w1": nrm((d, h), 1.0 / math.sqrt(d)), "b1": jnp.zeros((1, h), jnp.float32),
            "w2": nrm((h, d), 1.0 / math.sqrt(h)), "b2": jnp.zeros((1, d), jnp.float32),
        }

    def enc_block(d, h):
        return {"ln1": ln(d), "attn": attn_self(d), "ln2": ln(d), "mlp": mlp(d, h)}

    def dec_block(d, h):
        return {"ln1": ln(d), "self_attn": attn_self(d),
                "ln2": ln(d), "cross_attn": attn_cross(d),
                "ln3": ln(d), "mlp": mlp(d, h)}

    src_word_embed = nrm((src_vocab, d_model)) / scale
    tgt_word_embed = src_word_embed if tgt_vocab is None else nrm((tgt_vocab, d_model)) / scale

    # Tied output projection: transpose + lane-pad ONCE here (no per-forward .T / pad copies).
    V = tgt_word_embed.shape[0]
    Vp = _round_up(V, 128)
    proj_w = tgt_word_embed.T
    if Vp != V:
        proj_w = jnp.pad(proj_w, ((0, 0), (0, Vp - V)))

    return {
        "scale": jnp.float32(scale),
        "pos_embed": nrm((max_seq_len, d_model)),
        "src_word_embed": src_word_embed,
        "tgt_word_embed": tgt_word_embed,
        "tgt_proj_weight": proj_w,
        "encoder_stack": [enc_block(d_model, dim_mlp) for _ in range(n_enc)],
        "decoder_stack": [dec_block(d_model, dim_mlp) for _ in range(n_dec)],
        "enc_norm": ln(d_model),
        "dec_norm": ln(d_model),
    }


# ----------------------------------------------------------------------------- main

if __name__ == "__main__":
    def run(src_vocab, tgt_vocab, max_seq_len, d_model, n_heads, n_enc, n_dec, dim_mlp,
            B, T_src, T_tgt):
        root = jax.random.PRNGKey(0)
        k_param, k_src, k_tgt = jax.random.split(root, 3)
        params = init_params(k_param, src_vocab, tgt_vocab, max_seq_len,
                             d_model, n_heads, n_enc, n_dec, dim_mlp)
        src = jax.random.randint(k_src, (B, T_src), 0, src_vocab, dtype=jnp.int32)
        tgt = jax.random.randint(k_tgt, (B, T_tgt), 0, tgt_vocab, dtype=jnp.int32)
        # mask out last 2 positions of the second source sequence (True = participate)
        src_mask = jnp.ones((B, T_src), dtype=jnp.bool_).at[1, -2:].set(False)
        fwd = jax.jit(functools.partial(transformer_forward, n_heads=n_heads))
        logits = fwd(params, src, tgt, src_mask)
        jax.block_until_ready(logits)
        assert logits.shape == (B, T_tgt, tgt_vocab)
        assert logits.dtype == jnp.float32
        assert bool(jnp.all(jnp.isfinite(logits)))
        return logits

    # Config 1: d_model not lane-aligned -> exercises the packed full-width attention path.
    run(src_vocab=50, tgt_vocab=60, max_seq_len=16, d_model=32, n_heads=4,
        n_enc=2, n_dec=2, dim_mlp=64, B=2, T_src=8, T_tgt=8)
    # Config 2: d_model % 128 == 0 -> exercises the lane-split Q/K/V attention path.
    run(src_vocab=50, tgt_vocab=60, max_seq_len=16, d_model=128, n_heads=4,
        n_enc=1, n_dec=1, dim_mlp=256, B=2, T_src=8, T_tgt=8)

    print("KERNEL_OK")
</pallas_src>

<mosaic_0001>
module attributes {stable_mosaic.version = 11 : i64} {
  func.func @_ln_matmul_kernel(%arg0: i32, %arg1: i32, %arg2: memref<16x32xf32, #tpu.memory_space<vmem>>, %arg3: memref<1x32xf32, #tpu.memory_space<vmem>>, %arg4: memref<1x32xf32, #tpu.memory_space<vmem>>, %arg5: memref<32x96xf32, #tpu.memory_space<vmem>>, %arg6: memref<1x96xf32, #tpu.memory_space<vmem>>, %arg7: memref<16x96xf32, #tpu.memory_space<vmem>>, %arg8: memref<16x32xf32, #tpu.memory_space<vmem>>) attributes {dimension_semantics = [#tpu.dimension_semantics<parallel>, #tpu.dimension_semantics<arbitrary>], iteration_bounds = array<i64: 1, 1>, scalar_prefetch = 0 : i64, scratch_operands = 1 : i64, tpu.core_type = #tpu.core_type<tc>, window_params = [{transform_indices = @transform_0, window_bounds = array<i64: 16, 32>}, {pipeline_mode = #tpu.pipeline_mode<synchronous>, transform_indices = @transform_1, window_bounds = array<i64: 1, 32>}, {pipeline_mode = #tpu.pipeline_mode<synchronous>, transform_indices = @transform_2, window_bounds = array<i64: 1, 32>}, {transform_indices = @transform_3, window_bounds = array<i64: 32, 96>}, {transform_indices = @transform_4, window_bounds = array<i64: 1, 96>}, {transform_indices = @transform_5, window_bounds = array<i64: 16, 96>}]} {
    %c0_i32 = arith.constant 0 : i32
    %0 = arith.cmpi eq, %arg1, %c0_i32 : i32
    %1 = arith.extui %0 : i1 to i32
    %c0_i32_0 = arith.constant 0 : i32
    %2 = arith.cmpi ne, %1, %c0_i32_0 : i32
    scf.if %2 {
      %c0_8 = arith.constant 0 : index
      %c0_9 = arith.constant 0 : index
      %10 = vector.load %arg2[%c0_8, %c0_9] : memref<16x32xf32, #tpu.memory_space<vmem>>, vector<16x32xf32>
      %cst_10 = arith.constant dense<0.000000e+00> : vector<16xf32>
      %11 = vector.multi_reduction <add>, %10, %cst_10 [1] : vector<16x32xf32> to vector<16xf32>
      %12 = vector.shape_cast %11 : vector<16xf32> to vector<16x1xf32>
      %cst_11 = arith.constant 3.200000e+01 : f32
      %13 = vector.broadcast %cst_11 : f32 to vector<16x1xf32>
      %14 = arith.divf %12, %13 : vector<16x1xf32>
      %15 = vector.broadcast %14 : vector<16x1xf32> to vector<16x32xf32>
      %16 = arith.subf %10, %15 : vector<16x32xf32>
      %17 = arith.mulf %16, %16 : vector<16x32xf32>
      %cst_12 = arith.constant dense<0.000000e+00> : vector<16xf32>
      %18 = vector.multi_reduction <add>, %17, %cst_12 [1] : vector<16x32xf32> to vector<16xf32>
      %19 = vector.shape_cast %18 : vector<16xf32> to vector<16x1xf32>
      %cst_13 = arith.constant 3.200000e+01 : f32
      %20 = vector.broadcast %cst_13 : f32 to vector<16x1xf32>
      %21 = arith.divf %19, %20 : vector<16x1xf32>
      %22 = vector.broadcast %14 : vector<16x1xf32> to vector<16x32xf32>
      %23 = arith.subf %10, %22 : vector<16x32xf32>
      %cst_14 = arith.constant 9.99999974E-6 : f32
      %24 = vector.broadcast %cst_14 : f32 to vector<16x1xf32>
      %25 = arith.addf %21, %24 : vector<16x1xf32>
      %26 = math.rsqrt %25 : vector<16x1xf32>
      %27 = vector.broadcast %26 : vector<16x1xf32> to vector<16x32xf32>
      %28 = arith.mulf %23, %27 : vector<16x32xf32>
      %c0_15 = arith.constant 0 : index
      %c0_16 = arith.constant 0 : index
      %29 = vector.load %arg3[%c0_15, %c0_16] : memref<1x32xf32, #tpu.memory_space<vmem>>, vector<1x32xf32>
      %30 = vector.broadcast %29 : vector<1x32xf32> to vector<16x32xf32>
      %31 = arith.mulf %28, %30 : vector<16x32xf32>
      %c0_17 = arith.constant 0 : index
      %c0_18 = arith.constant 0 : index
      %32 = vector.load %arg4[%c0_17, %c0_18] : memref<1x32xf32, #tpu.memory_space<vmem>>, vector<1x32xf32>
      %33 = vector.broadcast %32 : vector<1x32xf32> to vector<16x32xf32>
      %34 = arith.addf %31, %33 : vector<16x32xf32>
      %c0_19 = arith.constant 0 : index
      %c0_20 = arith.constant 0 : index
      %35 = vector.load %arg8[%c0_19, %c0_20] : memref<16x32xf32, #tpu.memory_space<vmem>>, vector<16x32xf32>
      tpu.vector_store %arg8[%c0_19, %c0_20], %34 {strides = array<i32>} : memref<16x32xf32, #tpu.memory_space<vmem>>, vector<16x32xf32>,
    } else {
    }
    %c0 = arith.constant 0 : index
    %c0_1 = arith.constant 0 : index
    %3 = vector.load %arg8[%c0, %c0_1] : memref<16x32xf32, #tpu.memory_space<vmem>>, vector<16x32xf32>
    %c0_2 = arith.constant 0 : index
    %c0_3 = arith.constant 0 : index
    %4 = vector.load %arg5[%c0_2, %c0_3] : memref<32x96xf32, #tpu.memory_space<vmem>>, vector<32x96xf32>
    %cst = arith.constant dense<0.000000e+00> : vector<16x96xf32>
    %5 = tpu.matmul %3, %4, %cst {dimension_numbers = #tpu.dot_dimension_numbers<[1], [0], [0], [1], [0, 0, 1, 1], [], []>} : vector<16x32xf32>, vector<32x96xf32>, vector<16x96xf32> -> vector<16x96xf32>
    %c0_4 = arith.constant 0 : index
    %c0_5 = arith.constant 0 : index
    %6 = vector.load %arg6[%c0_4, %c0_5] : memref<1x96xf32, #tpu.memory_space<vmem>>, vector<1x96xf32>
    %7 = vector.broadcast %6 : vector<1x96xf32> to vector<16x96xf32>
    %8 = arith.addf %5, %7 : vector<16x96xf32>
    %c0_6 = arith.constant 0 : index
    %c0_7 = arith.constant 0 : index
    %9 = vector.load %arg7[%c0_6, %c0_7] : memref<16x96xf32, #tpu.memory_space<vmem>>, vector<16x96xf32>
    tpu.vector_store %arg7[%c0_6, %c0_7], %8 {strides = array<i32>} : memref<16x96xf32, #tpu.memory_space<vmem>>, vector<16x96xf32>,
    return
  }
  func.func @transform_0(%arg0: i32, %arg1: i32) -> (i32, i32) {
    %c0_i32 = arith.constant 0 : i32
    %c0_i32_0 = arith.constant 0 : i32
    return %arg0, %c0_i32 : i32, i32
  }
  func.func @transform_1(%arg0: i32, %arg1: i32) -> (i32, i32) {
    %c0_i32 = arith.constant 0 : i32
    %c0_i32_0 = arith.constant 0 : i32
    %c0_i32_1 = arith.constant 0 : i32
    return %c0_i32, %c0_i32_0 : i32, i32
  }
  func.func @transform_2(%arg0: i32, %arg1: i32) -> (i32, i32) {
    %c0_i32 = arith.constant 0 : i32
    %c0_i32_0 = arith.constant 0 : i32
    %c0_i32_1 = arith.constant 0 : i32
    return %c0_i32, %c0_i32_0 : i32, i32
  }
  func.func @transform_3(%arg0: i32, %arg1: i32) -> (i32, i32) {
    %c0_i32 = arith.constant 0 : i32
    %c0_i32_0 = arith.constant 0 : i32
    return %c0_i32, %arg1 : i32, i32
  }
  func.func @transform_4(%arg0: i32, %arg1: i32) -> (i32, i32) {
    %c0_i32 = arith.constant 0 : i32
    %c0_i32_0 = arith.constant 0 : i32
    return %c0_i32, %arg1 : i32, i32
  }
  func.func @transform_5(%arg0: i32, %arg1: i32) -> (i32, i32) {
    %c0_i32 = arith.constant 0 : i32
    return %arg0, %arg1 : i32, i32
  }
}

module attributes {stable_mosaic.version = 11 : i64} {
  func.func @_flash_mha_kernel(%arg0: i32, %arg1: i32, %arg2: i32, %arg3: memref<1x8x96xf32, #tpu.memory_space<vmem>>, %arg4: memref<1x8x96xf32, #tpu.memory_space<vmem>>, %arg5: memref<1x1x8xf32, #tpu.memory_space<vmem>>, %arg6: memref<1x8x32xf32, #tpu.memory_space<vmem>>, %arg7: memref<4x8x8xf32, #tpu.memory_space<vmem>>, %arg8: memref<4x8x1xf32, #tpu.memory_space<vmem>>, %arg9: memref<4x8x1xf32, #tpu.memory_space<vmem>>) attributes {dimension_semantics = [#tpu.dimension_semantics<parallel>, #tpu.dimension_semantics<parallel>, #tpu.dimension_semantics<arbitrary>], iteration_bounds = array<i64: 2, 1, 1>, scalar_prefetch = 0 : i64, scratch_operands = 3 : i64, tpu.core_type = #tpu.core_type<tc>, window_params = [{transform_indices = @transform_0, window_bounds = array<i64: 1, 8, 96>}, {transform_indices = @transform_1, window_bounds = array<i64: 1, 8, 96>}, {transform_indices = @transform_2, window_bounds = array<i64: 1, 1, 8>}, {transform_indices = @transform_3, window_bounds = array<i64: 1, 8, 32>}]} {
    %c0_i32 = arith.constant 0 : i32
    %0 = arith.cmpi eq, %arg2, %c0_i32 : i32
    %1 = arith.extui %0 : i1 to i32
    %c0_i32_0 = arith.constant 0 : i32
    %2 = arith.cmpi ne, %1, %c0_i32_0 : i32
    scf.if %2 {
      %cst_97 = arith.constant 0.000000e+00 : f32
      %164 = vector.broadcast %cst_97 : f32 to vector<4x8x8xf32>
      %c0_98 = arith.constant 0 : index
      %c0_99 = arith.constant 0 : index
      %c0_100 = arith.constant 0 : index
      %165 = vector.load %arg7[%c0_98, %c0_99, %c0_100] : memref<4x8x8xf32, #tpu.memory_space<vmem>>, vector<4x8x8xf32>
      tpu.vector_store %arg7[%c0_98, %c0_99, %c0_100], %164 {strides = array<i32>} : memref<4x8x8xf32, #tpu.memory_space<vmem>>, vector<4x8x8xf32>,
      %cst_101 = arith.constant -1.000000e+30 : f32
      %166 = vector.broadcast %cst_101 : f32 to vector<4x8x1xf32>
      %c0_102 = arith.constant 0 : index
      %c0_103 = arith.constant 0 : index
      %c0_104 = arith.constant 0 : index
      %167 = vector.load %arg8[%c0_102, %c0_103, %c0_104] : memref<4x8x1xf32, #tpu.memory_space<vmem>>, vector<4x8x1xf32>
      tpu.vector_store %arg8[%c0_102, %c0_103, %c0_104], %166 {strides = array<i32>} : memref<4x8x1xf32, #tpu.memory_space<vmem>>, vector<4x8x1xf32>,
      %cst_105 = arith.constant 0.000000e+00 : f32
      %168 = vector.broadcast %cst_105 : f32 to vector<4x8x1xf32>
      %c0_106 = arith.constant 0 : index
      %c0_107 = arith.constant 0 : index
      %c0_108 = arith.constant 0 : index
      %169 = vector.load %arg9[%c0_106, %c0_107, %c0_108] : memref<4x8x1xf32, #tpu.memory_space<vmem>>, vector<4x8x1xf32>
      tpu.vector_store %arg9[%c0_106, %c0_107, %c0_108], %168 {strides = array<i32>} : memref<4x8x1xf32, #tpu.memory_space<vmem>>, vector<4x8x1xf32>,
    } else {
    }
    %c0 = arith.constant 0 : index
    %c0_1 = arith.constant 0 : index
    %c0_2 = arith.constant 0 : index
    %3 = vector.load %arg3[%c0, %c0_1, %c0_2] : memref<1x8x96xf32, #tpu.memory_space<vmem>>, vector<1x8x32xf32>
    %4 = vector.shape_cast %3 : vector<1x8x32xf32> to vector<8x32xf32>
    %cst = arith.constant 0.353553385 : f32
    %5 = vector.broadcast %cst : f32 to vector<8x32xf32>
    %6 = arith.mulf %4, %5 : vector<8x32xf32>
    %c0_3 = arith.constant 0 : index
    %c0_4 = arith.constant 0 : index
    %c32 = arith.constant 32 : index
    %7 = vector.load %arg4[%c0_3, %c0_4, %c32] : memref<1x8x96xf32, #tpu.memory_space<vmem>>, vector<1x8x32xf32>
    %8 = vector.shape_cast %7 : vector<1x8x32xf32> to vector<8x32xf32>
    %c0_5 = arith.constant 0 : index
    %c0_6 = arith.constant 0 : index
    %c64 = arith.constant 64 : index
    %9 = vector.load %arg4[%c0_5, %c0_6, %c64] : memref<1x8x96xf32, #tpu.memory_space<vmem>>, vector<1x8x32xf32>
    %10 = vector.shape_cast %9 : vector<1x8x32xf32> to vector<8x32xf32>
    %c0_7 = arith.constant 0 : index
    %c0_8 = arith.constant 0 : index
    %c0_9 = arith.constant 0 : index
    %11 = vector.load %arg5[%c0_7, %c0_8, %c0_9] : memref<1x1x8xf32, #tpu.memory_space<vmem>>, vector<1x1x8xf32>
    %12 = vector.shape_cast %11 : vector<1x1x8xf32> to vector<1x8xf32>
    %13 = vector.extract_strided_slice %6 {offsets = [0, 0], sizes = [8, 8], strides = [1, 1]} : vector<8x32xf32> to vector<8x8xf32>
    %14 = vector.extract_strided_slice %8 {offsets = [0, 0], sizes = [8, 8], strides = [1, 1]} : vector<8x32xf32> to vector<8x8xf32>
    %cst_10 = arith.constant dense<0.000000e+00> : vector<8x8xf32>
    %15 = tpu.matmul %13, %14, %cst_10 {dimension_numbers = #tpu.dot_dimension_numbers<[1], [1], [0], [0], [0, 0, 1, 0], [], []>} : vector<8x8xf32>, vector<8x8xf32>, vector<8x8xf32> -> vector<8x8xf32>
    %16 = vector.broadcast %12 : vector<1x8xf32> to vector<8x8xf32>
    %17 = arith.addf %15, %16 : vector<8x8xf32>
    %c0_11 = arith.constant 0 : index
    %c0_12 = arith.constant 0 : index
    %c0_13 = arith.constant 0 : index
    %18 = vector.load %arg8[%c0_11, %c0_12, %c0_13] : memref<4x8x1xf32, #tpu.memory_space<vmem>>, vector<1x8x1xf32>
    %19 = vector.shape_cast %18 : vector<1x8x1xf32> to vector<8x1xf32>
    %cst_14 = arith.constant dense<0xFF800000> : vector<8xf32>
    %20 = vector.multi_reduction <maximumf>, %17, %cst_14 [1] : vector<8x8xf32> to vector<8xf32>
    %21 = vector.shape_cast %20 : vector<8xf32> to vector<8x1xf32>
    %22 = arith.maximumf %19, %21 : vector<8x1xf32>
    %23 = arith.subf %19, %22 : vector<8x1xf32>
    %24 = math.exp %23 : vector<8x1xf32>
    %25 = vector.broadcast %22 : vector<8x1xf32> to vector<8x8xf32>
    %26 = arith.subf %17, %25 : vector<8x8xf32>
    %27 = math.exp %26 : vector<8x8xf32>
    %c0_15 = arith.constant 0 : index
    %c0_16 = arith.constant 0 : index
    %c0_17 = arith.constant 0 : index
    %28 = vector.load %arg9[%c0_15, %c0_16, %c0_17] : memref<4x8x1xf32, #tpu.memory_space<vmem>>, vector<1x8x1xf32>
    %29 = vector.shape_cast %28 : vector<1x8x1xf32> to vector<8x1xf32>
    %30 = arith.mulf %24, %29 : vector<8x1xf32>
    %cst_18 = arith.constant dense<0.000000e+00> : vector<8xf32>
    %31 = vector.multi_reduction <add>, %27, %cst_18 [1] : vector<8x8xf32> to vector<8xf32>
    %32 = vector.shape_cast %31 : vector<8xf32> to vector<8x1xf32>
    %33 = arith.addf %30, %32 : vector<8x1xf32>
    %c0_19 = arith.constant 0 : index
    %c0_20 = arith.constant 0 : index
    %c0_21 = arith.constant 0 : index
    %34 = vector.load %arg9[%c0_19, %c0_20, %c0_21] : memref<4x8x1xf32, #tpu.memory_space<vmem>>, vector<1x8x1xf32>
    %35 = vector.shape_cast %34 : vector<1x8x1xf32> to vector<8x1xf32>
    %36 = vector.shape_cast %33 : vector<8x1xf32> to vector<1x8x1xf32>
    tpu.vector_store %arg9[%c0_19, %c0_20, %c0_21], %36 {strides = array<i32>} : memref<4x8x1xf32, #tpu.memory_space<vmem>>, vector<1x8x1xf32>,
    %c0_22 = arith.constant 0 : index
    %c0_23 = arith.constant 0 : index
    %c0_24 = arith.constant 0 : index
    %37 = vector.load %arg7[%c0_22, %c0_23, %c0_24] : memref<4x8x8xf32, #tpu.memory_space<vmem>>, vector<1x8x8xf32>
    %38 = vector.shape_cast %37 : vector<1x8x8xf32> to vector<8x8xf32>
    %39 = vector.broadcast %24 : vector<8x1xf32> to vector<8x8xf32>
    %40 = arith.mulf %39, %38 : vector<8x8xf32>
    %41 = vector.extract_strided_slice %10 {offsets = [0, 0], sizes = [8, 8], strides = [1, 1]} : vector<8x32xf32> to vector<8x8xf32>
    %cst_25 = arith.constant dense<0.000000e+00> : vector<8x8xf32>
    %42 = tpu.matmul %27, %41, %cst_25 {dimension_numbers = #tpu.dot_dimension_numbers<[1], [0], [0], [1], [0, 0, 1, 1], [], []>} : vector<8x8xf32>, vector<8x8xf32>, vector<8x8xf32> -> vector<8x8xf32>
    %43 = arith.addf %40, %42 : vector<8x8xf32>
    %c0_26 = arith.constant 0 : index
    %c0_27 = arith.constant 0 : index
    %c0_28 = arith.constant 0 : index
    %44 = vector.load %arg7[%c0_26, %c0_27, %c0_28] : memref<4x8x8xf32, #tpu.memory_space<vmem>>, vector<1x8x8xf32>
    %45 = vector.shape_cast %44 : vector<1x8x8xf32> to vector<8x8xf32>
    %46 = vector.shape_cast %43 : vector<8x8xf32> to vector<1x8x8xf32>
    tpu.vector_store %arg7[%c0_26, %c0_27, %c0_28], %46 {strides = array<i32>} : memref<4x8x8xf32, #tpu.memory_space<vmem>>, vector<1x8x8xf32>,
    %c0_29 = arith.constant 0 : index
    %c0_30 = arith.constant 0 : index
    %c0_31 = arith.constant 0 : index
    %47 = vector.load %arg8[%c0_29, %c0_30, %c0_31] : memref<4x8x1xf32, #tpu.memory_space<vmem>>, vector<1x8x1xf32>
    %48 = vector.shape_cast %47 : vector<1x8x1xf32> to vector<8x1xf32>
    %49 = vector.shape_cast %22 : vector<8x1xf32> to vector<1x8x1xf32>
    tpu.vector_store %arg8[%c0_29, %c0_30, %c0_31], %49 {strides = array<i32>} : memref<4x8x1xf32, #tpu.memory_space<vmem>>, vector<1x8x1xf32>,
    %50 = vector.extract_strided_slice %6 {offsets = [0, 8], sizes = [8, 8], strides = [1, 1]} : vector<8x32xf32> to vector<8x8xf32>
    %51 = vector.extract_strided_slice %8 {offsets = [0, 8], sizes = [8, 8], strides = [1, 1]} : vector<8x32xf32> to vector<8x8xf32>
    %cst_32 = arith.constant dense<0.000000e+00> : vector<8x8xf32>
    %52 = tpu.matmul %50, %51, %cst_32 {dimension_numbers = #tpu.dot_dimension_numbers<[1], [1], [0], [0], [0, 0, 1, 0], [], []>} : vector<8x8xf32>, vector<8x8xf32>, vector<8x8xf32> -> vector<8x8xf32>
    %53 = vector.broadcast %12 : vector<1x8xf32> to vector<8x8xf32>
    %54 = arith.addf %52, %53 : vector<8x8xf32>
    %c1 = arith.constant 1 : index
    %c0_33 = arith.constant 0 : index
    %c0_34 = arith.constant 0 : index
    %55 = vector.load %arg8[%c1, %c0_33, %c0_34] : memref<4x8x1xf32, #tpu.memory_space<vmem>>, vector<1x8x1xf32>
    %56 = vector.shape_cast %55 : vector<1x8x1xf32> to vector<8x1xf32>
    %cst_35 = arith.constant dense<0xFF800000> : vector<8xf32>
    %57 = vector.multi_reduction <maximumf>, %54, %cst_35 [1] : vector<8x8xf32> to vector<8xf32>
    %58 = vector.shape_cast %57 : vector<8xf32> to vector<8x1xf32>
    %59 = arith.maximumf %56, %58 : vector<8x1xf32>
    %60 = arith.subf %56, %59 : vector<8x1xf32>
    %61 = math.exp %60 : vector<8x1xf32>
    %62 = vector.broadcast %59 : vector<8x1xf32> to vector<8x8xf32>
    %63 = arith.subf %54, %62 : vector<8x8xf32>
    %64 = math.exp %63 : vector<8x8xf32>
    %c1_36 = arith.constant 1 : index
    %c0_37 = arith.constant 0 : index
    %c0_38 = arith.constant 0 : index
    %65 = vector.load %arg9[%c1_36, %c0_37, %c0_38] : memref<4x8x1xf32, #tpu.memory_space<vmem>>, vector<1x8x1xf32>
    %66 = vector.shape_cast %65 : vector<1x8x1xf32> to vector<8x1xf32>
    %67 = arith.mulf %61, %66 : vector<8x1xf32>
    %cst_39 = arith.constant dense<0.000000e+00> : vector<8xf32>
    %68 = vector.multi_reduction <add>, %64, %cst_39 [1] : vector<8x8xf32> to vector<8xf32>
    %69 = vector.shape_cast %68 : vector<8xf32> to vector<8x1xf32>
    %70 = arith.addf %67, %69 : vector<8x1xf32>
    %c1_40 = arith.constant 1 : index
    %c0_41 = arith.constant 0 : index
    %c0_42 = arith.constant 0 : index
    %71 = vector.load %arg9[%c1_40, %c0_41, %c0_42] : memref<4x8x1xf32, #tpu.memory_space<vmem>>, vector<1x8x1xf32>
    %72 = vector.shape_cast %71 : vector<1x8x1xf32> to vector<8x1xf32>
    %73 = vector.shape_cast %70 : vector<8x1xf32> to vector<1x8x1xf32>
    tpu.vector_store %arg9[%c1_40, %c0_41, %c0_42], %73 {strides = array<i32>} : memref<4x8x1xf32, #tpu.memory_space<vmem>>, vector<1x8x1xf32>,
    %c1_43 = arith.constant 1 : index
    %c0_44 = arith.constant 0 : index
    %c0_45 = arith.constant 0 : index
    %74 = vector.load %arg7[%c1_43, %c0_44, %c0_45] : memref<4x8x8xf32, #tpu.memory_space<vmem>>, vector<1x8x8xf32>
    %75 = vector.shape_cast %74 : vector<1x8x8xf32> to vector<8x8xf32>
    %76 = vector.broadcast %61 : vector<8x1xf32> to vector<8x8xf32>
    %77 = arith.mulf %76, %75 : vector<8x8xf32>
    %78 = vector.extract_strided_slice %10 {offsets = [0, 8], sizes = [8, 8], strides = [1, 1]} : vector<8x32xf32> to vector<8x8xf32>
    %cst_46 = arith.constant dense<0.000000e+00> : vector<8x8xf32>
    %79 = tpu.matmul %64, %78, %cst_46 {dimension_numbers = #tpu.dot_dimension_numbers<[1], [0], [0], [1], [0, 0, 1, 1], [], []>} : vector<8x8xf32>, vector<8x8xf32>, vector<8x8xf32> -> vector<8x8xf32>
    %80 = arith.addf %77, %79 : vector<8x8xf32>
    %c1_47 = arith.constant 1 : index
    %c0_48 = arith.constant 0 : index
    %c0_49 = arith.constant 0 : index
    %81 = vector.load %arg7[%c1_47, %c0_48, %c0_49] : memref<4x8x8xf32, #tpu.memory_space<vmem>>, vector<1x8x8xf32>
    %82 = vector.shape_cast %81 : vector<1x8x8xf32> to vector<8x8xf32>
    %83 = vector.shape_cast %80 : vector<8x8xf32> to vector<1x8x8xf32>
    tpu.vector_store %arg7[%c1_47, %c0_48, %c0_49], %83 {strides = array<i32>} : memref<4x8x8xf32, #tpu.memory_space<vmem>>, vector<1x8x8xf32>,
    %c1_50 = arith.constant 1 : index
    %c0_51 = arith.constant 0 : index
    %c0_52 = arith.constant 0 : index
    %84 = vector.load %arg8[%c1_50, %c0_51, %c0_52] : memref<4x8x1xf32, #tpu.memory_space<vmem>>, vector<1x8x1xf32>
    %85 = vector.shape_cast %84 : vector<1x8x1xf32> to vector<8x1xf32>
    %86 = vector.shape_cast %59 : vector<8x1xf32> to vector<1x8x1xf32>
    tpu.vector_store %arg8[%c1_50, %c0_51, %c0_52], %86 {strides = array<i32>} : memref<4x8x1xf32, #tpu.memory_space<vmem>>, vector<1x8x1xf32>,
    %87 = vector.extract_strided_slice %6 {offsets = [0, 16], sizes = [8, 8], strides = [1, 1]} : vector<8x32xf32> to vector<8x8xf32>
    %88 = vector.extract_strided_slice %8 {offsets = [0, 16], sizes = [8, 8], strides = [1, 1]} : vector<8x32xf32> to vector<8x8xf32>
    %cst_53 = arith.constant dense<0.000000e+00> : vector<8x8xf32>
    %89 = tpu.matmul %87, %88, %cst_53 {dimension_numbers = #tpu.dot_dimension_numbers<[1], [1], [0], [0], [0, 0, 1, 0], [], []>} : vector<8x8xf32>, vector<8x8xf32>, vector<8x8xf32> -> vector<8x8xf32>
    %90 = vector.broadcast %12 : vector<1x8xf32> to vector<8x8xf32>
    %91 = arith.addf %89, %90 : vector<8x8xf32>
    %c2 = arith.constant 2 : index
    %c0_54 = arith.constant 0 : index
    %c0_55 = arith.constant 0 : index
    %92 = vector.load %arg8[%c2, %c0_54, %c0_55] : memref<4x8x1xf32, #tpu.memory_space<vmem>>, vector<1x8x1xf32>
    %93 = vector.shape_cast %92 : vector<1x8x1xf32> to vector<8x1xf32>
    %cst_56 = arith.constant dense<0xFF800000> : vector<8xf32>
    %94 = vector.multi_reduction <maximumf>, %91, %cst_56 [1] : vector<8x8xf32> to vector<8xf32>
    %95 = vector.shape_cast %94 : vector<8xf32> to vector<8x1xf32>
    %96 = arith.maximumf %93, %95 : vector<8x1xf32>
    %97 = arith.subf %93, %96 : vector<8x1xf32>
    %98 = math.exp %97 : vector<8x1xf32>
    %99 = vector.broadcast %96 : vector<8x1xf32> to vector<8x8xf32>
    %100 = arith.subf %91, %99 : vector<8x8xf32>
    %101 = math.exp %100 : vector<8x8xf32>
    %c2_57 = arith.constant 2 : index
    %c0_58 = arith.constant 0 : index
    %c0_59 = arith.constant 0 : index
    %102 = vector.load %arg9[%c2_57, %c0_58, %c0_59] : memref<4x8x1xf32, #tpu.memory_space<vmem>>, vector<1x8x1xf32>
    %103 = vector.shape_cast %102 : vector<1x8x1xf32> to vector<8x1xf32>
    %104 = arith.mulf %98, %103 : vector<8x1xf32>
    %cst_60 = arith.constant dense<0.000000e+00> : vector<8xf32>
    %105 = vector.multi_reduction <add>, %101, %cst_60 [1] : vector<8x8xf32> to vector<8xf32>
    %106 = vector.shape_cast %105 : vector<8xf32> to vector<8x1xf32>
    %107 = arith.addf %104, %106 : vector<8x1xf32>
    %c2_61 = arith.constant 2 : index
    %c0_62 = arith.constant 0 : index
    %c0_63 = arith.constant 0 : index
    %108 = vector.load %arg9[%c2_61, %c0_62, %c0_63] : memref<4x8x1xf32, #tpu.memory_space<vmem>>, vector<1x8x1xf32>
    %109 = vector.shape_cast %108 : vector<1x8x1xf32> to vector<8x1xf32>
    %110 = vector.shape_cast %107 : vector<8x1xf32> to vector<1x8x1xf32>
    tpu.vector_store %arg9[%c2_61, %c0_62, %c0_63], %110 {strides = array<i32>} : memref<4x8x1xf32, #tpu.memory_space<vmem>>, vector<1x8x1xf32>,
    %c2_64 = arith.constant 2 : index
    %c0_65 = arith.constant 0 : index
    %c0_66 = arith.constant 0 : index
    %111 = vector.load %arg7[%c2_64, %c0_65, %c0_66] : memref<4x8x8xf32, #tpu.memory_space<vmem>>, vector<1x8x8xf32>
    %112 = vector.shape_cast %111 : vector<1x8x8xf32> to vector<8x8xf32>
    %113 = vector.broadcast %98 : vector<8x1xf32> to vector<8x8xf32>
    %114 = arith.mulf %113, %112 : vector<8x8xf32>
    %115 = vector.extract_strided_slice %10 {offsets = [0, 16], sizes = [8, 8], strides = [1, 1]} : vector<8x32xf32> to vector<8x8xf32>
    %cst_67 = arith.constant dense<0.000000e+00> : vector<8x8xf32>
    %116 = tpu.matmul %101, %115, %cst_67 {dimension_numbers = #tpu.dot_dimension_numbers<[1], [0], [0], [1], [0, 0, 1, 1], [], []>} : vector<8x8xf32>, vector<8x8xf32>, vector<8x8xf32> -> vector<8x8xf32>
    %117 = arith.addf %114, %116 : vector<8x8xf32>
    %c2_68 = arith.constant 2 : index
    %c0_69 = arith.constant 0 : index
    %c0_70 = arith.constant 0 : index
    %118 = vector.load %arg7[%c2_68, %c0_69, %c0_70] : memref<4x8x8xf32, #tpu.memory_space<vmem>>, vector<1x8x8xf32>
    %119 = vector.shape_cast %118 : vector<1x8x8xf32> to vector<8x8xf32>
    %120 = vector.shape_cast %117 : vector<8x8xf32> to vector<1x8x8xf32>
    tpu.vector_store %arg7[%c2_68, %c0_69, %c0_70], %120 {strides = array<i32>} : memref<4x8x8xf32, #tpu.memory_space<vmem>>, vector<1x8x8xf32>,
    %c2_71 = arith.constant 2 : index
    %c0_72 = arith.constant 0 : index
    %c0_73 = arith.constant 0 : index
    %121 = vector.load %arg8[%c2_71, %c0_72, %c0_73] : memref<4x8x1xf32, #tpu.memory_space<vmem>>, vector<1x8x1xf32>
    %122 = vector.shape_cast %121 : vector<1x8x1xf32> to vector<8x1xf32>
    %123 = vector.shape_cast %96 : vector<8x1xf32> to vector<1x8x1xf32>
    tpu.vector_store %arg8[%c2_71, %c0_72, %c0_73], %123 {strides = array<i32>} : memref<4x8x1xf32, #tpu.memory_space<vmem>>, vector<1x8x1xf32>,
    %124 = vector.extract_strided_slice %6 {offsets = [0, 24], sizes = [8, 8], strides = [1, 1]} : vector<8x32xf32> to vector<8x8xf32>
    %125 = vector.extract_strided_slice %8 {offsets = [0, 24], sizes = [8, 8], strides = [1, 1]} : vector<8x32xf32> to vector<8x8xf32>
    %cst_74 = arith.constant dense<0.000000e+00> : vector<8x8xf32>
    %126 = tpu.matmul %124, %125, %cst_74 {dimension_numbers = #tpu.dot_dimension_numbers<[1], [1], [0], [0], [0, 0, 1, 0], [], []>} : vector<8x8xf32>, vector<8x8xf32>, vector<8x8xf32> -> vector<8x8xf32>
    %127 = vector.broadcast %12 : vector<1x8xf32> to vector<8x8xf32>
    %128 = arith.addf %126, %127 : vector<8x8xf32>
    %c3 = arith.constant 3 : index
    %c0_75 = arith.constant 0 : index
    %c0_76 = arith.constant 0 : index
    %129 = vector.load %arg8[%c3, %c0_75, %c0_76] : memref<4x8x1xf32, #tpu.memory_space<vmem>>, vector<1x8x1xf32>
    %130 = vector.shape_cast %129 : vector<1x8x1xf32> to vector<8x1xf32>
    %cst_77 = arith.constant dense<0xFF800000> : vector<8xf32>
    %131 = vector.multi_reduction <maximumf>, %128, %cst_77 [1] : vector<8x8xf32> to vector<8xf32>
    %132 = vector.shape_cast %131 : vector<8xf32> to vector<8x1xf32>
    %133 = arith.maximumf %130, %132 : vector<8x1xf32>
    %134 = arith.subf %130, %133 : vector<8x1xf32>
    %135 = math.exp %134 : vector<8x1xf32>
    %136 = vector.broadcast %133 : vector<8x1xf32> to vector<8x8xf32>
    %137 = arith.subf %128, %136 : vector<8x8xf32>
    %138 = math.exp %137 : vector<8x8xf32>
    %c3_78 = arith.constant 3 : index
    %c0_79 = arith.constant 0 : index
    %c0_80 = arith.constant 0 : index
    %139 = vector.load %arg9[%c3_78, %c0_79, %c0_80] : memref<4x8x1xf32, #tpu.memory_space<vmem>>, vector<1x8x1xf32>
    %140 = vector.shape_cast %139 : vector<1x8x1xf32> to vector<8x1xf32>
    %141 = arith.mulf %135, %140 : vector<8x1xf32>
    %cst_81 = arith.constant dense<0.000000e+00> : vector<8xf32>
    %142 = vector.multi_reduction <add>, %138, %cst_81 [1] : vector<8x8xf32> to vector<8xf32>
    %143 = vector.shape_cast %142 : vector<8xf32> to vector<8x1xf32>
    %144 = arith.addf %141, %143 : vector<8x1xf32>
    %c3_82 = arith.constant 3 : index
    %c0_83 = arith.constant 0 : index
    %c0_84 = arith.constant 0 : index
    %145 = vector.load %arg9[%c3_82, %c0_83, %c0_84] : memref<4x8x1xf32, #tpu.memory_space<vmem>>, vector<1x8x1xf32>
    %146 = vector.shape_cast %145 : vector<1x8x1xf32> to vector<8x1xf32>
    %147 = vector.shape_cast %144 : vector<8x1xf32> to vector<1x8x1xf32>
    tpu.vector_store %arg9[%c3_82, %c0_83, %c0_84], %147 {strides = array<i32>} : memref<4x8x1xf32, #tpu.memory_space<vmem>>, vector<1x8x1xf32>,
    %c3_85 = arith.constant 3 : index
    %c0_86 = arith.constant 0 : index
    %c0_87 = arith.constant 0 : index
    %148 = vector.load %arg7[%c3_85, %c0_86, %c0_87] : memref<4x8x8xf32, #tpu.memory_space<vmem>>, vector<1x8x8xf32>
    %149 = vector.shape_cast %148 : vector<1x8x8xf32> to vector<8x8xf32>
    %150 = vector.broadcast %135 : vector<8x1xf32> to vector<8x8xf32>
    %151 = arith.mulf %150, %149 : vector<8x8xf32>
    %152 = vector.extract_strided_slice %10 {offsets = [0, 24], sizes = [8, 8], strides = [1, 1]} : vector<8x32xf32> to vector<8x8xf32>
    %cst_88 = arith.constant dense<0.000000e+00> : vector<8x8xf32>
    %153 = tpu.matmul %138, %152, %cst_88 {dimension_numbers = #tpu.dot_dimension_numbers<[1], [0], [0], [1], [0, 0, 1, 1], [], []>} : vector<8x8xf32>, vector<8x8xf32>, vector<8x8xf32> -> vector<8x8xf32>
    %154 = arith.addf %151, %153 : vector<8x8xf32>
    %c3_89 = arith.constant 3 : index
    %c0_90 = arith.constant 0 : index
    %c0_91 = arith.constant 0 : index
    %155 = vector.load %arg7[%c3_89, %c0_90, %c0_91] : memref<4x8x8xf32, #tpu.memory_space<vmem>>, vector<1x8x8xf32>
    %156 = vector.shape_cast %155 : vector<1x8x8xf32> to vector<8x8xf32>
    %157 = vector.shape_cast %154 : vector<8x8xf32> to vector<1x8x8xf32>
    tpu.vector_store %arg7[%c3_89, %c0_90, %c0_91], %157 {strides = array<i32>} : memref<4x8x8xf32, #tpu.memory_space<vmem>>, vector<1x8x8xf32>,
    %c3_92 = arith.constant 3 : index
    %c0_93 = arith.constant 0 : index
    %c0_94 = arith.constant 0 : index
    %158 = vector.load %arg8[%c3_92, %c0_93, %c0_94] : memref<4x8x1xf32, #tpu.memory_space<vmem>>, vector<1x8x1xf32>
    %159 = vector.shape_cast %158 : vector<1x8x1xf32> to vector<8x1xf32>
    %160 = vector.shape_cast %133 : vector<8x1xf32> to vector<1x8x1xf32>
    tpu.vector_store %arg8[%c3_92, %c0_93, %c0_94], %160 {strides = array<i32>} : memref<4x8x1xf32, #tpu.memory_space<vmem>>, vector<1x8x1xf32>,
    %c0_i32_95 = arith.constant 0 : i32
    %161 = arith.cmpi eq, %arg2, %c0_i32_95 : i32
    %162 = arith.extui %161 : i1 to i32
    %c0_i32_96 = arith.constant 0 : i32
    %163 = arith.cmpi ne, %162, %c0_i32_96 : i32
    scf.if %163 {
      %c0_97 = arith.constant 0 : index
      %c0_98 = arith.constant 0 : index
      %c0_99 = arith.constant 0 : index
      %164 = vector.load %arg7[%c0_97, %c0_98, %c0_99] : memref<4x8x8xf32, #tpu.memory_space<vmem>>, vector<1x8x8xf32>
      %165 = vector.shape_cast %164 : vector<1x8x8xf32> to vector<8x8xf32>
      %c0_100 = arith.constant 0 : index
      %c0_101 = arith.constant 0 : index
      %c0_102 = arith.constant 0 : index
      %166 = vector.load %arg9[%c0_100, %c0_101, %c0_102] : memref<4x8x1xf32, #tpu.memory_space<vmem>>, vector<1x8x1xf32>
      %167 = vector.shape_cast %166 : vector<1x8x1xf32> to vector<8x1xf32>
      %168 = vector.broadcast %167 : vector<8x1xf32> to vector<8x8xf32>
      %169 = arith.divf %165, %168 : vector<8x8xf32>
      %c0_103 = arith.constant 0 : index
      %c0_104 = arith.constant 0 : index
      %c0_105 = arith.constant 0 : index
      %170 = vector.load %arg6[%c0_103, %c0_104, %c0_105] : memref<1x8x32xf32, #tpu.memory_space<vmem>>, vector<1x8x8xf32>
      %171 = vector.shape_cast %170 : vector<1x8x8xf32> to vector<8x8xf32>
      %172 = vector.shape_cast %169 : vector<8x8xf32> to vector<1x8x8xf32>
      tpu.vector_store %arg6[%c0_103, %c0_104, %c0_105], %172 {strides = array<i32>} : memref<1x8x32xf32, #tpu.memory_space<vmem>>, vector<1x8x8xf32>,
      %c1_106 = arith.constant 1 : index
      %c0_107 = arith.constant 0 : index
      %c0_108 = arith.constant 0 : index
      %173 = vector.load %arg7[%c1_106, %c0_107, %c0_108] : memref<4x8x8xf32, #tpu.memory_space<vmem>>, vector<1x8x8xf32>
      %174 = vector.shape_cast %173 : vector<1x8x8xf32> to vector<8x8xf32>
      %c1_109 = arith.constant 1 : index
      %c0_110 = arith.constant 0 : index
      %c0_111 = arith.constant 0 : index
      %175 = vector.load %arg9[%c1_109, %c0_110, %c0_111] : memref<4x8x1xf32, #tpu.memory_space<vmem>>, vector<1x8x1xf32>
      %176 = vector.shape_cast %175 : vector<1x8x1xf32> to vector<8x1xf32>
      %177 = vector.broadcast %176 : vector<8x1xf32> to vector<8x8xf32>
      %178 = arith.divf %174, %177 : vector<8x8xf32>
      %c0_112 = arith.constant 0 : index
      %c0_113 = arith.constant 0 : index
      %c8 = arith.constant 8 : index
      %179 = vector.load %arg6[%c0_112, %c0_113, %c8] : memref<1x8x32xf32, #tpu.memory_space<vmem>>, vector<1x8x8xf32>
      %180 = vector.shape_cast %179 : vector<1x8x8xf32> to vector<8x8xf32>
      %181 = vector.shape_cast %178 : vector<8x8xf32> to vector<1x8x8xf32>
      tpu.vector_store %arg6[%c0_112, %c0_113, %c8], %181 {strides = array<i32>} : memref<1x8x32xf32, #tpu.memory_space<vmem>>, vector<1x8x8xf32>,
      %c2_114 = arith.constant 2 : index
      %c0_115 = arith.constant 0 : index
      %c0_116 = arith.constant 0 : index
      %182 = vector.load %arg7[%c2_114, %c0_115, %c0_116] : memref<4x8x8xf32, #tpu.memory_space<vmem>>, vector<1x8x8xf32>
      %183 = vector.shape_cast %182 : vector<1x8x8xf32> to vector<8x8xf32>
      %c2_117 = arith.constant 2 : index
      %c0_118 = arith.constant 0 : index
      %c0_119 = arith.constant 0 : index
      %184 = vector.load %arg9[%c2_117, %c0_118, %c0_119] : memref<4x8x1xf32, #tpu.memory_space<vmem>>, vector<1x8x1xf32>
      %185 = vector.shape_cast %184 : vector<1x8x1xf32> to vector<8x1xf32>
      %186 = vector.broadcast %185 : vector<8x1xf32> to vector<8x8xf32>
      %187 = arith.divf %183, %186 : vector<8x8xf32>
      %c0_120 = arith.constant 0 : index
      %c0_121 = arith.constant 0 : index
      %c16 = arith.constant 16 : index
      %188 = vector.load %arg6[%c0_120, %c0_121, %c16] : memref<1x8x32xf32, #tpu.memory_space<vmem>>, vector<1x8x8xf32>
      %189 = vector.shape_cast %188 : vector<1x8x8xf32> to vector<8x8xf32>
      %190 = vector.shape_cast %187 : vector<8x8xf32> to vector<1x8x8xf32>
      tpu.vector_store %arg6[%c0_120, %c0_121, %c16], %190 {strides = array<i32>} : memref<1x8x32xf32, #tpu.memory_space<vmem>>, vector<1x8x8xf32>,
      %c3_122 = arith.constant 3 : index
      %c0_123 = arith.constant 0 : index
      %c0_124 = arith.constant 0 : index
      %191 = vector.load %arg7[%c3_122, %c0_123, %c0_124] : memref<4x8x8xf32, #tpu.memory_space<vmem>>, vector<1x8x8xf32>
      %192 = vector.shape_cast %191 : vector<1x8x8xf32> to vector<8x8xf32>
      %c3_125 = arith.constant 3 : index
      %c0_126 = arith.constant 0 : index
      %c0_127 = arith.constant 0 : index
      %193 = vector.load %arg9[%c3_125, %c0_126, %c0_127] : memref<4x8x1xf32, #tpu.memory_space<vmem>>, vector<1x8x1xf32>
      %194 = vector.shape_cast %193 : vector<1x8x1xf32> to vector<8x1xf32>
      %195 = vector.broadcast %194 : vector<8x1xf32> to vector<8x8xf32>
      %196 = arith.divf %192, %195 : vector<8x8xf32>
      %c0_128 = arith.constant 0 : index
      %c0_129 = arith.constant 0 : index
      %c24 = arith.constant 24 : index
      %197 = vector.load %arg6[%c0_128, %c0_129, %c24] : memref<1x8x32xf32, #tpu.memory_space<vmem>>, vector<1x8x8xf32>
      %198 = vector.shape_cast %197 : vector<1x8x8xf32> to vector<8x8xf32>
      %199 = vector.shape_cast %196 : vector<8x8xf32> to vector<1x8x8xf32>
      tpu.vector_store %arg6[%c0_128, %c0_129, %c24], %199 {strides = array<i32>} : memref<1x8x32xf32, #tpu.memory_space<vmem>>, vector<1x8x8xf32>,
    } else {
    }
    return
  }
  func.func @transform_0(%arg0: i32, %arg1: i32, %arg2: i32) -> (i32, i32, i32) {
    %c0_i32 = arith.constant 0 : i32
    %c0_i32_0 = arith.constant 0 : i32
    return %arg0, %arg1, %c0_i32 : i32, i32, i32
  }
  func.func @transform_1(%arg0: i32, %arg1: i32, %arg2: i32) -> (i32, i32, i32) {
    %c0_i32 = arith.constant 0 : i32
    %c0_i32_0 = arith.constant 0 : i32
    return %arg0, %arg2, %c0_i32 : i32, i32, i32
  }
  func.func @transform_2(%arg0: i32, %arg1: i32, %arg2: i32) -> (i32, i32, i32) {
    %c0_i32 = arith.constant 0 : i32
    %c0_i32_0 = arith.constant 0 : i32
    return %arg0, %c0_i32, %arg2 : i32, i32, i32
  }
  func.func @transform_3(%arg0: i32, %arg1: i32, %arg2: i32) -> (i32, i32, i32) {
    %c0_i32 = arith.constant 0 : i32
    %c0_i32_0 = arith.constant 0 : i32
    return %arg0, %arg1, %c0_i32 : i32, i32, i32
  }
}

module attributes {stable_mosaic.version = 11 : i64} {
  func.func @_matmul_kernel(%arg0: i32, %arg1: i32, %arg2: i32, %arg3: memref<16x32xf32, #tpu.memory_space<vmem>>, %arg4: memref<32x32xf32, #tpu.memory_space<vmem>>, %arg5: memref<1x32xf32, #tpu.memory_space<vmem>>, %arg6: memref<16x32xf32, #tpu.memory_space<vmem>>, %arg7: memref<16x32xf32, #tpu.memory_space<vmem>>) attributes {dimension_semantics = [#tpu.dimension_semantics<parallel>, #tpu.dimension_semantics<parallel>, #tpu.dimension_semantics<arbitrary>], iteration_bounds = array<i64: 1, 1, 1>, scalar_prefetch = 0 : i64, scratch_operands = 0 : i64, tpu.core_type = #tpu.core_type<tc>, window_params = [{transform_indices = @transform_0, window_bounds = array<i64: 16, 32>}, {transform_indices = @transform_1, window_bounds = array<i64: 32, 32>}, {transform_indices = @transform_2, window_bounds = array<i64: 1, 32>}, {transform_indices = @transform_3, window_bounds = array<i64: 16, 32>}, {transform_indices = @transform_4, window_bounds = array<i64: 16, 32>}]} {
    %c0_i32 = arith.constant 0 : i32
    %0 = arith.cmpi eq, %arg2, %c0_i32 : i32
    %1 = arith.extui %0 : i1 to i32
    %c0_i32_0 = arith.constant 0 : i32
    %2 = arith.cmpi ne, %1, %c0_i32_0 : i32
    scf.if %2 {
      %cst_10 = arith.constant 0.000000e+00 : f32
      %12 = vector.broadcast %cst_10 : f32 to vector<16x32xf32>
      %c0_11 = arith.constant 0 : index
      %c0_12 = arith.constant 0 : index
      %13 = vector.load %arg7[%c0_11, %c0_12] : memref<16x32xf32, #tpu.memory_space<vmem>>, vector<16x32xf32>
      tpu.vector_store %arg7[%c0_11, %c0_12], %12 {strides = array<i32>} : memref<16x32xf32, #tpu.memory_space<vmem>>, vector<16x32xf32>,
    } else {
    }
    %c0 = arith.constant 0 : index
    %c0_1 = arith.constant 0 : index
    %3 = vector.load %arg7[%c0, %c0_1] : memref<16x32xf32, #tpu.memory_space<vmem>>, vector<16x32xf32>
    %c0_2 = arith.constant 0 : index
    %c0_3 = arith.constant 0 : index
    %4 = vector.load %arg3[%c0_2, %c0_3] : memref<16x32xf32, #tpu.memory_space<vmem>>, vector<16x32xf32>
    %c0_4 = arith.constant 0 : index
    %c0_5 = arith.constant 0 : index
    %5 = vector.load %arg4[%c0_4, %c0_5] : memref<32x32xf32, #tpu.memory_space<vmem>>, vector<32x32xf32>
    %cst = arith.constant dense<0.000000e+00> : vector<16x32xf32>
    %6 = tpu.matmul %4, %5, %cst {dimension_numbers = #tpu.dot_dimension_numbers<[1], [0], [0], [1], [0, 0, 1, 1], [], []>} : vector<16x32xf32>, vector<32x32xf32>, vector<16x32xf32> -> vector<16x32xf32>
    %7 = arith.addf %3, %6 : vector<16x32xf32>
    %c0_6 = arith.constant 0 : index
    %c0_7 = arith.constant 0 : index
    %8 = vector.load %arg7[%c0_6, %c0_7] : memref<16x32xf32, #tpu.memory_space<vmem>>, vector<16x32xf32>
    tpu.vector_store %arg7[%c0_6, %c0_7], %7 {strides = array<i32>} : memref<16x32xf32, #tpu.memory_space<vmem>>, vector<16x32xf32>,
    %c0_i32_8 = arith.constant 0 : i32
    %9 = arith.cmpi eq, %arg2, %c0_i32_8 : i32
    %10 = arith.extui %9 : i1 to i32
    %c0_i32_9 = arith.constant 0 : i32
    %11 = arith.cmpi ne, %10, %c0_i32_9 : i32
    scf.if %11 {
      %c0_10 = arith.constant 0 : index
      %c0_11 = arith.constant 0 : index
      %12 = vector.load %arg7[%c0_10, %c0_11] : memref<16x32xf32, #tpu.memory_space<vmem>>, vector<16x32xf32>
      %c0_12 = arith.constant 0 : index
      %c0_13 = arith.constant 0 : index
      %13 = vector.load %arg5[%c0_12, %c0_13] : memref<1x32xf32, #tpu.memory_space<vmem>>, vector<1x32xf32>
      %14 = vector.broadcast %13 : vector<1x32xf32> to vector<16x32xf32>
      %15 = arith.addf %12, %14 : vector<16x32xf32>
      %c0_14 = arith.constant 0 : index
      %c0_15 = arith.constant 0 : index
      %16 = vector.load %arg6[%c0_14, %c0_15] : memref<16x32xf32, #tpu.memory_space<vmem>>, vector<16x32xf32>
      %17 = arith.addf %15, %16 : vector<16x32xf32>
      %c0_16 = arith.constant 0 : index
      %c0_17 = arith.constant 0 : index
      %18 = vector.load %arg7[%c0_16, %c0_17] : memref<16x32xf32, #tpu.memory_space<vmem>>, vector<16x32xf32>
      tpu.vector_store %arg7[%c0_16, %c0_17], %17 {strides = array<i32>} : memref<16x32xf32, #tpu.memory_space<vmem>>, vector<16x32xf32>,
    } else {
    }
    return
  }
  func.func @transform_0(%arg0: i32, %arg1: i32, %arg2: i32) -> (i32, i32) {
    %c0_i32 = arith.constant 0 : i32
    return %arg0, %arg2 : i32, i32
  }
  func.func @transform_1(%arg0: i32, %arg1: i32, %arg2: i32) -> (i32, i32) {
    %c0_i32 = arith.constant 0 : i32
    return %arg2, %arg1 : i32, i32
  }
  func.func @transform_2(%arg0: i32, %arg1: i32, %arg2: i32) -> (i32, i32) {
    %c0_i32 = arith.constant 0 : i32
    %c0_i32_0 = arith.constant 0 : i32
    return %c0_i32, %arg1 : i32, i32
  }
  func.func @transform_3(%arg0: i32, %arg1: i32, %arg2: i32) -> (i32, i32) {
    %c0_i32 = arith.constant 0 : i32
    return %arg0, %arg1 : i32, i32
  }
  func.func @transform_4(%arg0: i32, %arg1: i32, %arg2: i32) -> (i32, i32) {
    %c0_i32 = arith.constant 0 : i32
    return %arg0, %arg1 : i32, i32
  }
}

module attributes {stable_mosaic.version = 11 : i64} {
  func.func @_ln_matmul_kernel(%arg0: i32, %arg1: i32, %arg2: memref<16x32xf32, #tpu.memory_space<vmem>>, %arg3: memref<1x32xf32, #tpu.memory_space<vmem>>, %arg4: memref<1x32xf32, #tpu.memory_space<vmem>>, %arg5: memref<32x64xf32, #tpu.memory_space<vmem>>, %arg6: memref<1x64xf32, #tpu.memory_space<vmem>>, %arg7: memref<16x64xf32, #tpu.memory_space<vmem>>, %arg8: memref<16x32xf32, #tpu.memory_space<vmem>>) attributes {dimension_semantics = [#tpu.dimension_semantics<parallel>, #tpu.dimension_semantics<arbitrary>], iteration_bounds = array<i64: 1, 1>, scalar_prefetch = 0 : i64, scratch_operands = 1 : i64, tpu.core_type = #tpu.core_type<tc>, window_params = [{transform_indices = @transform_0, window_bounds = array<i64: 16, 32>}, {pipeline_mode = #tpu.pipeline_mode<synchronous>, transform_indices = @transform_1, window_bounds = array<i64: 1, 32>}, {pipeline_mode = #tpu.pipeline_mode<synchronous>, transform_indices = @transform_2, window_bounds = array<i64: 1, 32>}, {transform_indices = @transform_3, window_bounds = array<i64: 32, 64>}, {transform_indices = @transform_4, window_bounds = array<i64: 1, 64>}, {transform_indices = @transform_5, window_bounds = array<i64: 16, 64>}]} {
    %c0_i32 = arith.constant 0 : i32
    %0 = arith.cmpi eq, %arg1, %c0_i32 : i32
    %1 = arith.extui %0 : i1 to i32
    %c0_i32_0 = arith.constant 0 : i32
    %2 = arith.cmpi ne, %1, %c0_i32_0 : i32
    scf.if %2 {
      %c0_9 = arith.constant 0 : index
      %c0_10 = arith.constant 0 : index
      %12 = vector.load %arg2[%c0_9, %c0_10] : memref<16x32xf32, #tpu.memory_space<vmem>>, vector<16x32xf32>
      %cst_11 = arith.constant dense<0.000000e+00> : vector<16xf32>
      %13 = vector.multi_reduction <add>, %12, %cst_11 [1] : vector<16x32xf32> to vector<16xf32>
      %14 = vector.shape_cast %13 : vector<16xf32> to vector<16x1xf32>
      %cst_12 = arith.constant 3.200000e+01 : f32
      %15 = vector.broadcast %cst_12 : f32 to vector<16x1xf32>
      %16 = arith.divf %14, %15 : vector<16x1xf32>
      %17 = vector.broadcast %16 : vector<16x1xf32> to vector<16x32xf32>
      %18 = arith.subf %12, %17 : vector<16x32xf32>
      %19 = arith.mulf %18, %18 : vector<16x32xf32>
      %cst_13 = arith.constant dense<0.000000e+00> : vector<16xf32>
      %20 = vector.multi_reduction <add>, %19, %cst_13 [1] : vector<16x32xf32> to vector<16xf32>
      %21 = vector.shape_cast %20 : vector<16xf32> to vector<16x1xf32>
      %cst_14 = arith.constant 3.200000e+01 : f32
      %22 = vector.broadcast %cst_14 : f32 to vector<16x1xf32>
      %23 = arith.divf %21, %22 : vector<16x1xf32>
      %24 = vector.broadcast %16 : vector<16x1xf32> to vector<16x32xf32>
      %25 = arith.subf %12, %24 : vector<16x32xf32>
      %cst_15 = arith.constant 9.99999974E-6 : f32
      %26 = vector.broadcast %cst_15 : f32 to vector<16x1xf32>
      %27 = arith.addf %23, %26 : vector<16x1xf32>
      %28 = math.rsqrt %27 : vector<16x1xf32>
      %29 = vector.broadcast %28 : vector<16x1xf32> to vector<16x32xf32>
      %30 = arith.mulf %25, %29 : vector<16x32xf32>
      %c0_16 = arith.constant 0 : index
      %c0_17 = arith.constant 0 : index
      %31 = vector.load %arg3[%c0_16, %c0_17] : memref<1x32xf32, #tpu.memory_space<vmem>>, vector<1x32xf32>
      %32 = vector.broadcast %31 : vector<1x32xf32> to vector<16x32xf32>
      %33 = arith.mulf %30, %32 : vector<16x32xf32>
      %c0_18 = arith.constant 0 : index
      %c0_19 = arith.constant 0 : index
      %34 = vector.load %arg4[%c0_18, %c0_19] : memref<1x32xf32, #tpu.memory_space<vmem>>, vector<1x32xf32>
      %35 = vector.broadcast %34 : vector<1x32xf32> to vector<16x32xf32>
      %36 = arith.addf %33, %35 : vector<16x32xf32>
      %c0_20 = arith.constant 0 : index
      %c0_21 = arith.constant 0 : index
      %37 = vector.load %arg8[%c0_20, %c0_21] : memref<16x32xf32, #tpu.memory_space<vmem>>, vector<16x32xf32>
      tpu.vector_store %arg8[%c0_20, %c0_21], %36 {strides = array<i32>} : memref<16x32xf32, #tpu.memory_space<vmem>>, vector<16x32xf32>,
    } else {
    }
    %c0 = arith.constant 0 : index
    %c0_1 = arith.constant 0 : index
    %3 = vector.load %arg8[%c0, %c0_1] : memref<16x32xf32, #tpu.memory_space<vmem>>, vector<16x32xf32>
    %c0_2 = arith.constant 0 : index
    %c0_3 = arith.constant 0 : index
    %4 = vector.load %arg5[%c0_2, %c0_3] : memref<32x64xf32, #tpu.memory_space<vmem>>, vector<32x64xf32>
    %cst = arith.constant dense<0.000000e+00> : vector<16x64xf32>
    %5 = tpu.matmul %3, %4, %cst {dimension_numbers = #tpu.dot_dimension_numbers<[1], [0], [0], [1], [0, 0, 1, 1], [], []>} : vector<16x32xf32>, vector<32x64xf32>, vector<16x64xf32> -> vector<16x64xf32>
    %c0_4 = arith.constant 0 : index
    %c0_5 = arith.constant 0 : index
    %6 = vector.load %arg6[%c0_4, %c0_5] : memref<1x64xf32, #tpu.memory_space<vmem>>, vector<1x64xf32>
    %7 = vector.broadcast %6 : vector<1x64xf32> to vector<16x64xf32>
    %8 = arith.addf %5, %7 : vector<16x64xf32>
    %cst_6 = arith.constant 0.000000e+00 : f32
    %9 = vector.broadcast %cst_6 : f32 to vector<16x64xf32>
    %10 = arith.maximumf %8, %9 : vector<16x64xf32>
    %c0_7 = arith.constant 0 : index
    %c0_8 = arith.constant 0 : index
    %11 = vector.load %arg7[%c0_7, %c0_8] : memref<16x64xf32, #tpu.memory_space<vmem>>, vector<16x64xf32>
    tpu.vector_store %arg7[%c0_7, %c0_8], %10 {strides = array<i32>} : memref<16x64xf32, #tpu.memory_space<vmem>>, vector<16x64xf32>,
    return
  }
  func.func @transform_0(%arg0: i32, %arg1: i32) -> (i32, i32) {
    %c0_i32 = arith.constant 0 : i32
    %c0_i32_0 = arith.constant 0 : i32
    return %arg0, %c0_i32 : i32, i32
  }
  func.func @transform_1(%arg0: i32, %arg1: i32) -> (i32, i32) {
    %c0_i32 = arith.constant 0 : i32
    %c0_i32_0 = arith.constant 0 : i32
    %c0_i32_1 = arith.constant 0 : i32
    return %c0_i32, %c0_i32_0 : i32, i32
  }
  func.func @transform_2(%arg0: i32, %arg1: i32) -> (i32, i32) {
    %c0_i32 = arith.constant 0 : i32
    %c0_i32_0 = arith.constant 0 : i32
    %c0_i32_1 = arith.constant 0 : i32
    return %c0_i32, %c0_i32_0 : i32, i32
  }
  func.func @transform_3(%arg0: i32, %arg1: i32) -> (i32, i32) {
    %c0_i32 = arith.constant 0 : i32
    %c0_i32_0 = arith.constant 0 : i32
    return %c0_i32, %arg1 : i32, i32
  }
  func.func @transform_4(%arg0: i32, %arg1: i32) -> (i32, i32) {
    %c0_i32 = arith.constant 0 : i32
    %c0_i32_0 = arith.constant 0 : i32
    return %c0_i32, %arg1 : i32, i32
  }
  func.func @transform_5(%arg0: i32, %arg1: i32) -> (i32, i32) {
    %c0_i32 = arith.constant 0 : i32
    return %arg0, %arg1 : i32, i32
  }
}

module attributes {stable_mosaic.version = 11 : i64} {
  func.func @_matmul_kernel(%arg0: i32, %arg1: i32, %arg2: i32, %arg3: memref<16x64xf32, #tpu.memory_space<vmem>>, %arg4: memref<64x32xf32, #tpu.memory_space<vmem>>, %arg5: memref<1x32xf32, #tpu.memory_space<vmem>>, %arg6: memref<16x32xf32, #tpu.memory_space<vmem>>, %arg7: memref<16x32xf32, #tpu.memory_space<vmem>>) attributes {dimension_semantics = [#tpu.dimension_semantics<parallel>, #tpu.dimension_semantics<parallel>, #tpu.dimension_semantics<arbitrary>], iteration_bounds = array<i64: 1, 1, 1>, scalar_prefetch = 0 : i64, scratch_operands = 0 : i64, tpu.core_type = #tpu.core_type<tc>, window_params = [{transform_indices = @transform_0, window_bounds = array<i64: 16, 64>}, {transform_indices = @transform_1, window_bounds = array<i64: 64, 32>}, {transform_indices = @transform_2, window_bounds = array<i64: 1, 32>}, {transform_indices = @transform_3, window_bounds = array<i64: 16, 32>}, {transform_indices = @transform_4, window_bounds = array<i64: 16, 32>}]} {
    %c0_i32 = arith.constant 0 : i32
    %0 = arith.cmpi eq, %arg2, %c0_i32 : i32
    %1 = arith.extui %0 : i1 to i32
    %c0_i32_0 = arith.constant 0 : i32
    %2 = arith.cmpi ne, %1, %c0_i32_0 : i32
    scf.if %2 {
      %cst_10 = arith.constant 0.000000e+00 : f32
      %12 = vector.broadcast %cst_10 : f32 to vector<16x32xf32>
      %c0_11 = arith.constant 0 : index
      %c0_12 = arith.constant 0 : index
      %13 = vector.load %arg7[%c0_11, %c0_12] : memref<16x32xf32, #tpu.memory_space<vmem>>, vector<16x32xf32>
      tpu.vector_store %arg7[%c0_11, %c0_12], %12 {strides = array<i32>} : memref<16x32xf32, #tpu.memory_space<vmem>>, vector<16x32xf32>,
    } else {
    }
    %c0 = arith.constant 0 : index
    %c0_1 = arith.constant 0 : index
    %3 = vector.load %arg7[%c0, %c0_1] : memref<16x32xf32, #tpu.memory_space<vmem>>, vector<16x32xf32>
    %c0_2 = arith.constant 0 : index
    %c0_3 = arith.constant 0 : index
    %4 = vector.load %arg3[%c0_2, %c0_3] : memref<16x64xf32, #tpu.memory_space<vmem>>, vector<16x64xf32>
    %c0_4 = arith.constant 0 : index
    %c0_5 = arith.constant 0 : index
    %5 = vector.load %arg4[%c0_4, %c0_5] : memref<64x32xf32, #tpu.memory_space<vmem>>, vector<64x32xf32>
    %cst = arith.constant dense<0.000000e+00> : vector<16x32xf32>
    %6 = tpu.matmul %4, %5, %cst {dimension_numbers = #tpu.dot_dimension_numbers<[1], [0], [0], [1], [0, 0, 1, 1], [], []>} : vector<16x64xf32>, vector<64x32xf32>, vector<16x32xf32> -> vector<16x32xf32>
    %7 = arith.addf %3, %6 : vector<16x32xf32>
    %c0_6 = arith.constant 0 : index
    %c0_7 = arith.constant 0 : index
    %8 = vector.load %arg7[%c0_6, %c0_7] : memref<16x32xf32, #tpu.memory_space<vmem>>, vector<16x32xf32>
    tpu.vector_store %arg7[%c0_6, %c0_7], %7 {strides = array<i32>} : memref<16x32xf32, #tpu.memory_space<vmem>>, vector<16x32xf32>,
    %c0_i32_8 = arith.constant 0 : i32
    %9 = arith.cmpi eq, %arg2, %c0_i32_8 : i32
    %10 = arith.extui %9 : i1 to i32
    %c0_i32_9 = arith.constant 0 : i32
    %11 = arith.cmpi ne, %10, %c0_i32_9 : i32
    scf.if %11 {
      %c0_10 = arith.constant 0 : index
      %c0_11 = arith.constant 0 : index
      %12 = vector.load %arg7[%c0_10, %c0_11] : memref<16x32xf32, #tpu.memory_space<vmem>>, vector<16x32xf32>
      %c0_12 = arith.constant 0 : index
      %c0_13 = arith.constant 0 : index
      %13 = vector.load %arg5[%c0_12, %c0_13] : memref<1x32xf32, #tpu.memory_space<vmem>>, vector<1x32xf32>
      %14 = vector.broadcast %13 : vector<1x32xf32> to vector<16x32xf32>
      %15 = arith.addf %12, %14 : vector<16x32xf32>
      %c0_14 = arith.constant 0 : index
      %c0_15 = arith.constant 0 : index
      %16 = vector.load %arg6[%c0_14, %c0_15] : memref<16x32xf32, #tpu.memory_space<vmem>>, vector<16x32xf32>
      %17 = arith.addf %15, %16 : vector<16x32xf32>
      %c0_16 = arith.constant 0 : index
      %c0_17 = arith.constant 0 : index
      %18 = vector.load %arg7[%c0_16, %c0_17] : memref<16x32xf32, #tpu.memory_space<vmem>>, vector<16x32xf32>
      tpu.vector_store %arg7[%c0_16, %c0_17], %17 {strides = array<i32>} : memref<16x32xf32, #tpu.memory_space<vmem>>, vector<16x32xf32>,
    } else {
    }
    return
  }
  func.func @transform_0(%arg0: i32, %arg1: i32, %arg2: i32) -> (i32, i32) {
    %c0_i32 = arith.constant 0 : i32
    return %arg0, %arg2 : i32, i32
  }
  func.func @transform_1(%arg0: i32, %arg1: i32, %arg2: i32) -> (i32, i32) {
    %c0_i32 = arith.constant 0 : i32
    return %arg2, %arg1 : i32, i32
  }
  func.func @transform_2(%arg0: i32, %arg1: i32, %arg2: i32) -> (i32, i32) {
    %c0_i32 = arith.constant 0 : i32
    %c0_i32_0 = arith.constant 0 : i32
    return %c0_i32, %arg1 : i32, i32
  }
  func.func @transform_3(%arg0: i32, %arg1: i32, %arg2: i32) -> (i32, i32) {
    %c0_i32 = arith.constant 0 : i32
    return %arg0, %arg1 : i32, i32
  }
  func.func @transform_4(%arg0: i32, %arg1: i32, %arg2: i32) -> (i32, i32) {
    %c0_i32 = arith.constant 0 : i32
    return %arg0, %arg1 : i32, i32
  }
}

module attributes {stable_mosaic.version = 11 : i64} {
  func.func @_ln_matmul_kernel(%arg0: i32, %arg1: i32, %arg2: memref<16x32xf32, #tpu.memory_space<vmem>>, %arg3: memref<1x32xf32, #tpu.memory_space<vmem>>, %arg4: memref<1x32xf32, #tpu.memory_space<vmem>>, %arg5: memref<32x64xf32, #tpu.memory_space<vmem>>, %arg6: memref<1x64xf32, #tpu.memory_space<vmem>>, %arg7: memref<16x64xf32, #tpu.memory_space<vmem>>, %arg8: memref<16x32xf32, #tpu.memory_space<vmem>>) attributes {dimension_semantics = [#tpu.dimension_semantics<parallel>, #tpu.dimension_semantics<arbitrary>], iteration_bounds = array<i64: 1, 1>, scalar_prefetch = 0 : i64, scratch_operands = 1 : i64, tpu.core_type = #tpu.core_type<tc>, window_params = [{transform_indices = @transform_0, window_bounds = array<i64: 16, 32>}, {pipeline_mode = #tpu.pipeline_mode<synchronous>, transform_indices = @transform_1, window_bounds = array<i64: 1, 32>}, {pipeline_mode = #tpu.pipeline_mode<synchronous>, transform_indices = @transform_2, window_bounds = array<i64: 1, 32>}, {transform_indices = @transform_3, window_bounds = array<i64: 32, 64>}, {transform_indices = @transform_4, window_bounds = array<i64: 1, 64>}, {transform_indices = @transform_5, window_bounds = array<i64: 16, 64>}]} {
    %c0_i32 = arith.constant 0 : i32
    %0 = arith.cmpi eq, %arg1, %c0_i32 : i32
    %1 = arith.extui %0 : i1 to i32
    %c0_i32_0 = arith.constant 0 : i32
    %2 = arith.cmpi ne, %1, %c0_i32_0 : i32
    scf.if %2 {
      %c0_8 = arith.constant 0 : index
      %c0_9 = arith.constant 0 : index
      %10 = vector.load %arg2[%c0_8, %c0_9] : memref<16x32xf32, #tpu.memory_space<vmem>>, vector<16x32xf32>
      %cst_10 = arith.constant dense<0.000000e+00> : vector<16xf32>
      %11 = vector.multi_reduction <add>, %10, %cst_10 [1] : vector<16x32xf32> to vector<16xf32>
      %12 = vector.shape_cast %11 : vector<16xf32> to vector<16x1xf32>
      %cst_11 = arith.constant 3.200000e+01 : f32
      %13 = vector.broadcast %cst_11 : f32 to vector<16x1xf32>
      %14 = arith.divf %12, %13 : vector<16x1xf32>
      %15 = vector.broadcast %14 : vector<16x1xf32> to vector<16x32xf32>
      %16 = arith.subf %10, %15 : vector<16x32xf32>
      %17 = arith.mulf %16, %16 : vector<16x32xf32>
      %cst_12 = arith.constant dense<0.000000e+00> : vector<16xf32>
      %18 = vector.multi_reduction <add>, %17, %cst_12 [1] : vector<16x32xf32> to vector<16xf32>
      %19 = vector.shape_cast %18 : vector<16xf32> to vector<16x1xf32>
      %cst_13 = arith.constant 3.200000e+01 : f32
      %20 = vector.broadcast %cst_13 : f32 to vector<16x1xf32>
      %21 = arith.divf %19, %20 : vector<16x1xf32>
      %22 = vector.broadcast %14 : vector<16x1xf32> to vector<16x32xf32>
      %23 = arith.subf %10, %22 : vector<16x32xf32>
      %cst_14 = arith.constant 9.99999974E-6 : f32
      %24 = vector.broadcast %cst_14 : f32 to vector<16x1xf32>
      %25 = arith.addf %21, %24 : vector<16x1xf32>
      %26 = math.rsqrt %25 : vector<16x1xf32>
      %27 = vector.broadcast %26 : vector<16x1xf32> to vector<16x32xf32>
      %28 = arith.mulf %23, %27 : vector<16x32xf32>
      %c0_15 = arith.constant 0 : index
      %c0_16 = arith.constant 0 : index
      %29 = vector.load %arg3[%c0_15, %c0_16] : memref<1x32xf32, #tpu.memory_space<vmem>>, vector<1x32xf32>
      %30 = vector.broadcast %29 : vector<1x32xf32> to vector<16x32xf32>
      %31 = arith.mulf %28, %30 : vector<16x32xf32>
      %c0_17 = arith.constant 0 : index
      %c0_18 = arith.constant 0 : index
      %32 = vector.load %arg4[%c0_17, %c0_18] : memref<1x32xf32, #tpu.memory_space<vmem>>, vector<1x32xf32>
      %33 = vector.broadcast %32 : vector<1x32xf32> to vector<16x32xf32>
      %34 = arith.addf %31, %33 : vector<16x32xf32>
      %c0_19 = arith.constant 0 : index
      %c0_20 = arith.constant 0 : index
      %35 = vector.load %arg8[%c0_19, %c0_20] : memref<16x32xf32, #tpu.memory_space<vmem>>, vector<16x32xf32>
      tpu.vector_store %arg8[%c0_19, %c0_20], %34 {strides = array<i32>} : memref<16x32xf32, #tpu.memory_space<vmem>>, vector<16x32xf32>,
    } else {
    }
    %c0 = arith.constant 0 : index
    %c0_1 = arith.constant 0 : index
    %3 = vector.load %arg8[%c0, %c0_1] : memref<16x32xf32, #tpu.memory_space<vmem>>, vector<16x32xf32>
    %c0_2 = arith.constant 0 : index
    %c0_3 = arith.constant 0 : index
    %4 = vector.load %arg5[%c0_2, %c0_3] : memref<32x64xf32, #tpu.memory_space<vmem>>, vector<32x64xf32>
    %cst = arith.constant dense<0.000000e+00> : vector<16x64xf32>
    %5 = tpu.matmul %3, %4, %cst {dimension_numbers = #tpu.dot_dimension_numbers<[1], [0], [0], [1], [0, 0, 1, 1], [], []>} : vector<16x32xf32>, vector<32x64xf32>, vector<16x64xf32> -> vector<16x64xf32>
    %c0_4 = arith.constant 0 : index
    %c0_5 = arith.constant 0 : index
    %6 = vector.load %arg6[%c0_4, %c0_5] : memref<1x64xf32, #tpu.memory_space<vmem>>, vector<1x64xf32>
    %7 = vector.broadcast %6 : vector<1x64xf32> to vector<16x64xf32>
    %8 = arith.addf %5, %7 : vector<16x64xf32>
    %c0_6 = arith.constant 0 : index
    %c0_7 = arith.constant 0 : index
    %9 = vector.load %arg7[%c0_6, %c0_7] : memref<16x64xf32, #tpu.memory_space<vmem>>, vector<16x64xf32>
    tpu.vector_store %arg7[%c0_6, %c0_7], %8 {strides = array<i32>} : memref<16x64xf32, #tpu.memory_space<vmem>>, vector<16x64xf32>,
    return
  }
  func.func @transform_0(%arg0: i32, %arg1: i32) -> (i32, i32) {
    %c0_i32 = arith.constant 0 : i32
    %c0_i32_0 = arith.constant 0 : i32
    return %arg0, %c0_i32 : i32, i32
  }
  func.func @transform_1(%arg0: i32, %arg1: i32) -> (i32, i32) {
    %c0_i32 = arith.constant 0 : i32
    %c0_i32_0 = arith.constant 0 : i32
    %c0_i32_1 = arith.constant 0 : i32
    return %c0_i32, %c0_i32_0 : i32, i32
  }
  func.func @transform_2(%arg0: i32, %arg1: i32) -> (i32, i32) {
    %c0_i32 = arith.constant 0 : i32
    %c0_i32_0 = arith.constant 0 : i32
    %c0_i32_1 = arith.constant 0 : i32
    return %c0_i32, %c0_i32_0 : i32, i32
  }
  func.func @transform_3(%arg0: i32, %arg1: i32) -> (i32, i32) {
    %c0_i32 = arith.constant 0 : i32
    %c0_i32_0 = arith.constant 0 : i32
    return %c0_i32, %arg1 : i32, i32
  }
  func.func @transform_4(%arg0: i32, %arg1: i32) -> (i32, i32) {
    %c0_i32 = arith.constant 0 : i32
    %c0_i32_0 = arith.constant 0 : i32
    return %c0_i32, %arg1 : i32, i32
  }
  func.func @transform_5(%arg0: i32, %arg1: i32) -> (i32, i32) {
    %c0_i32 = arith.constant 0 : i32
    return %arg0, %arg1 : i32, i32
  }
}

module attributes {stable_mosaic.version = 11 : i64} {
  func.func @_flash_mha_kernel(%arg0: i32, %arg1: i32, %arg2: i32, %arg3: memref<1x8x96xf32, #tpu.memory_space<vmem>>, %arg4: memref<1x8x96xf32, #tpu.memory_space<vmem>>, %arg5: memref<1x8x8xf32, #tpu.memory_space<vmem>>, %arg6: memref<1x8x32xf32, #tpu.memory_space<vmem>>, %arg7: memref<4x8x8xf32, #tpu.memory_space<vmem>>, %arg8: memref<4x8x1xf32, #tpu.memory_space<vmem>>, %arg9: memref<4x8x1xf32, #tpu.memory_space<vmem>>) attributes {dimension_semantics = [#tpu.dimension_semantics<parallel>, #tpu.dimension_semantics<parallel>, #tpu.dimension_semantics<arbitrary>], iteration_bounds = array<i64: 2, 1, 1>, scalar_prefetch = 0 : i64, scratch_operands = 3 : i64, tpu.core_type = #tpu.core_type<tc>, window_params = [{transform_indices = @transform_0, window_bounds = array<i64: 1, 8, 96>}, {transform_indices = @transform_1, window_bounds = array<i64: 1, 8, 96>}, {transform_indices = @transform_2, window_bounds = array<i64: 1, 8, 8>}, {transform_indices = @transform_3, window_bounds = array<i64: 1, 8, 32>}]} {
    %c0_i32 = arith.constant 0 : i32
    %0 = arith.cmpi eq, %arg2, %c0_i32 : i32
    %1 = arith.extui %0 : i1 to i32
    %c0_i32_0 = arith.constant 0 : i32
    %2 = arith.cmpi ne, %1, %c0_i32_0 : i32
    scf.if %2 {
      %cst_97 = arith.constant 0.000000e+00 : f32
      %160 = vector.broadcast %cst_97 : f32 to vector<4x8x8xf32>
      %c0_98 = arith.constant 0 : index
      %c0_99 = arith.constant 0 : index
      %c0_100 = arith.constant 0 : index
      %161 = vector.load %arg7[%c0_98, %c0_99, %c0_100] : memref<4x8x8xf32, #tpu.memory_space<vmem>>, vector<4x8x8xf32>
      tpu.vector_store %arg7[%c0_98, %c0_99, %c0_100], %160 {strides = array<i32>} : memref<4x8x8xf32, #tpu.memory_space<vmem>>, vector<4x8x8xf32>,
      %cst_101 = arith.constant -1.000000e+30 : f32
      %162 = vector.broadcast %cst_101 : f32 to vector<4x8x1xf32>
      %c0_102 = arith.constant 0 : index
      %c0_103 = arith.constant 0 : index
      %c0_104 = arith.constant 0 : index
      %163 = vector.load %arg8[%c0_102, %c0_103, %c0_104] : memref<4x8x1xf32, #tpu.memory_space<vmem>>, vector<4x8x1xf32>
      tpu.vector_store %arg8[%c0_102, %c0_103, %c0_104], %162 {strides = array<i32>} : memref<4x8x1xf32, #tpu.memory_space<vmem>>, vector<4x8x1xf32>,
      %cst_105 = arith.constant 0.000000e+00 : f32
      %164 = vector.broadcast %cst_105 : f32 to vector<4x8x1xf32>
      %c0_106 = arith.constant 0 : index
      %c0_107 = arith.constant 0 : index
      %c0_108 = arith.constant 0 : index
      %165 = vector.load %arg9[%c0_106, %c0_107, %c0_108] : memref<4x8x1xf32, #tpu.memory_space<vmem>>, vector<4x8x1xf32>
      tpu.vector_store %arg9[%c0_106, %c0_107, %c0_108], %164 {strides = array<i32>} : memref<4x8x1xf32, #tpu.memory_space<vmem>>, vector<4x8x1xf32>,
    } else {
    }
    %c0 = arith.constant 0 : index
    %c0_1 = arith.constant 0 : index
    %c0_2 = arith.constant 0 : index
    %3 = vector.load %arg3[%c0, %c0_1, %c0_2] : memref<1x8x96xf32, #tpu.memory_space<vmem>>, vector<1x8x32xf32>
    %4 = vector.shape_cast %3 : vector<1x8x32xf32> to vector<8x32xf32>
    %cst = arith.constant 0.353553385 : f32
    %5 = vector.broadcast %cst : f32 to vector<8x32xf32>
    %6 = arith.mulf %4, %5 : vector<8x32xf32>
    %c0_3 = arith.constant 0 : index
    %c0_4 = arith.constant 0 : index
    %c32 = arith.constant 32 : index
    %7 = vector.load %arg4[%c0_3, %c0_4, %c32] : memref<1x8x96xf32, #tpu.memory_space<vmem>>, vector<1x8x32xf32>
    %8 = vector.shape_cast %7 : vector<1x8x32xf32> to vector<8x32xf32>
    %c0_5 = arith.constant 0 : index
    %c0_6 = arith.constant 0 : index
    %c64 = arith.constant 64 : index
    %9 = vector.load %arg4[%c0_5, %c0_6, %c64] : memref<1x8x96xf32, #tpu.memory_space<vmem>>, vector<1x8x32xf32>
    %10 = vector.shape_cast %9 : vector<1x8x32xf32> to vector<8x32xf32>
    %c0_7 = arith.constant 0 : index
    %c0_8 = arith.constant 0 : index
    %c0_9 = arith.constant 0 : index
    %11 = vector.load %arg5[%c0_7, %c0_8, %c0_9] : memref<1x8x8xf32, #tpu.memory_space<vmem>>, vector<1x8x8xf32>
    %12 = vector.shape_cast %11 : vector<1x8x8xf32> to vector<8x8xf32>
    %13 = vector.extract_strided_slice %6 {offsets = [0, 0], sizes = [8, 8], strides = [1, 1]} : vector<8x32xf32> to vector<8x8xf32>
    %14 = vector.extract_strided_slice %8 {offsets = [0, 0], sizes = [8, 8], strides = [1, 1]} : vector<8x32xf32> to vector<8x8xf32>
    %cst_10 = arith.constant dense<0.000000e+00> : vector<8x8xf32>
    %15 = tpu.matmul %13, %14, %cst_10 {dimension_numbers = #tpu.dot_dimension_numbers<[1], [1], [0], [0], [0, 0, 1, 0], [], []>} : vector<8x8xf32>, vector<8x8xf32>, vector<8x8xf32> -> vector<8x8xf32>
    %16 = arith.addf %15, %12 : vector<8x8xf32>
    %c0_11 = arith.constant 0 : index
    %c0_12 = arith.constant 0 : index
    %c0_13 = arith.constant 0 : index
    %17 = vector.load %arg8[%c0_11, %c0_12, %c0_13] : memref<4x8x1xf32, #tpu.memory_space<vmem>>, vector<1x8x1xf32>
    %18 = vector.shape_cast %17 : vector<1x8x1xf32> to vector<8x1xf32>
    %cst_14 = arith.constant dense<0xFF800000> : vector<8xf32>
    %19 = vector.multi_reduction <maximumf>, %16, %cst_14 [1] : vector<8x8xf32> to vector<8xf32>
    %20 = vector.shape_cast %19 : vector<8xf32> to vector<8x1xf32>
    %21 = arith.maximumf %18, %20 : vector<8x1xf32>
    %22 = arith.subf %18, %21 : vector<8x1xf32>
    %23 = math.exp %22 : vector<8x1xf32>
    %24 = vector.broadcast %21 : vector<8x1xf32> to vector<8x8xf32>
    %25 = arith.subf %16, %24 : vector<8x8xf32>
    %26 = math.exp %25 : vector<8x8xf32>
    %c0_15 = arith.constant 0 : index
    %c0_16 = arith.constant 0 : index
    %c0_17 = arith.constant 0 : index
    %27 = vector.load %arg9[%c0_15, %c0_16, %c0_17] : memref<4x8x1xf32, #tpu.memory_space<vmem>>, vector<1x8x1xf32>
    %28 = vector.shape_cast %27 : vector<1x8x1xf32> to vector<8x1xf32>
    %29 = arith.mulf %23, %28 : vector<8x1xf32>
    %cst_18 = arith.constant dense<0.000000e+00> : vector<8xf32>
    %30 = vector.multi_reduction <add>, %26, %cst_18 [1] : vector<8x8xf32> to vector<8xf32>
    %31 = vector.shape_cast %30 : vector<8xf32> to vector<8x1xf32>
    %32 = arith.addf %29, %31 : vector<8x1xf32>
    %c0_19 = arith.constant 0 : index
    %c0_20 = arith.constant 0 : index
    %c0_21 = arith.constant 0 : index
    %33 = vector.load %arg9[%c0_19, %c0_20, %c0_21] : memref<4x8x1xf32, #tpu.memory_space<vmem>>, vector<1x8x1xf32>
    %34 = vector.shape_cast %33 : vector<1x8x1xf32> to vector<8x1xf32>
    %35 = vector.shape_cast %32 : vector<8x1xf32> to vector<1x8x1xf32>
    tpu.vector_store %arg9[%c0_19, %c0_20, %c0_21], %35 {strides = array<i32>} : memref<4x8x1xf32, #tpu.memory_space<vmem>>, vector<1x8x1xf32>,
    %c0_22 = arith.constant 0 : index
    %c0_23 = arith.constant 0 : index
    %c0_24 = arith.constant 0 : index
    %36 = vector.load %arg7[%c0_22, %c0_23, %c0_24] : memref<4x8x8xf32, #tpu.memory_space<vmem>>, vector<1x8x8xf32>
    %37 = vector.shape_cast %36 : vector<1x8x8xf32> to vector<8x8xf32>
    %38 = vector.broadcast %23 : vector<8x1xf32> to vector<8x8xf32>
    %39 = arith.mulf %38, %37 : vector<8x8xf32>
    %40 = vector.extract_strided_slice %10 {offsets = [0, 0], sizes = [8, 8], strides = [1, 1]} : vector<8x32xf32> to vector<8x8xf32>
    %cst_25 = arith.constant dense<0.000000e+00> : vector<8x8xf32>
    %41 = tpu.matmul %26, %40, %cst_25 {dimension_numbers = #tpu.dot_dimension_numbers<[1], [0], [0], [1], [0, 0, 1, 1], [], []>} : vector<8x8xf32>, vector<8x8xf32>, vector<8x8xf32> -> vector<8x8xf32>
    %42 = arith.addf %39, %41 : vector<8x8xf32>
    %c0_26 = arith.constant 0 : index
    %c0_27 = arith.constant 0 : index
    %c0_28 = arith.constant 0 : index
    %43 = vector.load %arg7[%c0_26, %c0_27, %c0_28] : memref<4x8x8xf32, #tpu.memory_space<vmem>>, vector<1x8x8xf32>
    %44 = vector.shape_cast %43 : vector<1x8x8xf32> to vector<8x8xf32>
    %45 = vector.shape_cast %42 : vector<8x8xf32> to vector<1x8x8xf32>
    tpu.vector_store %arg7[%c0_26, %c0_27, %c0_28], %45 {strides = array<i32>} : memref<4x8x8xf32, #tpu.memory_space<vmem>>, vector<1x8x8xf32>,
    %c0_29 = arith.constant 0 : index
    %c0_30 = arith.constant 0 : index
    %c0_31 = arith.constant 0 : index
    %46 = vector.load %arg8[%c0_29, %c0_30, %c0_31] : memref<4x8x1xf32, #tpu.memory_space<vmem>>, vector<1x8x1xf32>
    %47 = vector.shape_cast %46 : vector<1x8x1xf32> to vector<8x1xf32>
    %48 = vector.shape_cast %21 : vector<8x1xf32> to vector<1x8x1xf32>
    tpu.vector_store %arg8[%c0_29, %c0_30, %c0_31], %48 {strides = array<i32>} : memref<4x8x1xf32, #tpu.memory_space<vmem>>, vector<1x8x1xf32>,
    %49 = vector.extract_strided_slice %6 {offsets = [0, 8], sizes = [8, 8], strides = [1, 1]} : vector<8x32xf32> to vector<8x8xf32>
    %50 = vector.extract_strided_slice %8 {offsets = [0, 8], sizes = [8, 8], strides = [1, 1]} : vector<8x32xf32> to vector<8x8xf32>
    %cst_32 = arith.constant dense<0.000000e+00> : vector<8x8xf32>
    %51 = tpu.matmul %49, %50, %cst_32 {dimension_numbers = #tpu.dot_dimension_numbers<[1], [1], [0], [0], [0, 0, 1, 0], [], []>} : vector<8x8xf32>, vector<8x8xf32>, vector<8x8xf32> -> vector<8x8xf32>
    %52 = arith.addf %51, %12 : vector<8x8xf32>
    %c1 = arith.constant 1 : index
    %c0_33 = arith.constant 0 : index
    %c0_34 = arith.constant 0 : index
    %53 = vector.load %arg8[%c1, %c0_33, %c0_34] : memref<4x8x1xf32, #tpu.memory_space<vmem>>, vector<1x8x1xf32>
    %54 = vector.shape_cast %53 : vector<1x8x1xf32> to vector<8x1xf32>
    %cst_35 = arith.constant dense<0xFF800000> : vector<8xf32>
    %55 = vector.multi_reduction <maximumf>, %52, %cst_35 [1] : vector<8x8xf32> to vector<8xf32>
    %56 = vector.shape_cast %55 : vector<8xf32> to vector<8x1xf32>
    %57 = arith.maximumf %54, %56 : vector<8x1xf32>
    %58 = arith.subf %54, %57 : vector<8x1xf32>
    %59 = math.exp %58 : vector<8x1xf32>
    %60 = vector.broadcast %57 : vector<8x1xf32> to vector<8x8xf32>
    %61 = arith.subf %52, %60 : vector<8x8xf32>
    %62 = math.exp %61 : vector<8x8xf32>
    %c1_36 = arith.constant 1 : index
    %c0_37 = arith.constant 0 : index
    %c0_38 = arith.constant 0 : index
    %63 = vector.load %arg9[%c1_36, %c0_37, %c0_38] : memref<4x8x1xf32, #tpu.memory_space<vmem>>, vector<1x8x1xf32>
    %64 = vector.shape_cast %63 : vector<1x8x1xf32> to vector<8x1xf32>
    %65 = arith.mulf %59, %64 : vector<8x1xf32>
    %cst_39 = arith.constant dense<0.000000e+00> : vector<8xf32>
    %66 = vector.multi_reduction <add>, %62, %cst_39 [1] : vector<8x8xf32> to vector<8xf32>
    %67 = vector.shape_cast %66 : vector<8xf32> to vector<8x1xf32>
    %68 = arith.addf %65, %67 : vector<8x1xf32>
    %c1_40 = arith.constant 1 : index
    %c0_41 = arith.constant 0 : index
    %c0_42 = arith.constant 0 : index
    %69 = vector.load %arg9[%c1_40, %c0_41, %c0_42] : memref<4x8x1xf32, #tpu.memory_space<vmem>>, vector<1x8x1xf32>
    %70 = vector.shape_cast %69 : vector<1x8x1xf32> to vector<8x1xf32>
    %71 = vector.shape_cast %68 : vector<8x1xf32> to vector<1x8x1xf32>
    tpu.vector_store %arg9[%c1_40, %c0_41, %c0_42], %71 {strides = array<i32>} : memref<4x8x1xf32, #tpu.memory_space<vmem>>, vector<1x8x1xf32>,
    %c1_43 = arith.constant 1 : index
    %c0_44 = arith.constant 0 : index
    %c0_45 = arith.constant 0 : index
    %72 = vector.load %arg7[%c1_43, %c0_44, %c0_45] : memref<4x8x8xf32, #tpu.memory_space<vmem>>, vector<1x8x8xf32>
    %73 = vector.shape_cast %72 : vector<1x8x8xf32> to vector<8x8xf32>
    %74 = vector.broadcast %59 : vector<8x1xf32> to vector<8x8xf32>
    %75 = arith.mulf %74, %73 : vector<8x8xf32>
    %76 = vector.extract_strided_slice %10 {offsets = [0, 8], sizes = [8, 8], strides = [1, 1]} : vector<8x32xf32> to vector<8x8xf32>
    %cst_46 = arith.constant dense<0.000000e+00> : vector<8x8xf32>
    %77 = tpu.matmul %62, %76, %cst_46 {dimension_numbers = #tpu.dot_dimension_numbers<[1], [0], [0], [1], [0, 0, 1, 1], [], []>} : vector<8x8xf32>, vector<8x8xf32>, vector<8x8xf32> -> vector<8x8xf32>
    %78 = arith.addf %75, %77 : vector<8x8xf32>
    %c1_47 = arith.constant 1 : index
    %c0_48 = arith.constant 0 : index
    %c0_49 = arith.constant 0 : index
    %79 = vector.load %arg7[%c1_47, %c0_48, %c0_49] : memref<4x8x8xf32, #tpu.memory_space<vmem>>, vector<1x8x8xf32>
    %80 = vector.shape_cast %79 : vector<1x8x8xf32> to vector<8x8xf32>
    %81 = vector.shape_cast %78 : vector<8x8xf32> to vector<1x8x8xf32>
    tpu.vector_store %arg7[%c1_47, %c0_48, %c0_49], %81 {strides = array<i32>} : memref<4x8x8xf32, #tpu.memory_space<vmem>>, vector<1x8x8xf32>,
    %c1_50 = arith.constant 1 : index
    %c0_51 = arith.constant 0 : index
    %c0_52 = arith.constant 0 : index
    %82 = vector.load %arg8[%c1_50, %c0_51, %c0_52] : memref<4x8x1xf32, #tpu.memory_space<vmem>>, vector<1x8x1xf32>
    %83 = vector.shape_cast %82 : vector<1x8x1xf32> to vector<8x1xf32>
    %84 = vector.shape_cast %57 : vector<8x1xf32> to vector<1x8x1xf32>
    tpu.vector_store %arg8[%c1_50, %c0_51, %c0_52], %84 {strides = array<i32>} : memref<4x8x1xf32, #tpu.memory_space<vmem>>, vector<1x8x1xf32>,
    %85 = vector.extract_strided_slice %6 {offsets = [0, 16], sizes = [8, 8], strides = [1, 1]} : vector<8x32xf32> to vector<8x8xf32>
    %86 = vector.extract_strided_slice %8 {offsets = [0, 16], sizes = [8, 8], strides = [1, 1]} : vector<8x32xf32> to vector<8x8xf32>
    %cst_53 = arith.constant dense<0.000000e+00> : vector<8x8xf32>
    %87 = tpu.matmul %85, %86, %cst_53 {dimension_numbers = #tpu.dot_dimension_numbers<[1], [1], [0], [0], [0, 0, 1, 0], [], []>} : vector<8x8xf32>, vector<8x8xf32>, vector<8x8xf32> -> vector<8x8xf32>
    %88 = arith.addf %87, %12 : vector<8x8xf32>
    %c2 = arith.constant 2 : index
    %c0_54 = arith.constant 0 : index
    %c0_55 = arith.constant 0 : index
    %89 = vector.load %arg8[%c2, %c0_54, %c0_55] : memref<4x8x1xf32, #tpu.memory_space<vmem>>, vector<1x8x1xf32>
    %90 = vector.shape_cast %89 : vector<1x8x1xf32> to vector<8x1xf32>
    %cst_56 = arith.constant dense<0xFF800000> : vector<8xf32>
    %91 = vector.multi_reduction <maximumf>, %88, %cst_56 [1] : vector<8x8xf32> to vector<8xf32>
    %92 = vector.shape_cast %91 : vector<8xf32> to vector<8x1xf32>
    %93 = arith.maximumf %90, %92 : vector<8x1xf32>
    %94 = arith.subf %90, %93 : vector<8x1xf32>
    %95 = math.exp %94 : vector<8x1xf32>
    %96 = vector.broadcast %93 : vector<8x1xf32> to vector<8x8xf32>
    %97 = arith.subf %88, %96 : vector<8x8xf32>
    %98 = math.exp %97 : vector<8x8xf32>
    %c2_57 = arith.constant 2 : index
    %c0_58 = arith.constant 0 : index
    %c0_59 = arith.constant 0 : index
    %99 = vector.load %arg9[%c2_57, %c0_58, %c0_59] : memref<4x8x1xf32, #tpu.memory_space<vmem>>, vector<1x8x1xf32>
    %100 = vector.shape_cast %99 : vector<1x8x1xf32> to vector<8x1xf32>
    %101 = arith.mulf %95, %100 : vector<8x1xf32>
    %cst_60 = arith.constant dense<0.000000e+00> : vector<8xf32>
    %102 = vector.multi_reduction <add>, %98, %cst_60 [1] : vector<8x8xf32> to vector<8xf32>
    %103 = vector.shape_cast %102 : vector<8xf32> to vector<8x1xf32>
    %104 = arith.addf %101, %103 : vector<8x1xf32>
    %c2_61 = arith.constant 2 : index
    %c0_62 = arith.constant 0 : index
    %c0_63 = arith.constant 0 : index
    %105 = vector.load %arg9[%c2_61, %c0_62, %c0_63] : memref<4x8x1xf32, #tpu.memory_space<vmem>>, vector<1x8x1xf32>
    %106 = vector.shape_cast %105 : vector<1x8x1xf32> to vector<8x1xf32>
    %107 = vector.shape_cast %104 : vector<8x1xf32> to vector<1x8x1xf32>
    tpu.vector_store %arg9[%c2_61, %c0_62, %c0_63], %107 {strides = array<i32>} : memref<4x8x1xf32, #tpu.memory_space<vmem>>, vector<1x8x1xf32>,
    %c2_64 = arith.constant 2 : index
    %c0_65 = arith.constant 0 : index
    %c0_66 = arith.constant 0 : index
    %108 = vector.load %arg7[%c2_64, %c0_65, %c0_66] : memref<4x8x8xf32, #tpu.memory_space<vmem>>, vector<1x8x8xf32>
    %109 = vector.shape_cast %108 : vector<1x8x8xf32> to vector<8x8xf32>
    %110 = vector.broadcast %95 : vector<8x1xf32> to vector<8x8xf32>
    %111 = arith.mulf %110, %109 : vector<8x8xf32>
    %112 = vector.extract_strided_slice %10 {offsets = [0, 16], sizes = [8, 8], strides = [1, 1]} : vector<8x32xf32> to vector<8x8xf32>
    %cst_67 = arith.constant dense<0.000000e+00> : vector<8x8xf32>
    %113 = tpu.matmul %98, %112, %cst_67 {dimension_numbers = #tpu.dot_dimension_numbers<[1], [0], [0], [1], [0, 0, 1, 1], [], []>} : vector<8x8xf32>, vector<8x8xf32>, vector<8x8xf32> -> vector<8x8xf32>
    %114 = arith.addf %111, %113 : vector<8x8xf32>
    %c2_68 = arith.constant 2 : index
    %c0_69 = arith.constant 0 : index
    %c0_70 = arith.constant 0 : index
    %115 = vector.load %arg7[%c2_68, %c0_69, %c0_70] : memref<4x8x8xf32, #tpu.memory_space<vmem>>, vector<1x8x8xf32>
    %116 = vector.shape_cast %115 : vector<1x8x8xf32> to vector<8x8xf32>
    %117 = vector.shape_cast %114 : vector<8x8xf32> to vector<1x8x8xf32>
    tpu.vector_store %arg7[%c2_68, %c0_69, %c0_70], %117 {strides = array<i32>} : memref<4x8x8xf32, #tpu.memory_space<vmem>>, vector<1x8x8xf32>,
    %c2_71 = arith.constant 2 : index
    %c0_72 = arith.constant 0 : index
    %c0_73 = arith.constant 0 : index
    %118 = vector.load %arg8[%c2_71, %c0_72, %c0_73] : memref<4x8x1xf32, #tpu.memory_space<vmem>>, vector<1x8x1xf32>
    %119 = vector.shape_cast %118 : vector<1x8x1xf32> to vector<8x1xf32>
    %120 = vector.shape_cast %93 : vector<8x1xf32> to vector<1x8x1xf32>
    tpu.vector_store %arg8[%c2_71, %c0_72, %c0_73], %120 {strides = array<i32>} : memref<4x8x1xf32, #tpu.memory_space<vmem>>, vector<1x8x1xf32>,
    %121 = vector.extract_strided_slice %6 {offsets = [0, 24], sizes = [8, 8], strides = [1, 1]} : vector<8x32xf32> to vector<8x8xf32>
    %122 = vector.extract_strided_slice %8 {offsets = [0, 24], sizes = [8, 8], strides = [1, 1]} : vector<8x32xf32> to vector<8x8xf32>
    %cst_74 = arith.constant dense<0.000000e+00> : vector<8x8xf32>
    %123 = tpu.matmul %121, %122, %cst_74 {dimension_numbers = #tpu.dot_dimension_numbers<[1], [1], [0], [0], [0, 0, 1, 0], [], []>} : vector<8x8xf32>, vector<8x8xf32>, vector<8x8xf32> -> vector<8x8xf32>
    %124 = arith.addf %123, %12 : vector<8x8xf32>
    %c3 = arith.constant 3 : index
    %c0_75 = arith.constant 0 : index
    %c0_76 = arith.constant 0 : index
    %125 = vector.load %arg8[%c3, %c0_75, %c0_76] : memref<4x8x1xf32, #tpu.memory_space<vmem>>, vector<1x8x1xf32>
    %126 = vector.shape_cast %125 : vector<1x8x1xf32> to vector<8x1xf32>
    %cst_77 = arith.constant dense<0xFF800000> : vector<8xf32>
    %127 = vector.multi_reduction <maximumf>, %124, %cst_77 [1] : vector<8x8xf32> to vector<8xf32>
    %128 = vector.shape_cast %127 : vector<8xf32> to vector<8x1xf32>
    %129 = arith.maximumf %126, %128 : vector<8x1xf32>
    %130 = arith.subf %126, %129 : vector<8x1xf32>
    %131 = math.exp %130 : vector<8x1xf32>
    %132 = vector.broadcast %129 : vector<8x1xf32> to vector<8x8xf32>
    %133 = arith.subf %124, %132 : vector<8x8xf32>
    %134 = math.exp %133 : vector<8x8xf32>
    %c3_78 = arith.constant 3 : index
    %c0_79 = arith.constant 0 : index
    %c0_80 = arith.constant 0 : index
    %135 = vector.load %arg9[%c3_78, %c0_79, %c0_80] : memref<4x8x1xf32, #tpu.memory_space<vmem>>, vector<1x8x1xf32>
    %136 = vector.shape_cast %135 : vector<1x8x1xf32> to vector<8x1xf32>
    %137 = arith.mulf %131, %136 : vector<8x1xf32>
    %cst_81 = arith.constant dense<0.000000e+00> : vector<8xf32>
    %138 = vector.multi_reduction <add>, %134, %cst_81 [1] : vector<8x8xf32> to vector<8xf32>
    %139 = vector.shape_cast %138 : vector<8xf32> to vector<8x1xf32>
    %140 = arith.addf %137, %139 : vector<8x1xf32>
    %c3_82 = arith.constant 3 : index
    %c0_83 = arith.constant 0 : index
    %c0_84 = arith.constant 0 : index
    %141 = vector.load %arg9[%c3_82, %c0_83, %c0_84] : memref<4x8x1xf32, #tpu.memory_space<vmem>>, vector<1x8x1xf32>
    %142 = vector.shape_cast %141 : vector<1x8x1xf32> to vector<8x1xf32>
    %143 = vector.shape_cast %140 : vector<8x1xf32> to vector<1x8x1xf32>
    tpu.vector_store %arg9[%c3_82, %c0_83, %c0_84], %143 {strides = array<i32>} : memref<4x8x1xf32, #tpu.memory_space<vmem>>, vector<1x8x1xf32>,
    %c3_85 = arith.constant 3 : index
    %c0_86 = arith.constant 0 : index
    %c0_87 = arith.constant 0 : index
    %144 = vector.load %arg7[%c3_85, %c0_86, %c0_87] : memref<4x8x8xf32, #tpu.memory_space<vmem>>, vector<1x8x8xf32>
    %145 = vector.shape_cast %144 : vector<1x8x8xf32> to vector<8x8xf32>
    %146 = vector.broadcast %131 : vector<8x1xf32> to vector<8x8xf32>
    %147 = arith.mulf %146, %145 : vector<8x8xf32>
    %148 = vector.extract_strided_slice %10 {offsets = [0, 24], sizes = [8, 8], strides = [1, 1]} : vector<8x32xf32> to vector<8x8xf32>
    %cst_88 = arith.constant dense<0.000000e+00> : vector<8x8xf32>
    %149 = tpu.matmul %134, %148, %cst_88 {dimension_numbers = #tpu.dot_dimension_numbers<[1], [0], [0], [1], [0, 0, 1, 1], [], []>} : vector<8x8xf32>, vector<8x8xf32>, vector<8x8xf32> -> vector<8x8xf32>
    %150 = arith.addf %147, %149 : vector<8x8xf32>
    %c3_89 = arith.constant 3 : index
    %c0_90 = arith.constant 0 : index
    %c0_91 = arith.constant 0 : index
    %151 = vector.load %arg7[%c3_89, %c0_90, %c0_91] : memref<4x8x8xf32, #tpu.memory_space<vmem>>, vector<1x8x8xf32>
    %152 = vector.shape_cast %151 : vector<1x8x8xf32> to vector<8x8xf32>
    %153 = vector.shape_cast %150 : vector<8x8xf32> to vector<1x8x8xf32>
    tpu.vector_store %arg7[%c3_89, %c0_90, %c0_91], %153 {strides = array<i32>} : memref<4x8x8xf32, #tpu.memory_space<vmem>>, vector<1x8x8xf32>,
    %c3_92 = arith.constant 3 : index
    %c0_93 = arith.constant 0 : index
    %c0_94 = arith.constant 0 : index
    %154 = vector.load %arg8[%c3_92, %c0_93, %c0_94] : memref<4x8x1xf32, #tpu.memory_space<vmem>>, vector<1x8x1xf32>
    %155 = vector.shape_cast %154 : vector<1x8x1xf32> to vector<8x1xf32>
    %156 = vector.shape_cast %129 : vector<8x1xf32> to vector<1x8x1xf32>
    tpu.vector_store %arg8[%c3_92, %c0_93, %c0_94], %156 {strides = array<i32>} : memref<4x8x1xf32, #tpu.memory_space<vmem>>, vector<1x8x1xf32>,
    %c0_i32_95 = arith.constant 0 : i32
    %157 = arith.cmpi eq, %arg2, %c0_i32_95 : i32
    %158 = arith.extui %157 : i1 to i32
    %c0_i32_96 = arith.constant 0 : i32
    %159 = arith.cmpi ne, %158, %c0_i32_96 : i32
    scf.if %159 {
      %c0_97 = arith.constant 0 : index
      %c0_98 = arith.constant 0 : index
      %c0_99 = arith.constant 0 : index
      %160 = vector.load %arg7[%c0_97, %c0_98, %c0_99] : memref<4x8x8xf32, #tpu.memory_space<vmem>>, vector<1x8x8xf32>
      %161 = vector.shape_cast %160 : vector<1x8x8xf32> to vector<8x8xf32>
      %c0_100 = arith.constant 0 : index
      %c0_101 = arith.constant 0 : index
      %c0_102 = arith.constant 0 : index
      %162 = vector.load %arg9[%c0_100, %c0_101, %c0_102] : memref<4x8x1xf32, #tpu.memory_space<vmem>>, vector<1x8x1xf32>
      %163 = vector.shape_cast %162 : vector<1x8x1xf32> to vector<8x1xf32>
      %164 = vector.broadcast %163 : vector<8x1xf32> to vector<8x8xf32>
      %165 = arith.divf %161, %164 : vector<8x8xf32>
      %c0_103 = arith.constant 0 : index
      %c0_104 = arith.constant 0 : index
      %c0_105 = arith.constant 0 : index
      %166 = vector.load %arg6[%c0_103, %c0_104, %c0_105] : memref<1x8x32xf32, #tpu.memory_space<vmem>>, vector<1x8x8xf32>
      %167 = vector.shape_cast %166 : vector<1x8x8xf32> to vector<8x8xf32>
      %168 = vector.shape_cast %165 : vector<8x8xf32> to vector<1x8x8xf32>
      tpu.vector_store %arg6[%c0_103, %c0_104, %c0_105], %168 {strides = array<i32>} : memref<1x8x32xf32, #tpu.memory_space<vmem>>, vector<1x8x8xf32>,
      %c1_106 = arith.constant 1 : index
      %c0_107 = arith.constant 0 : index
      %c0_108 = arith.constant 0 : index
      %169 = vector.load %arg7[%c1_106, %c0_107, %c0_108] : memref<4x8x8xf32, #tpu.memory_space<vmem>>, vector<1x8x8xf32>
      %170 = vector.shape_cast %169 : vector<1x8x8xf32> to vector<8x8xf32>
      %c1_109 = arith.constant 1 : index
      %c0_110 = arith.constant 0 : index
      %c0_111 = arith.constant 0 : index
      %171 = vector.load %arg9[%c1_109, %c0_110, %c0_111] : memref<4x8x1xf32, #tpu.memory_space<vmem>>, vector<1x8x1xf32>
      %172 = vector.shape_cast %171 : vector<1x8x1xf32> to vector<8x1xf32>
      %173 = vector.broadcast %172 : vector<8x1xf32> to vector<8x8xf32>
      %174 = arith.divf %170, %173 : vector<8x8xf32>
      %c0_112 = arith.constant 0 : index
      %c0_113 = arith.constant 0 : index
      %c8 = arith.constant 8 : index
      %175 = vector.load %arg6[%c0_112, %c0_113, %c8] : memref<1x8x32xf32, #tpu.memory_space<vmem>>, vector<1x8x8xf32>
      %176 = vector.shape_cast %175 : vector<1x8x8xf32> to vector<8x8xf32>
      %177 = vector.shape_cast %174 : vector<8x8xf32> to vector<1x8x8xf32>
      tpu.vector_store %arg6[%c0_112, %c0_113, %c8], %177 {strides = array<i32>} : memref<1x8x32xf32, #tpu.memory_space<vmem>>, vector<1x8x8xf32>,
      %c2_114 = arith.constant 2 : index
      %c0_115 = arith.constant 0 : index
      %c0_116 = arith.constant 0 : index
      %178 = vector.load %arg7[%c2_114, %c0_115, %c0_116] : memref<4x8x8xf32, #tpu.memory_space<vmem>>, vector<1x8x8xf32>
      %179 = vector.shape_cast %178 : vector<1x8x8xf32> to vector<8x8xf32>
      %c2_117 = arith.constant 2 : index
      %c0_118 = arith.constant 0 : index
      %c0_119 = arith.constant 0 : index
      %180 = vector.load %arg9[%c2_117, %c0_118, %c0_119] : memref<4x8x1xf32, #tpu.memory_space<vmem>>, vector<1x8x1xf32>
      %181 = vector.shape_cast %180 : vector<1x8x1xf32> to vector<8x1xf32>
      %182 = vector.broadcast %181 : vector<8x1xf32> to vector<8x8xf32>
      %183 = arith.divf %179, %182 : vector<8x8xf32>
      %c0_120 = arith.constant 0 : index
      %c0_121 = arith.constant 0 : index
      %c16 = arith.constant 16 : index
      %184 = vector.load %arg6[%c0_120, %c0_121, %c16] : memref<1x8x32xf32, #tpu.memory_space<vmem>>, vector<1x8x8xf32>
      %185 = vector.shape_cast %184 : vector<1x8x8xf32> to vector<8x8xf32>
      %186 = vector.shape_cast %183 : vector<8x8xf32> to vector<1x8x8xf32>
      tpu.vector_store %arg6[%c0_120, %c0_121, %c16], %186 {strides = array<i32>} : memref<1x8x32xf32, #tpu.memory_space<vmem>>, vector<1x8x8xf32>,
      %c3_122 = arith.constant 3 : index
      %c0_123 = arith.constant 0 : index
      %c0_124 = arith.constant 0 : index
      %187 = vector.load %arg7[%c3_122, %c0_123, %c0_124] : memref<4x8x8xf32, #tpu.memory_space<vmem>>, vector<1x8x8xf32>
      %188 = vector.shape_cast %187 : vector<1x8x8xf32> to vector<8x8xf32>
      %c3_125 = arith.constant 3 : index
      %c0_126 = arith.constant 0 : index
      %c0_127 = arith.constant 0 : index
      %189 = vector.load %arg9[%c3_125, %c0_126, %c0_127] : memref<4x8x1xf32, #tpu.memory_space<vmem>>, vector<1x8x1xf32>
      %190 = vector.shape_cast %189 : vector<1x8x1xf32> to vector<8x1xf32>
      %191 = vector.broadcast %190 : vector<8x1xf32> to vector<8x8xf32>
      %192 = arith.divf %188, %191 : vector<8x8xf32>
      %c0_128 = arith.constant 0 : index
      %c0_129 = arith.constant 0 : index
      %c24 = arith.constant 24 : index
      %193 = vector.load %arg6[%c0_128, %c0_129, %c24] : memref<1x8x32xf32, #tpu.memory_space<vmem>>, vector<1x8x8xf32>
      %194 = vector.shape_cast %193 : vector<1x8x8xf32> to vector<8x8xf32>
      %195 = vector.shape_cast %192 : vector<8x8xf32> to vector<1x8x8xf32>
      tpu.vector_store %arg6[%c0_128, %c0_129, %c24], %195 {strides = array<i32>} : memref<1x8x32xf32, #tpu.memory_space<vmem>>, vector<1x8x8xf32>,
    } else {
    }
    return
  }
  func.func @transform_0(%arg0: i32, %arg1: i32, %arg2: i32) -> (i32, i32, i32) {
    %c0_i32 = arith.constant 0 : i32
    %c0_i32_0 = arith.constant 0 : i32
    return %arg0, %arg1, %c0_i32 : i32, i32, i32
  }
  func.func @transform_1(%arg0: i32, %arg1: i32, %arg2: i32) -> (i32, i32, i32) {
    %c0_i32 = arith.constant 0 : i32
    %c0_i32_0 = arith.constant 0 : i32
    return %arg0, %arg2, %c0_i32 : i32, i32, i32
  }
  func.func @transform_2(%arg0: i32, %arg1: i32, %arg2: i32) -> (i32, i32, i32) {
    %c0_i32 = arith.constant 0 : i32
    %c0_i32_0 = arith.constant 0 : i32
    return %c0_i32, %arg1, %arg2 : i32, i32, i32
  }
  func.func @transform_3(%arg0: i32, %arg1: i32, %arg2: i32) -> (i32, i32, i32) {
    %c0_i32 = arith.constant 0 : i32
    %c0_i32_0 = arith.constant 0 : i32
    return %arg0, %arg1, %c0_i32 : i32, i32, i32
  }
}

module attributes {stable_mosaic.version = 11 : i64} {
  func.func @_ln_matmul_kernel(%arg0: i32, %arg1: i32, %arg2: memref<16x32xf32, #tpu.memory_space<vmem>>, %arg3: memref<1x32xf32, #tpu.memory_space<vmem>>, %arg4: memref<1x32xf32, #tpu.memory_space<vmem>>, %arg5: memref<32x32xf32, #tpu.memory_space<vmem>>, %arg6: memref<1x32xf32, #tpu.memory_space<vmem>>, %arg7: memref<16x32xf32, #tpu.memory_space<vmem>>, %arg8: memref<16x32xf32, #tpu.memory_space<vmem>>) attributes {dimension_semantics = [#tpu.dimension_semantics<parallel>, #tpu.dimension_semantics<arbitrary>], iteration_bounds = array<i64: 1, 1>, scalar_prefetch = 0 : i64, scratch_operands = 1 : i64, tpu.core_type = #tpu.core_type<tc>, window_params = [{transform_indices = @transform_0, window_bounds = array<i64: 16, 32>}, {pipeline_mode = #tpu.pipeline_mode<synchronous>, transform_indices = @transform_1, window_bounds = array<i64: 1, 32>}, {pipeline_mode = #tpu.pipeline_mode<synchronous>, transform_indices = @transform_2, window_bounds = array<i64: 1, 32>}, {transform_indices = @transform_3, window_bounds = array<i64: 32, 32>}, {transform_indices = @transform_4, window_bounds = array<i64: 1, 32>}, {transform_indices = @transform_5, window_bounds = array<i64: 16, 32>}]} {
    %c0_i32 = arith.constant 0 : i32
    %0 = arith.cmpi eq, %arg1, %c0_i32 : i32
    %1 = arith.extui %0 : i1 to i32
    %c0_i32_0 = arith.constant 0 : i32
    %2 = arith.cmpi ne, %1, %c0_i32_0 : i32
    scf.if %2 {
      %c0_8 = arith.constant 0 : index
      %c0_9 = arith.constant 0 : index
      %10 = vector.load %arg2[%c0_8, %c0_9] : memref<16x32xf32, #tpu.memory_space<vmem>>, vector<16x32xf32>
      %cst_10 = arith.constant dense<0.000000e+00> : vector<16xf32>
      %11 = vector.multi_reduction <add>, %10, %cst_10 [1] : vector<16x32xf32> to vector<16xf32>
      %12 = vector.shape_cast %11 : vector<16xf32> to vector<16x1xf32>
      %cst_11 = arith.constant 3.200000e+01 : f32
      %13 = vector.broadcast %cst_11 : f32 to vector<16x1xf32>
      %14 = arith.divf %12, %13 : vector<16x1xf32>
      %15 = vector.broadcast %14 : vector<16x1xf32> to vector<16x32xf32>
      %16 = arith.subf %10, %15 : vector<16x32xf32>
      %17 = arith.mulf %16, %16 : vector<16x32xf32>
      %cst_12 = arith.constant dense<0.000000e+00> : vector<16xf32>
      %18 = vector.multi_reduction <add>, %17, %cst_12 [1] : vector<16x32xf32> to vector<16xf32>
      %19 = vector.shape_cast %18 : vector<16xf32> to vector<16x1xf32>
      %cst_13 = arith.constant 3.200000e+01 : f32
      %20 = vector.broadcast %cst_13 : f32 to vector<16x1xf32>
      %21 = arith.divf %19, %20 : vector<16x1xf32>
      %22 = vector.broadcast %14 : vector<16x1xf32> to vector<16x32xf32>
      %23 = arith.subf %10, %22 : vector<16x32xf32>
      %cst_14 = arith.constant 9.99999974E-6 : f32
      %24 = vector.broadcast %cst_14 : f32 to vector<16x1xf32>
      %25 = arith.addf %21, %24 : vector<16x1xf32>
      %26 = math.rsqrt %25 : vector<16x1xf32>
      %27 = vector.broadcast %26 : vector<16x1xf32> to vector<16x32xf32>
      %28 = arith.mulf %23, %27 : vector<16x32xf32>
      %c0_15 = arith.constant 0 : index
      %c0_16 = arith.constant 0 : index
      %29 = vector.load %arg3[%c0_15, %c0_16] : memref<1x32xf32, #tpu.memory_space<vmem>>, vector<1x32xf32>
      %30 = vector.broadcast %29 : vector<1x32xf32> to vector<16x32xf32>
      %31 = arith.mulf %28, %30 : vector<16x32xf32>
      %c0_17 = arith.constant 0 : index
      %c0_18 = arith.constant 0 : index
      %32 = vector.load %arg4[%c0_17, %c0_18] : memref<1x32xf32, #tpu.memory_space<vmem>>, vector<1x32xf32>
      %33 = vector.broadcast %32 : vector<1x32xf32> to vector<16x32xf32>
      %34 = arith.addf %31, %33 : vector<16x32xf32>
      %c0_19 = arith.constant 0 : index
      %c0_20 = arith.constant 0 : index
      %35 = vector.load %arg8[%c0_19, %c0_20] : memref<16x32xf32, #tpu.memory_space<vmem>>, vector<16x32xf32>
      tpu.vector_store %arg8[%c0_19, %c0_20], %34 {strides = array<i32>} : memref<16x32xf32, #tpu.memory_space<vmem>>, vector<16x32xf32>,
    } else {
    }
    %c0 = arith.constant 0 : index
    %c0_1 = arith.constant 0 : index
    %3 = vector.load %arg8[%c0, %c0_1] : memref<16x32xf32, #tpu.memory_space<vmem>>, vector<16x32xf32>
    %c0_2 = arith.constant 0 : index
    %c0_3 = arith.constant 0 : index
    %4 = vector.load %arg5[%c0_2, %c0_3] : memref<32x32xf32, #tpu.memory_space<vmem>>, vector<32x32xf32>
    %cst = arith.constant dense<0.000000e+00> : vector<16x32xf32>
    %5 = tpu.matmul %3, %4, %cst {dimension_numbers = #tpu.dot_dimension_numbers<[1], [0], [0], [1], [0, 0, 1, 1], [], []>} : vector<16x32xf32>, vector<32x32xf32>, vector<16x32xf32> -> vector<16x32xf32>
    %c0_4 = arith.constant 0 : index
    %c0_5 = arith.constant 0 : index
    %6 = vector.load %arg6[%c0_4, %c0_5] : memref<1x32xf32, #tpu.memory_space<vmem>>, vector<1x32xf32>
    %7 = vector.broadcast %6 : vector<1x32xf32> to vector<16x32xf32>
    %8 = arith.addf %5, %7 : vector<16x32xf32>
    %c0_6 = arith.constant 0 : index
    %c0_7 = arith.constant 0 : index
    %9 = vector.load %arg7[%c0_6, %c0_7] : memref<16x32xf32, #tpu.memory_space<vmem>>, vector<16x32xf32>
    tpu.vector_store %arg7[%c0_6, %c0_7], %8 {strides = array<i32>} : memref<16x32xf32, #tpu.memory_space<vmem>>, vector<16x32xf32>,
    return
  }
  func.func @transform_0(%arg0: i32, %arg1: i32) -> (i32, i32) {
    %c0_i32 = arith.constant 0 : i32
    %c0_i32_0 = arith.constant 0 : i32
    return %arg0, %c0_i32 : i32, i32
  }
  func.func @transform_1(%arg0: i32, %arg1: i32) -> (i32, i32) {
    %c0_i32 = arith.constant 0 : i32
    %c0_i32_0 = arith.constant 0 : i32
    %c0_i32_1 = arith.constant 0 : i32
    return %c0_i32, %c0_i32_0 : i32, i32
  }
  func.func @transform_2(%arg0: i32, %arg1: i32) -> (i32, i32) {
    %c0_i32 = arith.constant 0 : i32
    %c0_i32_0 = arith.constant 0 : i32
    %c0_i32_1 = arith.constant 0 : i32
    return %c0_i32, %c0_i32_0 : i32, i32
  }
  func.func @transform_3(%arg0: i32, %arg1: i32) -> (i32, i32) {
    %c0_i32 = arith.constant 0 : i32
    %c0_i32_0 = arith.constant 0 : i32
    return %c0_i32, %arg1 : i32, i32
  }
  func.func @transform_4(%arg0: i32, %arg1: i32) -> (i32, i32) {
    %c0_i32 = arith.constant 0 : i32
    %c0_i32_0 = arith.constant 0 : i32
    return %c0_i32, %arg1 : i32, i32
  }
  func.func @transform_5(%arg0: i32, %arg1: i32) -> (i32, i32) {
    %c0_i32 = arith.constant 0 : i32
    return %arg0, %arg1 : i32, i32
  }
}

module attributes {stable_mosaic.version = 11 : i64} {
  func.func @_flash_mha_kernel(%arg0: i32, %arg1: i32, %arg2: i32, %arg3: memref<1x8x32xf32, #tpu.memory_space<vmem>>, %arg4: memref<1x8x64xf32, #tpu.memory_space<vmem>>, %arg5: memref<1x1x8xf32, #tpu.memory_space<vmem>>, %arg6: memref<1x8x32xf32, #tpu.memory_space<vmem>>, %arg7: memref<4x8x8xf32, #tpu.memory_space<vmem>>, %arg8: memref<4x8x1xf32, #tpu.memory_space<vmem>>, %arg9: memref<4x8x1xf32, #tpu.memory_space<vmem>>) attributes {dimension_semantics = [#tpu.dimension_semantics<parallel>, #tpu.dimension_semantics<parallel>, #tpu.dimension_semantics<arbitrary>], iteration_bounds = array<i64: 2, 1, 1>, scalar_prefetch = 0 : i64, scratch_operands = 3 : i64, tpu.core_type = #tpu.core_type<tc>, window_params = [{transform_indices = @transform_0, window_bounds = array<i64: 1, 8, 32>}, {transform_indices = @transform_1, window_bounds = array<i64: 1, 8, 64>}, {transform_indices = @transform_2, window_bounds = array<i64: 1, 1, 8>}, {transform_indices = @transform_3, window_bounds = array<i64: 1, 8, 32>}]} {
    %c0_i32 = arith.constant 0 : i32
    %0 = arith.cmpi eq, %arg2, %c0_i32 : i32
    %1 = arith.extui %0 : i1 to i32
    %c0_i32_0 = arith.constant 0 : i32
    %2 = arith.cmpi ne, %1, %c0_i32_0 : i32
    scf.if %2 {
      %cst_98 = arith.constant 0.000000e+00 : f32
      %164 = vector.broadcast %cst_98 : f32 to vector<4x8x8xf32>
      %c0_99 = arith.constant 0 : index
      %c0_100 = arith.constant 0 : index
      %c0_101 = arith.constant 0 : index
      %165 = vector.load %arg7[%c0_99, %c0_100, %c0_101] : memref<4x8x8xf32, #tpu.memory_space<vmem>>, vector<4x8x8xf32>
      tpu.vector_store %arg7[%c0_99, %c0_100, %c0_101], %164 {strides = array<i32>} : memref<4x8x8xf32, #tpu.memory_space<vmem>>, vector<4x8x8xf32>,
      %cst_102 = arith.constant -1.000000e+30 : f32
      %166 = vector.broadcast %cst_102 : f32 to vector<4x8x1xf32>
      %c0_103 = arith.constant 0 : index
      %c0_104 = arith.constant 0 : index
      %c0_105 = arith.constant 0 : index
      %167 = vector.load %arg8[%c0_103, %c0_104, %c0_105] : memref<4x8x1xf32, #tpu.memory_space<vmem>>, vector<4x8x1xf32>
      tpu.vector_store %arg8[%c0_103, %c0_104, %c0_105], %166 {strides = array<i32>} : memref<4x8x1xf32, #tpu.memory_space<vmem>>, vector<4x8x1xf32>,
      %cst_106 = arith.constant 0.000000e+00 : f32
      %168 = vector.broadcast %cst_106 : f32 to vector<4x8x1xf32>
      %c0_107 = arith.constant 0 : index
      %c0_108 = arith.constant 0 : index
      %c0_109 = arith.constant 0 : index
      %169 = vector.load %arg9[%c0_107, %c0_108, %c0_109] : memref<4x8x1xf32, #tpu.memory_space<vmem>>, vector<4x8x1xf32>
      tpu.vector_store %arg9[%c0_107, %c0_108, %c0_109], %168 {strides = array<i32>} : memref<4x8x1xf32, #tpu.memory_space<vmem>>, vector<4x8x1xf32>,
    } else {
    }
    %c0 = arith.constant 0 : index
    %c0_1 = arith.constant 0 : index
    %c0_2 = arith.constant 0 : index
    %3 = vector.load %arg3[%c0, %c0_1, %c0_2] : memref<1x8x32xf32, #tpu.memory_space<vmem>>, vector<1x8x32xf32>
    %4 = vector.shape_cast %3 : vector<1x8x32xf32> to vector<8x32xf32>
    %cst = arith.constant 0.353553385 : f32
    %5 = vector.broadcast %cst : f32 to vector<8x32xf32>
    %6 = arith.mulf %4, %5 : vector<8x32xf32>
    %c0_3 = arith.constant 0 : index
    %c0_4 = arith.constant 0 : index
    %c0_5 = arith.constant 0 : index
    %7 = vector.load %arg4[%c0_3, %c0_4, %c0_5] : memref<1x8x64xf32, #tpu.memory_space<vmem>>, vector<1x8x32xf32>
    %8 = vector.shape_cast %7 : vector<1x8x32xf32> to vector<8x32xf32>
    %c0_6 = arith.constant 0 : index
    %c0_7 = arith.constant 0 : index
    %c32 = arith.constant 32 : index
    %9 = vector.load %arg4[%c0_6, %c0_7, %c32] : memref<1x8x64xf32, #tpu.memory_space<vmem>>, vector<1x8x32xf32>
    %10 = vector.shape_cast %9 : vector<1x8x32xf32> to vector<8x32xf32>
    %c0_8 = arith.constant 0 : index
    %c0_9 = arith.constant 0 : index
    %c0_10 = arith.constant 0 : index
    %11 = vector.load %arg5[%c0_8, %c0_9, %c0_10] : memref<1x1x8xf32, #tpu.memory_space<vmem>>, vector<1x1x8xf32>
    %12 = vector.shape_cast %11 : vector<1x1x8xf32> to vector<1x8xf32>
    %13 = vector.extract_strided_slice %6 {offsets = [0, 0], sizes = [8, 8], strides = [1, 1]} : vector<8x32xf32> to vector<8x8xf32>
    %14 = vector.extract_strided_slice %8 {offsets = [0, 0], sizes = [8, 8], strides = [1, 1]} : vector<8x32xf32> to vector<8x8xf32>
    %cst_11 = arith.constant dense<0.000000e+00> : vector<8x8xf32>
    %15 = tpu.matmul %13, %14, %cst_11 {dimension_numbers = #tpu.dot_dimension_numbers<[1], [1], [0], [0], [0, 0, 1, 0], [], []>} : vector<8x8xf32>, vector<8x8xf32>, vector<8x8xf32> -> vector<8x8xf32>
    %16 = vector.broadcast %12 : vector<1x8xf32> to vector<8x8xf32>
    %17 = arith.addf %15, %16 : vector<8x8xf32>
    %c0_12 = arith.constant 0 : index
    %c0_13 = arith.constant 0 : index
    %c0_14 = arith.constant 0 : index
    %18 = vector.load %arg8[%c0_12, %c0_13, %c0_14] : memref<4x8x1xf32, #tpu.memory_space<vmem>>, vector<1x8x1xf32>
    %19 = vector.shape_cast %18 : vector<1x8x1xf32> to vector<8x1xf32>
    %cst_15 = arith.constant dense<0xFF800000> : vector<8xf32>
    %20 = vector.multi_reduction <maximumf>, %17, %cst_15 [1] : vector<8x8xf32> to vector<8xf32>
    %21 = vector.shape_cast %20 : vector<8xf32> to vector<8x1xf32>
    %22 = arith.maximumf %19, %21 : vector<8x1xf32>
    %23 = arith.subf %19, %22 : vector<8x1xf32>
    %24 = math.exp %23 : vector<8x1xf32>
    %25 = vector.broadcast %22 : vector<8x1xf32> to vector<8x8xf32>
    %26 = arith.subf %17, %25 : vector<8x8xf32>
    %27 = math.exp %26 : vector<8x8xf32>
    %c0_16 = arith.constant 0 : index
    %c0_17 = arith.constant 0 : index
    %c0_18 = arith.constant 0 : index
    %28 = vector.load %arg9[%c0_16, %c0_17, %c0_18] : memref<4x8x1xf32, #tpu.memory_space<vmem>>, vector<1x8x1xf32>
    %29 = vector.shape_cast %28 : vector<1x8x1xf32> to vector<8x1xf32>
    %30 = arith.mulf %24, %29 : vector<8x1xf32>
    %cst_19 = arith.constant dense<0.000000e+00> : vector<8xf32>
    %31 = vector.multi_reduction <add>, %27, %cst_19 [1] : vector<8x8xf32> to vector<8xf32>
    %32 = vector.shape_cast %31 : vector<8xf32> to vector<8x1xf32>
    %33 = arith.addf %30, %32 : vector<8x1xf32>
    %c0_20 = arith.constant 0 : index
    %c0_21 = arith.constant 0 : index
    %c0_22 = arith.constant 0 : index
    %34 = vector.load %arg9[%c0_20, %c0_21, %c0_22] : memref<4x8x1xf32, #tpu.memory_space<vmem>>, vector<1x8x1xf32>
    %35 = vector.shape_cast %34 : vector<1x8x1xf32> to vector<8x1xf32>
    %36 = vector.shape_cast %33 : vector<8x1xf32> to vector<1x8x1xf32>
    tpu.vector_store %arg9[%c0_20, %c0_21, %c0_22], %36 {strides = array<i32>} : memref<4x8x1xf32, #tpu.memory_space<vmem>>, vector<1x8x1xf32>,
    %c0_23 = arith.constant 0 : index
    %c0_24 = arith.constant 0 : index
    %c0_25 = arith.constant 0 : index
    %37 = vector.load %arg7[%c0_23, %c0_24, %c0_25] : memref<4x8x8xf32, #tpu.memory_space<vmem>>, vector<1x8x8xf32>
    %38 = vector.shape_cast %37 : vector<1x8x8xf32> to vector<8x8xf32>
    %39 = vector.broadcast %24 : vector<8x1xf32> to vector<8x8xf32>
    %40 = arith.mulf %39, %38 : vector<8x8xf32>
    %41 = vector.extract_strided_slice %10 {offsets = [0, 0], sizes = [8, 8], strides = [1, 1]} : vector<8x32xf32> to vector<8x8xf32>
    %cst_26 = arith.constant dense<0.000000e+00> : vector<8x8xf32>
    %42 = tpu.matmul %27, %41, %cst_26 {dimension_numbers = #tpu.dot_dimension_numbers<[1], [0], [0], [1], [0, 0, 1, 1], [], []>} : vector<8x8xf32>, vector<8x8xf32>, vector<8x8xf32> -> vector<8x8xf32>
    %43 = arith.addf %40, %42 : vector<8x8xf32>
    %c0_27 = arith.constant 0 : index
    %c0_28 = arith.constant 0 : index
    %c0_29 = arith.constant 0 : index
    %44 = vector.load %arg7[%c0_27, %c0_28, %c0_29] : memref<4x8x8xf32, #tpu.memory_space<vmem>>, vector<1x8x8xf32>
    %45 = vector.shape_cast %44 : vector<1x8x8xf32> to vector<8x8xf32>
    %46 = vector.shape_cast %43 : vector<8x8xf32> to vector<1x8x8xf32>
    tpu.vector_store %arg7[%c0_27, %c0_28, %c0_29], %46 {strides = array<i32>} : memref<4x8x8xf32, #tpu.memory_space<vmem>>, vector<1x8x8xf32>,
    %c0_30 = arith.constant 0 : index
    %c0_31 = arith.constant 0 : index
    %c0_32 = arith.constant 0 : index
    %47 = vector.load %arg8[%c0_30, %c0_31, %c0_32] : memref<4x8x1xf32, #tpu.memory_space<vmem>>, vector<1x8x1xf32>
    %48 = vector.shape_cast %47 : vector<1x8x1xf32> to vector<8x1xf32>
    %49 = vector.shape_cast %22 : vector<8x1xf32> to vector<1x8x1xf32>
    tpu.vector_store %arg8[%c0_30, %c0_31, %c0_32], %49 {strides = array<i32>} : memref<4x8x1xf32, #tpu.memory_space<vmem>>, vector<1x8x1xf32>,
    %50 = vector.extract_strided_slice %6 {offsets = [0, 8], sizes = [8, 8], strides = [1, 1]} : vector<8x32xf32> to vector<8x8xf32>
    %51 = vector.extract_strided_slice %8 {offsets = [0, 8], sizes = [8, 8], strides = [1, 1]} : vector<8x32xf32> to vector<8x8xf32>
    %cst_33 = arith.constant dense<0.000000e+00> : vector<8x8xf32>
    %52 = tpu.matmul %50, %51, %cst_33 {dimension_numbers = #tpu.dot_dimension_numbers<[1], [1], [0], [0], [0, 0, 1, 0], [], []>} : vector<8x8xf32>, vector<8x8xf32>, vector<8x8xf32> -> vector<8x8xf32>
    %53 = vector.broadcast %12 : vector<1x8xf32> to vector<8x8xf32>
    %54 = arith.addf %52, %53 : vector<8x8xf32>
    %c1 = arith.constant 1 : index
    %c0_34 = arith.constant 0 : index
    %c0_35 = arith.constant 0 : index
    %55 = vector.load %arg8[%c1, %c0_34, %c0_35] : memref<4x8x1xf32, #tpu.memory_space<vmem>>, vector<1x8x1xf32>
    %56 = vector.shape_cast %55 : vector<1x8x1xf32> to vector<8x1xf32>
    %cst_36 = arith.constant dense<0xFF800000> : vector<8xf32>
    %57 = vector.multi_reduction <maximumf>, %54, %cst_36 [1] : vector<8x8xf32> to vector<8xf32>
    %58 = vector.shape_cast %57 : vector<8xf32> to vector<8x1xf32>
    %59 = arith.maximumf %56, %58 : vector<8x1xf32>
    %60 = arith.subf %56, %59 : vector<8x1xf32>
    %61 = math.exp %60 : vector<8x1xf32>
    %62 = vector.broadcast %59 : vector<8x1xf32> to vector<8x8xf32>
    %63 = arith.subf %54, %62 : vector<8x8xf32>
    %64 = math.exp %63 : vector<8x8xf32>
    %c1_37 = arith.constant 1 : index
    %c0_38 = arith.constant 0 : index
    %c0_39 = arith.constant 0 : index
    %65 = vector.load %arg9[%c1_37, %c0_38, %c0_39] : memref<4x8x1xf32, #tpu.memory_space<vmem>>, vector<1x8x1xf32>
    %66 = vector.shape_cast %65 : vector<1x8x1xf32> to vector<8x1xf32>
    %67 = arith.mulf %61, %66 : vector<8x1xf32>
    %cst_40 = arith.constant dense<0.000000e+00> : vector<8xf32>
    %68 = vector.multi_reduction <add>, %64, %cst_40 [1] : vector<8x8xf32> to vector<8xf32>
    %69 = vector.shape_cast %68 : vector<8xf32> to vector<8x1xf32>
    %70 = arith.addf %67, %69 : vector<8x1xf32>
    %c1_41 = arith.constant 1 : index
    %c0_42 = arith.constant 0 : index
    %c0_43 = arith.constant 0 : index
    %71 = vector.load %arg9[%c1_41, %c0_42, %c0_43] : memref<4x8x1xf32, #tpu.memory_space<vmem>>, vector<1x8x1xf32>
    %72 = vector.shape_cast %71 : vector<1x8x1xf32> to vector<8x1xf32>
    %73 = vector.shape_cast %70 : vector<8x1xf32> to vector<1x8x1xf32>
    tpu.vector_store %arg9[%c1_41, %c0_42, %c0_43], %73 {strides = array<i32>} : memref<4x8x1xf32, #tpu.memory_space<vmem>>, vector<1x8x1xf32>,
    %c1_44 = arith.constant 1 : index
    %c0_45 = arith.constant 0 : index
    %c0_46 = arith.constant 0 : index
    %74 = vector.load %arg7[%c1_44, %c0_45, %c0_46] : memref<4x8x8xf32, #tpu.memory_space<vmem>>, vector<1x8x8xf32>
    %75 = vector.shape_cast %74 : vector<1x8x8xf32> to vector<8x8xf32>
    %76 = vector.broadcast %61 : vector<8x1xf32> to vector<8x8xf32>
    %77 = arith.mulf %76, %75 : vector<8x8xf32>
    %78 = vector.extract_strided_slice %10 {offsets = [0, 8], sizes = [8, 8], strides = [1, 1]} : vector<8x32xf32> to vector<8x8xf32>
    %cst_47 = arith.constant dense<0.000000e+00> : vector<8x8xf32>
    %79 = tpu.matmul %64, %78, %cst_47 {dimension_numbers = #tpu.dot_dimension_numbers<[1], [0], [0], [1], [0, 0, 1, 1], [], []>} : vector<8x8xf32>, vector<8x8xf32>, vector<8x8xf32> -> vector<8x8xf32>
    %80 = arith.addf %77, %79 : vector<8x8xf32>
    %c1_48 = arith.constant 1 : index
    %c0_49 = arith.constant 0 : index
    %c0_50 = arith.constant 0 : index
    %81 = vector.load %arg7[%c1_48, %c0_49, %c0_50] : memref<4x8x8xf32, #tpu.memory_space<vmem>>, vector<1x8x8xf32>
    %82 = vector.shape_cast %81 : vector<1x8x8xf32> to vector<8x8xf32>
    %83 = vector.shape_cast %80 : vector<8x8xf32> to vector<1x8x8xf32>
    tpu.vector_store %arg7[%c1_48, %c0_49, %c0_50], %83 {strides = array<i32>} : memref<4x8x8xf32, #tpu.memory_space<vmem>>, vector<1x8x8xf32>,
    %c1_51 = arith.constant 1 : index
    %c0_52 = arith.constant 0 : index
    %c0_53 = arith.constant 0 : index
    %84 = vector.load %arg8[%c1_51, %c0_52, %c0_53] : memref<4x8x1xf32, #tpu.memory_space<vmem>>, vector<1x8x1xf32>
    %85 = vector.shape_cast %84 : vector<1x8x1xf32> to vector<8x1xf32>
    %86 = vector.shape_cast %59 : vector<8x1xf32> to vector<1x8x1xf32>
    tpu.vector_store %arg8[%c1_51, %c0_52, %c0_53], %86 {strides = array<i32>} : memref<4x8x1xf32, #tpu.memory_space<vmem>>, vector<1x8x1xf32>,
    %87 = vector.extract_strided_slice %6 {offsets = [0, 16], sizes = [8, 8], strides = [1, 1]} : vector<8x32xf32> to vector<8x8xf32>
    %88 = vector.extract_strided_slice %8 {offsets = [0, 16], sizes = [8, 8], strides = [1, 1]} : vector<8x32xf32> to vector<8x8xf32>
    %cst_54 = arith.constant dense<0.000000e+00> : vector<8x8xf32>
    %89 = tpu.matmul %87, %88, %cst_54 {dimension_numbers = #tpu.dot_dimension_numbers<[1], [1], [0], [0], [0, 0, 1, 0], [], []>} : vector<8x8xf32>, vector<8x8xf32>, vector<8x8xf32> -> vector<8x8xf32>
    %90 = vector.broadcast %12 : vector<1x8xf32> to vector<8x8xf32>
    %91 = arith.addf %89, %90 : vector<8x8xf32>
    %c2 = arith.constant 2 : index
    %c0_55 = arith.constant 0 : index
    %c0_56 = arith.constant 0 : index
    %92 = vector.load %arg8[%c2, %c0_55, %c0_56] : memref<4x8x1xf32, #tpu.memory_space<vmem>>, vector<1x8x1xf32>
    %93 = vector.shape_cast %92 : vector<1x8x1xf32> to vector<8x1xf32>
    %cst_57 = arith.constant dense<0xFF800000> : vector<8xf32>
    %94 = vector.multi_reduction <maximumf>, %91, %cst_57 [1] : vector<8x8xf32> to vector<8xf32>
    %95 = vector.shape_cast %94 : vector<8xf32> to vector<8x1xf32>
    %96 = arith.maximumf %93, %95 : vector<8x1xf32>
    %97 = arith.subf %93, %96 : vector<8x1xf32>
    %98 = math.exp %97 : vector<8x1xf32>
    %99 = vector.broadcast %96 : vector<8x1xf32> to vector<8x8xf32>
    %100 = arith.subf %91, %99 : vector<8x8xf32>
    %101 = math.exp %100 : vector<8x8xf32>
    %c2_58 = arith.constant 2 : index
    %c0_59 = arith.constant 0 : index
    %c0_60 = arith.constant 0 : index
    %102 = vector.load %arg9[%c2_58, %c0_59, %c0_60] : memref<4x8x1xf32, #tpu.memory_space<vmem>>, vector<1x8x1xf32>
    %103 = vector.shape_cast %102 : vector<1x8x1xf32> to vector<8x1xf32>
    %104 = arith.mulf %98, %103 : vector<8x1xf32>
    %cst_61 = arith.constant dense<0.000000e+00> : vector<8xf32>
    %105 = vector.multi_reduction <add>, %101, %cst_61 [1] : vector<8x8xf32> to vector<8xf32>
    %106 = vector.shape_cast %105 : vector<8xf32> to vector<8x1xf32>
    %107 = arith.addf %104, %106 : vector<8x1xf32>
    %c2_62 = arith.constant 2 : index
    %c0_63 = arith.constant 0 : index
    %c0_64 = arith.constant 0 : index
    %108 = vector.load %arg9[%c2_62, %c0_63, %c0_64] : memref<4x8x1xf32, #tpu.memory_space<vmem>>, vector<1x8x1xf32>
    %109 = vector.shape_cast %108 : vector<1x8x1xf32> to vector<8x1xf32>
    %110 = vector.shape_cast %107 : vector<8x1xf32> to vector<1x8x1xf32>
    tpu.vector_store %arg9[%c2_62, %c0_63, %c0_64], %110 {strides = array<i32>} : memref<4x8x1xf32, #tpu.memory_space<vmem>>, vector<1x8x1xf32>,
    %c2_65 = arith.constant 2 : index
    %c0_66 = arith.constant 0 : index
    %c0_67 = arith.constant 0 : index
    %111 = vector.load %arg7[%c2_65, %c0_66, %c0_67] : memref<4x8x8xf32, #tpu.memory_space<vmem>>, vector<1x8x8xf32>
    %112 = vector.shape_cast %111 : vector<1x8x8xf32> to vector<8x8xf32>
    %113 = vector.broadcast %98 : vector<8x1xf32> to vector<8x8xf32>
    %114 = arith.mulf %113, %112 : vector<8x8xf32>
    %115 = vector.extract_strided_slice %10 {offsets = [0, 16], sizes = [8, 8], strides = [1, 1]} : vector<8x32xf32> to vector<8x8xf32>
    %cst_68 = arith.constant dense<0.000000e+00> : vector<8x8xf32>
    %116 = tpu.matmul %101, %115, %cst_68 {dimension_numbers = #tpu.dot_dimension_numbers<[1], [0], [0], [1], [0, 0, 1, 1], [], []>} : vector<8x8xf32>, vector<8x8xf32>, vector<8x8xf32> -> vector<8x8xf32>
    %117 = arith.addf %114, %116 : vector<8x8xf32>
    %c2_69 = arith.constant 2 : index
    %c0_70 = arith.constant 0 : index
    %c0_71 = arith.constant 0 : index
    %118 = vector.load %arg7[%c2_69, %c0_70, %c0_71] : memref<4x8x8xf32, #tpu.memory_space<vmem>>, vector<1x8x8xf32>
    %119 = vector.shape_cast %118 : vector<1x8x8xf32> to vector<8x8xf32>
    %120 = vector.shape_cast %117 : vector<8x8xf32> to vector<1x8x8xf32>
    tpu.vector_store %arg7[%c2_69, %c0_70, %c0_71], %120 {strides = array<i32>} : memref<4x8x8xf32, #tpu.memory_space<vmem>>, vector<1x8x8xf32>,
    %c2_72 = arith.constant 2 : index
    %c0_73 = arith.constant 0 : index
    %c0_74 = arith.constant 0 : index
    %121 = vector.load %arg8[%c2_72, %c0_73, %c0_74] : memref<4x8x1xf32, #tpu.memory_space<vmem>>, vector<1x8x1xf32>
    %122 = vector.shape_cast %121 : vector<1x8x1xf32> to vector<8x1xf32>
    %123 = vector.shape_cast %96 : vector<8x1xf32> to vector<1x8x1xf32>
    tpu.vector_store %arg8[%c2_72, %c0_73, %c0_74], %123 {strides = array<i32>} : memref<4x8x1xf32, #tpu.memory_space<vmem>>, vector<1x8x1xf32>,
    %124 = vector.extract_strided_slice %6 {offsets = [0, 24], sizes = [8, 8], strides = [1, 1]} : vector<8x32xf32> to vector<8x8xf32>
    %125 = vector.extract_strided_slice %8 {offsets = [0, 24], sizes = [8, 8], strides = [1, 1]} : vector<8x32xf32> to vector<8x8xf32>
    %cst_75 = arith.constant dense<0.000000e+00> : vector<8x8xf32>
    %126 = tpu.matmul %124, %125, %cst_75 {dimension_numbers = #tpu.dot_dimension_numbers<[1], [1], [0], [0], [0, 0, 1, 0], [], []>} : vector<8x8xf32>, vector<8x8xf32>, vector<8x8xf32> -> vector<8x8xf32>
    %127 = vector.broadcast %12 : vector<1x8xf32> to vector<8x8xf32>
    %128 = arith.addf %126, %127 : vector<8x8xf32>
    %c3 = arith.constant 3 : index
    %c0_76 = arith.constant 0 : index
    %c0_77 = arith.constant 0 : index
    %129 = vector.load %arg8[%c3, %c0_76, %c0_77] : memref<4x8x1xf32, #tpu.memory_space<vmem>>, vector<1x8x1xf32>
    %130 = vector.shape_cast %129 : vector<1x8x1xf32> to vector<8x1xf32>
    %cst_78 = arith.constant dense<0xFF800000> : vector<8xf32>
    %131 = vector.multi_reduction <maximumf>, %128, %cst_78 [1] : vector<8x8xf32> to vector<8xf32>
    %132 = vector.shape_cast %131 : vector<8xf32> to vector<8x1xf32>
    %133 = arith.maximumf %130, %132 : vector<8x1xf32>
    %134 = arith.subf %130, %133 : vector<8x1xf32>
    %135 = math.exp %134 : vector<8x1xf32>
    %136 = vector.broadcast %133 : vector<8x1xf32> to vector<8x8xf32>
    %137 = arith.subf %128, %136 : vector<8x8xf32>
    %138 = math.exp %137 : vector<8x8xf32>
    %c3_79 = arith.constant 3 : index
    %c0_80 = arith.constant 0 : index
    %c0_81 = arith.constant 0 : index
    %139 = vector.load %arg9[%c3_79, %c0_80, %c0_81] : memref<4x8x1xf32, #tpu.memory_space<vmem>>, vector<1x8x1xf32>
    %140 = vector.shape_cast %139 : vector<1x8x1xf32> to vector<8x1xf32>
    %141 = arith.mulf %135, %140 : vector<8x1xf32>
    %cst_82 = arith.constant dense<0.000000e+00> : vector<8xf32>
    %142 = vector.multi_reduction <add>, %138, %cst_82 [1] : vector<8x8xf32> to vector<8xf32>
    %143 = vector.shape_cast %142 : vector<8xf32> to vector<8x1xf32>
    %144 = arith.addf %141, %143 : vector<8x1xf32>
    %c3_83 = arith.constant 3 : index
    %c0_84 = arith.constant 0 : index
    %c0_85 = arith.constant 0 : index
    %145 = vector.load %arg9[%c3_83, %c0_84, %c0_85] : memref<4x8x1xf32, #tpu.memory_space<vmem>>, vector<1x8x1xf32>
    %146 = vector.shape_cast %145 : vector<1x8x1xf32> to vector<8x1xf32>
    %147 = vector.shape_cast %144 : vector<8x1xf32> to vector<1x8x1xf32>
    tpu.vector_store %arg9[%c3_83, %c0_84, %c0_85], %147 {strides = array<i32>} : memref<4x8x1xf32, #tpu.memory_space<vmem>>, vector<1x8x1xf32>,
    %c3_86 = arith.constant 3 : index
    %c0_87 = arith.constant 0 : index
    %c0_88 = arith.constant 0 : index
    %148 = vector.load %arg7[%c3_86, %c0_87, %c0_88] : memref<4x8x8xf32, #tpu.memory_space<vmem>>, vector<1x8x8xf32>
    %149 = vector.shape_cast %148 : vector<1x8x8xf32> to vector<8x8xf32>
    %150 = vector.broadcast %135 : vector<8x1xf32> to vector<8x8xf32>
    %151 = arith.mulf %150, %149 : vector<8x8xf32>
    %152 = vector.extract_strided_slice %10 {offsets = [0, 24], sizes = [8, 8], strides = [1, 1]} : vector<8x32xf32> to vector<8x8xf32>
    %cst_89 = arith.constant dense<0.000000e+00> : vector<8x8xf32>
    %153 = tpu.matmul %138, %152, %cst_89 {dimension_numbers = #tpu.dot_dimension_numbers<[1], [0], [0], [1], [0, 0, 1, 1], [], []>} : vector<8x8xf32>, vector<8x8xf32>, vector<8x8xf32> -> vector<8x8xf32>
    %154 = arith.addf %151, %153 : vector<8x8xf32>
    %c3_90 = arith.constant 3 : index
    %c0_91 = arith.constant 0 : index
    %c0_92 = arith.constant 0 : index
    %155 = vector.load %arg7[%c3_90, %c0_91, %c0_92] : memref<4x8x8xf32, #tpu.memory_space<vmem>>, vector<1x8x8xf32>
    %156 = vector.shape_cast %155 : vector<1x8x8xf32> to vector<8x8xf32>
    %157 = vector.shape_cast %154 : vector<8x8xf32> to vector<1x8x8xf32>
    tpu.vector_store %arg7[%c3_90, %c0_91, %c0_92], %157 {strides = array<i32>} : memref<4x8x8xf32, #tpu.memory_space<vmem>>, vector<1x8x8xf32>,
    %c3_93 = arith.constant 3 : index
    %c0_94 = arith.constant 0 : index
    %c0_95 = arith.constant 0 : index
    %158 = vector.load %arg8[%c3_93, %c0_94, %c0_95] : memref<4x8x1xf32, #tpu.memory_space<vmem>>, vector<1x8x1xf32>
    %159 = vector.shape_cast %158 : vector<1x8x1xf32> to vector<8x1xf32>
    %160 = vector.shape_cast %133 : vector<8x1xf32> to vector<1x8x1xf32>
    tpu.vector_store %arg8[%c3_93, %c0_94, %c0_95], %160 {strides = array<i32>} : memref<4x8x1xf32, #tpu.memory_space<vmem>>, vector<1x8x1xf32>,
    %c0_i32_96 = arith.constant 0 : i32
    %161 = arith.cmpi eq, %arg2, %c0_i32_96 : i32
    %162 = arith.extui %161 : i1 to i32
    %c0_i32_97 = arith.constant 0 : i32
    %163 = arith.cmpi ne, %162, %c0_i32_97 : i32
    scf.if %163 {
      %c0_98 = arith.constant 0 : index
      %c0_99 = arith.constant 0 : index
      %c0_100 = arith.constant 0 : index
      %164 = vector.load %arg7[%c0_98, %c0_99, %c0_100] : memref<4x8x8xf32, #tpu.memory_space<vmem>>, vector<1x8x8xf32>
      %165 = vector.shape_cast %164 : vector<1x8x8xf32> to vector<8x8xf32>
      %c0_101 = arith.constant 0 : index
      %c0_102 = arith.constant 0 : index
      %c0_103 = arith.constant 0 : index
      %166 = vector.load %arg9[%c0_101, %c0_102, %c0_103] : memref<4x8x1xf32, #tpu.memory_space<vmem>>, vector<1x8x1xf32>
      %167 = vector.shape_cast %166 : vector<1x8x1xf32> to vector<8x1xf32>
      %168 = vector.broadcast %167 : vector<8x1xf32> to vector<8x8xf32>
      %169 = arith.divf %165, %168 : vector<8x8xf32>
      %c0_104 = arith.constant 0 : index
      %c0_105 = arith.constant 0 : index
      %c0_106 = arith.constant 0 : index
      %170 = vector.load %arg6[%c0_104, %c0_105, %c0_106] : memref<1x8x32xf32, #tpu.memory_space<vmem>>, vector<1x8x8xf32>
      %171 = vector.shape_cast %170 : vector<1x8x8xf32> to vector<8x8xf32>
      %172 = vector.shape_cast %169 : vector<8x8xf32> to vector<1x8x8xf32>
      tpu.vector_store %arg6[%c0_104, %c0_105, %c0_106], %172 {strides = array<i32>} : memref<1x8x32xf32, #tpu.memory_space<vmem>>, vector<1x8x8xf32>,
      %c1_107 = arith.constant 1 : index
      %c0_108 = arith.constant 0 : index
      %c0_109 = arith.constant 0 : index
      %173 = vector.load %arg7[%c1_107, %c0_108, %c0_109] : memref<4x8x8xf32, #tpu.memory_space<vmem>>, vector<1x8x8xf32>
      %174 = vector.shape_cast %173 : vector<1x8x8xf32> to vector<8x8xf32>
      %c1_110 = arith.constant 1 : index
      %c0_111 = arith.constant 0 : index
      %c0_112 = arith.constant 0 : index
      %175 = vector.load %arg9[%c1_110, %c0_111, %c0_112] : memref<4x8x1xf32, #tpu.memory_space<vmem>>, vector<1x8x1xf32>
      %176 = vector.shape_cast %175 : vector<1x8x1xf32> to vector<8x1xf32>
      %177 = vector.broadcast %176 : vector<8x1xf32> to vector<8x8xf32>
      %178 = arith.divf %174, %177 : vector<8x8xf32>
      %c0_113 = arith.constant 0 : index
      %c0_114 = arith.constant 0 : index
      %c8 = arith.constant 8 : index
      %179 = vector.load %arg6[%c0_113, %c0_114, %c8] : memref<1x8x32xf32, #tpu.memory_space<vmem>>, vector<1x8x8xf32>
      %180 = vector.shape_cast %179 : vector<1x8x8xf32> to vector<8x8xf32>
      %181 = vector.shape_cast %178 : vector<8x8xf32> to vector<1x8x8xf32>
      tpu.vector_store %arg6[%c0_113, %c0_114, %c8], %181 {strides = array<i32>} : memref<1x8x32xf32, #tpu.memory_space<vmem>>, vector<1x8x8xf32>,
      %c2_115 = arith.constant 2 : index
      %c0_116 = arith.constant 0 : index
      %c0_117 = arith.constant 0 : index
      %182 = vector.load %arg7[%c2_115, %c0_116, %c0_117] : memref<4x8x8xf32, #tpu.memory_space<vmem>>, vector<1x8x8xf32>
      %183 = vector.shape_cast %182 : vector<1x8x8xf32> to vector<8x8xf32>
      %c2_118 = arith.constant 2 : index
      %c0_119 = arith.constant 0 : index
      %c0_120 = arith.constant 0 : index
      %184 = vector.load %arg9[%c2_118, %c0_119, %c0_120] : memref<4x8x1xf32, #tpu.memory_space<vmem>>, vector<1x8x1xf32>
      %185 = vector.shape_cast %184 : vector<1x8x1xf32> to vector<8x1xf32>
      %186 = vector.broadcast %185 : vector<8x1xf32> to vector<8x8xf32>
      %187 = arith.divf %183, %186 : vector<8x8xf32>
      %c0_121 = arith.constant 0 : index
      %c0_122 = arith.constant 0 : index
      %c16 = arith.constant 16 : index
      %188 = vector.load %arg6[%c0_121, %c0_122, %c16] : memref<1x8x32xf32, #tpu.memory_space<vmem>>, vector<1x8x8xf32>
      %189 = vector.shape_cast %188 : vector<1x8x8xf32> to vector<8x8xf32>
      %190 = vector.shape_cast %187 : vector<8x8xf32> to vector<1x8x8xf32>
      tpu.vector_store %arg6[%c0_121, %c0_122, %c16], %190 {strides = array<i32>} : memref<1x8x32xf32, #tpu.memory_space<vmem>>, vector<1x8x8xf32>,
      %c3_123 = arith.constant 3 : index
      %c0_124 = arith.constant 0 : index
      %c0_125 = arith.constant 0 : index
      %191 = vector.load %arg7[%c3_123, %c0_124, %c0_125] : memref<4x8x8xf32, #tpu.memory_space<vmem>>, vector<1x8x8xf32>
      %192 = vector.shape_cast %191 : vector<1x8x8xf32> to vector<8x8xf32>
      %c3_126 = arith.constant 3 : index
      %c0_127 = arith.constant 0 : index
      %c0_128 = arith.constant 0 : index
      %193 = vector.load %arg9[%c3_126, %c0_127, %c0_128] : memref<4x8x1xf32, #tpu.memory_space<vmem>>, vector<1x8x1xf32>
      %194 = vector.shape_cast %193 : vector<1x8x1xf32> to vector<8x1xf32>
      %195 = vector.broadcast %194 : vector<8x1xf32> to vector<8x8xf32>
      %196 = arith.divf %192, %195 : vector<8x8xf32>
      %c0_129 = arith.constant 0 : index
      %c0_130 = arith.constant 0 : index
      %c24 = arith.constant 24 : index
      %197 = vector.load %arg6[%c0_129, %c0_130, %c24] : memref<1x8x32xf32, #tpu.memory_space<vmem>>, vector<1x8x8xf32>
      %198 = vector.shape_cast %197 : vector<1x8x8xf32> to vector<8x8xf32>
      %199 = vector.shape_cast %196 : vector<8x8xf32> to vector<1x8x8xf32>
      tpu.vector_store %arg6[%c0_129, %c0_130, %c24], %199 {strides = array<i32>} : memref<1x8x32xf32, #tpu.memory_space<vmem>>, vector<1x8x8xf32>,
    } else {
    }
    return
  }
  func.func @transform_0(%arg0: i32, %arg1: i32, %arg2: i32) -> (i32, i32, i32) {
    %c0_i32 = arith.constant 0 : i32
    %c0_i32_0 = arith.constant 0 : i32
    return %arg0, %arg1, %c0_i32 : i32, i32, i32
  }
  func.func @transform_1(%arg0: i32, %arg1: i32, %arg2: i32) -> (i32, i32, i32) {
    %c0_i32 = arith.constant 0 : i32
    %c0_i32_0 = arith.constant 0 : i32
    return %arg0, %arg2, %c0_i32 : i32, i32, i32
  }
  func.func @transform_2(%arg0: i32, %arg1: i32, %arg2: i32) -> (i32, i32, i32) {
    %c0_i32 = arith.constant 0 : i32
    %c0_i32_0 = arith.constant 0 : i32
    return %arg0, %c0_i32, %arg2 : i32, i32, i32
  }
  func.func @transform_3(%arg0: i32, %arg1: i32, %arg2: i32) -> (i32, i32, i32) {
    %c0_i32 = arith.constant 0 : i32
    %c0_i32_0 = arith.constant 0 : i32
    return %arg0, %arg1, %c0_i32 : i32, i32, i32
  }
}

module attributes {stable_mosaic.version = 11 : i64} {
  func.func @_ln_matmul_kernel(%arg0: i32, %arg1: i32, %arg2: memref<16x32xf32, #tpu.memory_space<vmem>>, %arg3: memref<1x32xf32, #tpu.memory_space<vmem>>, %arg4: memref<1x32xf32, #tpu.memory_space<vmem>>, %arg5: memref<32x128xf32, #tpu.memory_space<vmem>>, %arg6: memref<1x128xf32, #tpu.memory_space<vmem>>, %arg7: memref<16x128xf32, #tpu.memory_space<vmem>>, %arg8: memref<16x32xf32, #tpu.memory_space<vmem>>) attributes {dimension_semantics = [#tpu.dimension_semantics<parallel>, #tpu.dimension_semantics<arbitrary>], iteration_bounds = array<i64: 1, 1>, scalar_prefetch = 0 : i64, scratch_operands = 1 : i64, tpu.core_type = #tpu.core_type<tc>, window_params = [{transform_indices = @transform_0, window_bounds = array<i64: 16, 32>}, {pipeline_mode = #tpu.pipeline_mode<synchronous>, transform_indices = @transform_1, window_bounds = array<i64: 1, 32>}, {pipeline_mode = #tpu.pipeline_mode<synchronous>, transform_indices = @transform_2, window_bounds = array<i64: 1, 32>}, {transform_indices = @transform_3, window_bounds = array<i64: 32, 128>}, {transform_indices = @transform_4, window_bounds = array<i64: 1, 128>}, {transform_indices = @transform_5, window_bounds = array<i64: 16, 128>}]} {
    %c0_i32 = arith.constant 0 : i32
    %0 = arith.cmpi eq, %arg1, %c0_i32 : i32
    %1 = arith.extui %0 : i1 to i32
    %c0_i32_0 = arith.constant 0 : i32
    %2 = arith.cmpi ne, %1, %c0_i32_0 : i32
    scf.if %2 {
      %c0_8 = arith.constant 0 : index
      %c0_9 = arith.constant 0 : index
      %10 = vector.load %arg2[%c0_8, %c0_9] : memref<16x32xf32, #tpu.memory_space<vmem>>, vector<16x32xf32>
      %cst_10 = arith.constant dense<0.000000e+00> : vector<16xf32>
      %11 = vector.multi_reduction <add>, %10, %cst_10 [1] : vector<16x32xf32> to vector<16xf32>
      %12 = vector.shape_cast %11 : vector<16xf32> to vector<16x1xf32>
      %cst_11 = arith.constant 3.200000e+01 : f32
      %13 = vector.broadcast %cst_11 : f32 to vector<16x1xf32>
      %14 = arith.divf %12, %13 : vector<16x1xf32>
      %15 = vector.broadcast %14 : vector<16x1xf32> to vector<16x32xf32>
      %16 = arith.subf %10, %15 : vector<16x32xf32>
      %17 = arith.mulf %16, %16 : vector<16x32xf32>
      %cst_12 = arith.constant dense<0.000000e+00> : vector<16xf32>
      %18 = vector.multi_reduction <add>, %17, %cst_12 [1] : vector<16x32xf32> to vector<16xf32>
      %19 = vector.shape_cast %18 : vector<16xf32> to vector<16x1xf32>
      %cst_13 = arith.constant 3.200000e+01 : f32
      %20 = vector.broadcast %cst_13 : f32 to vector<16x1xf32>
      %21 = arith.divf %19, %20 : vector<16x1xf32>
      %22 = vector.broadcast %14 : vector<16x1xf32> to vector<16x32xf32>
      %23 = arith.subf %10, %22 : vector<16x32xf32>
      %cst_14 = arith.constant 9.99999974E-6 : f32
      %24 = vector.broadcast %cst_14 : f32 to vector<16x1xf32>
      %25 = arith.addf %21, %24 : vector<16x1xf32>
      %26 = math.rsqrt %25 : vector<16x1xf32>
      %27 = vector.broadcast %26 : vector<16x1xf32> to vector<16x32xf32>
      %28 = arith.mulf %23, %27 : vector<16x32xf32>
      %c0_15 = arith.constant 0 : index
      %c0_16 = arith.constant 0 : index
      %29 = vector.load %arg3[%c0_15, %c0_16] : memref<1x32xf32, #tpu.memory_space<vmem>>, vector<1x32xf32>
      %30 = vector.broadcast %29 : vector<1x32xf32> to vector<16x32xf32>
      %31 = arith.mulf %28, %30 : vector<16x32xf32>
      %c0_17 = arith.constant 0 : index
      %c0_18 = arith.constant 0 : index
      %32 = vector.load %arg4[%c0_17, %c0_18] : memref<1x32xf32, #tpu.memory_space<vmem>>, vector<1x32xf32>
      %33 = vector.broadcast %32 : vector<1x32xf32> to vector<16x32xf32>
      %34 = arith.addf %31, %33 : vector<16x32xf32>
      %c0_19 = arith.constant 0 : index
      %c0_20 = arith.constant 0 : index
      %35 = vector.load %arg8[%c0_19, %c0_20] : memref<16x32xf32, #tpu.memory_space<vmem>>, vector<16x32xf32>
      tpu.vector_store %arg8[%c0_19, %c0_20], %34 {strides = array<i32>} : memref<16x32xf32, #tpu.memory_space<vmem>>, vector<16x32xf32>,
    } else {
    }
    %c0 = arith.constant 0 : index
    %c0_1 = arith.constant 0 : index
    %3 = vector.load %arg8[%c0, %c0_1] : memref<16x32xf32, #tpu.memory_space<vmem>>, vector<16x32xf32>
    %c0_2 = arith.constant 0 : index
    %c0_3 = arith.constant 0 : index
    %4 = vector.load %arg5[%c0_2, %c0_3] : memref<32x128xf32, #tpu.memory_space<vmem>>, vector<32x128xf32>
    %cst = arith.constant dense<0.000000e+00> : vector<16x128xf32>
    %5 = tpu.matmul %3, %4, %cst {dimension_numbers = #tpu.dot_dimension_numbers<[1], [0], [0], [1], [0, 0, 1, 1], [], []>} : vector<16x32xf32>, vector<32x128xf32>, vector<16x128xf32> -> vector<16x128xf32>
    %c0_4 = arith.constant 0 : index
    %c0_5 = arith.constant 0 : index
    %6 = vector.load %arg6[%c0_4, %c0_5] : memref<1x128xf32, #tpu.memory_space<vmem>>, vector<1x128xf32>
    %7 = vector.broadcast %6 : vector<1x128xf32> to vector<16x128xf32>
    %8 = arith.addf %5, %7 : vector<16x128xf32>
    %c0_6 = arith.constant 0 : index
    %c0_7 = arith.constant 0 : index
    %9 = vector.load %arg7[%c0_6, %c0_7] : memref<16x128xf32, #tpu.memory_space<vmem>>, vector<16x128xf32>
    tpu.vector_store %arg7[%c0_6, %c0_7], %8 {strides = array<i32>} : memref<16x128xf32, #tpu.memory_space<vmem>>, vector<16x128xf32>,
    return
  }
  func.func @transform_0(%arg0: i32, %arg1: i32) -> (i32, i32) {
    %c0_i32 = arith.constant 0 : i32
    %c0_i32_0 = arith.constant 0 : i32
    return %arg0, %c0_i32 : i32, i32
  }
  func.func @transform_1(%arg0: i32, %arg1: i32) -> (i32, i32) {
    %c0_i32 = arith.constant 0 : i32
    %c0_i32_0 = arith.constant 0 : i32
    %c0_i32_1 = arith.constant 0 : i32
    return %c0_i32, %c0_i32_0 : i32, i32
  }
  func.func @transform_2(%arg0: i32, %arg1: i32) -> (i32, i32) {
    %c0_i32 = arith.constant 0 : i32
    %c0_i32_0 = arith.constant 0 : i32
    %c0_i32_1 = arith.constant 0 : i32
    return %c0_i32, %c0_i32_0 : i32, i32
  }
  func.func @transform_3(%arg0: i32, %arg1: i32) -> (i32, i32) {
    %c0_i32 = arith.constant 0 : i32
    %c0_i32_0 = arith.constant 0 : i32
    return %c0_i32, %arg1 : i32, i32
  }
  func.func @transform_4(%arg0: i32, %arg1: i32) -> (i32, i32) {
    %c0_i32 = arith.constant 0 : i32
    %c0_i32_0 = arith.constant 0 : i32
    return %c0_i32, %arg1 : i32, i32
  }
  func.func @transform_5(%arg0: i32, %arg1: i32) -> (i32, i32) {
    %c0_i32 = arith.constant 0 : i32
    return %arg0, %arg1 : i32, i32
  }
}

</mosaic_0001>

<bundles_post_ra>
// kernel: transformer_forward.32
= control target key start
LH: loop header
LB: loop body
LE: loop exit
PB: predicated region body
PF: predicated region fallthrough
CT: control target
= control target key end

     0   :  { %vm26_vm0 = vcmask 261120   ;;  %vm171_vm1 = vcmask 523264   ;;  %s283_s0 = inlined_call_operand.vmem [shape: f32[16,32], index: 0, kind: input, shape index: {}]   ;;  %s284_s3 = inlined_call_operand.vmem [shape: f32[32,64], index: 3, kind: input, shape index: {}]   ;;  %s285_s1 = inlined_call_operand.vmem [shape: f32[1,32], index: 1, kind: input, shape index: {}]   ;;  %s286_s2 = inlined_call_operand.vmem [shape: f32[1,32], index: 2, kind: input, shape index: {}]   ;;  %s287_s4 = inlined_call_operand.vmem [shape: f32[1,64], index: 4, kind: input, shape index: {}]   ;;  %s288_s5 = inlined_call_operand.vmem [shape: f32[16,64], index: 5, kind: output, shape index: {}]  }
   0x1   :  { %v24_v0 = vld [vmem:[%s283_s0] sm:$0xff]  ;;  %v25_v1 = vld [vmem:[%s283_s0 + $0x8] sm:$0xff]  ;;  %v78_v17 = vld [vmem:[%s284_s3 + $0x10] sm:$0xff] }
   0x2   :  { %v27_v2 = vsel %vm26_vm0, %v24_v0, 0.0  ;;  %v30_v3 = vsel %vm26_vm0, %v25_v1, 0.0  ;;  %v76_v14 = vld [vmem:[%s284_s3] sm:$0xff]  ;;  %v77_v15 = vld [vmem:[%s284_s3 + $0x8] sm:$0xff]  ;;  %v79_v18 = vld [vmem:[%s284_s3 + $0x18] sm:$0xff] }
   0x3   :  { %28 = vadd.xlane.f32.xlu0 %v27_v2  ;;  %v200_v16 = vpack.c.bf16 %v77_v15, %v76_v14  ;;  %v204_v19 = vpack.c.bf16 %v79_v18, %v78_v17  ;;  %v178_v27 = vld [vmem:[%s285_s1] ss:$0 sm:$0xff] }
   0x4   :  { %v179_v29 = vld [vmem:[%s286_s2] ss:$0 sm:$0xff] }
   0x5   :  { %201 = vmatprep.subr.bf16.mxu0 %v200_v16  ;;  %v180_v38 = vld [vmem:[%s287_s4] ss:$0 sm:$0xff] }
   0x6   :  { %203 = vmatpush3.bf16.msra.mxu0 %v200_v16 }
   0x7   :  { %31 = vadd.xlane.f32.xlu0 %v30_v3  ;;  %205 = vmatprep.subr.bf16.mxu0 %v204_v19 }
   0xa   :  { %207 = vmatpush3.bf16.msra.mxu0 %v204_v19 }
  0x90   :  { %v29_v4 = vpop.xlane.xlu0 %28 }
  0x91   :  { %v34_v5 = vmul.f32 0.03125, %v29_v4 }
  0x93   :  { %v36_v6 = vsub.f32 %v24_v0, %v34_v5 }
  0x94   :  { %v32_v7 = vpop.xlane.xlu0 %31 }
  0x95   :  { %v35_v8 = vmul.f32 0.03125, %v32_v7  ;;  %v38_v9 = vmul.f32 %v36_v6, %v36_v6 }
  0x97   :  { %v37_v10 = vsub.f32 %v25_v1, %v35_v8  ;;  %v40_v11 = vsel %vm26_vm0, %v38_v9, 0.0 }
  0x98   :  { %41 = vadd.xlane.f32.xlu1 %v40_v11 }
  0x99   :  { %v39_v12 = vmul.f32 %v37_v10, %v37_v10 }
  0x9b   :  { %v43_v13 = vsel %vm26_vm0, %v39_v12, 0.0 }
  0x9c   :  { %44 = vadd.xlane.f32.xlu1 %v43_v13 }
 0x125   :  { %v42_v20 = vpop.xlane.xlu1 %41 }
 0x126   :  { %v46_v21 = vmul.f32 0.03125, %v42_v20 }
 0x128   :  { %v48_v22 = vadd.f32 1e-05, %v46_v21 }
 0x129   :  { %v45_v23 = vpop.xlane.xlu1 %44 }
 0x12a   :  { %208 = vrsqrt.f32 %v48_v22  ;;  %v47_v24 = vmul.f32 0.03125, %v45_v23 }
 0x12c   :  { %v49_v25 = vadd.f32 1e-05, %v47_v24 }
 0x12e   :  { %210 = vrsqrt.f32 %v49_v25 }
 0x134   :  { %v209_v26 = vpop.eup %208 }
 0x135   :  { %v52_v28 = vmul.f32 %v209_v26, %v36_v6 }
 0x137   :  { %v61_v30 = vmul.f32 %v178_v27, %v52_v28 }
 0x138   :  { %v211_v31 = vpop.eup %210 }
 0x139   :  { %v70_v32 = vadd.f32 %v179_v29, %v61_v30  ;;  %v53_v33 = vmul.f32 %v211_v31, %v37_v10 }
 0x13b   :  { %72 = vst.msk [vmem:[#allocation2] sm:$0xff] %vm26_vm0, %v70_v32  ;;  %v62_v34 = vmul.f32 %v178_v27, %v53_v33 }
 0x13d   :  { %v71_v35 = vadd.f32 %v179_v29, %v62_v34 }
 0x13f   :  { %73 = vst.msk [vmem:[#allocation2 + $0x8] sm:$0xff] %vm26_vm0, %v71_v35 }
 0x142   :  { %v74_v36 = vld [vmem:[#allocation2] sm:$0xff] }
 0x143   :  { %197 = vmatprep.mubr.msk.f32.mxu0 %vm26_vm0, %v74_v36 }
 0x146   :  { %v75_v37 = vld [vmem:[#allocation2 + $0x8] sm:$0xff] }
 0x147   :  { %198 = vmatmul.mubr.msk.f32.vlgmr.msra.gmra.mrb[0].mxu0 %vm26_vm0, %v75_v37 }
 0x21a   :  { %v199_v39 = vpop.f32.mrb[0].mxu0 }
 0x21b   :  { %v166_v40 = vadd.f32 %v199_v39, %v180_v38  ;;  %v160_v41 = vpop.f32.mrb[1].mxu0 }
 0x21c   :  { %v161_v42 = vadd.f32 %v180_v38, %v160_v41 }
 0x21d   :  { %v170_v43 = vmax.f32 %v166_v40, 0.0 }
 0x21e   :  { %v169_v44 = vmax.f32 %v161_v42, 0.0 }
 0x21f   :  { %173 = vst.msk [vmem:[%s288_s5 + $0x8] sm:$0xff] %vm171_vm1, %v170_v43 }
 0x220   :  { %172 = vst.msk [vmem:[%s288_s5] sm:$0xff] %vm171_vm1, %v169_v44 }

// kernel: transformer_forward.29
= control target key start
LH: loop header
LB: loop body
LE: loop exit
PB: predicated region body
PF: predicated region fallthrough
CT: control target
= control target key end

     0   :  { %vm26_vm0 = vcmask 261120   ;;  %vm169_vm1 = vcmask 785408   ;;  %s281_s0 = inlined_call_operand.vmem [shape: f32[16,32], index: 0, kind: input, shape index: {}]   ;;  %s282_s3 = inlined_call_operand.vmem [shape: f32[32,96], index: 3, kind: input, shape index: {}]   ;;  %s283_s1 = inlined_call_operand.vmem [shape: f32[1,32], index: 1, kind: input, shape index: {}]   ;;  %s284_s2 = inlined_call_operand.vmem [shape: f32[1,32], index: 2, kind: input, shape index: {}]   ;;  %s285_s4 = inlined_call_operand.vmem [shape: f32[1,96], index: 4, kind: input, shape index: {}]   ;;  %s286_s5 = inlined_call_operand.vmem [shape: f32[16,96], index: 5, kind: output, shape index: {}]  }
   0x1   :  { %v24_v0 = vld [vmem:[%s281_s0] sm:$0xff]  ;;  %v25_v1 = vld [vmem:[%s281_s0 + $0x8] sm:$0xff]  ;;  %v78_v17 = vld [vmem:[%s282_s3 + $0x10] sm:$0xff] }
   0x2   :  { %v27_v2 = vsel %vm26_vm0, %v24_v0, 0.0  ;;  %v30_v3 = vsel %vm26_vm0, %v25_v1, 0.0  ;;  %v76_v14 = vld [vmem:[%s282_s3] sm:$0xff]  ;;  %v77_v15 = vld [vmem:[%s282_s3 + $0x8] sm:$0xff]  ;;  %v79_v18 = vld [vmem:[%s282_s3 + $0x18] sm:$0xff] }
   0x3   :  { %28 = vadd.xlane.f32.xlu0 %v27_v2  ;;  %v198_v16 = vpack.c.bf16 %v77_v15, %v76_v14  ;;  %v202_v19 = vpack.c.bf16 %v79_v18, %v78_v17  ;;  %v176_v27 = vld [vmem:[%s283_s1] ss:$0 sm:$0xff] }
   0x4   :  { %v177_v29 = vld [vmem:[%s284_s2] ss:$0 sm:$0xff] }
   0x5   :  { %199 = vmatprep.subr.bf16.mxu0 %v198_v16  ;;  %v178_v38 = vld [vmem:[%s285_s4] ss:$0 sm:$0xff] }
   0x6   :  { %201 = vmatpush3.bf16.msra.mxu0 %v198_v16 }
   0x7   :  { %31 = vadd.xlane.f32.xlu0 %v30_v3  ;;  %203 = vmatprep.subr.bf16.mxu0 %v202_v19 }
   0xa   :  { %205 = vmatpush3.bf16.msra.mxu0 %v202_v19 }
  0x90   :  { %v29_v4 = vpop.xlane.xlu0 %28 }
  0x91   :  { %v34_v5 = vmul.f32 0.03125, %v29_v4 }
  0x93   :  { %v36_v6 = vsub.f32 %v24_v0, %v34_v5 }
  0x94   :  { %v32_v7 = vpop.xlane.xlu0 %31 }
  0x95   :  { %v35_v8 = vmul.f32 0.03125, %v32_v7  ;;  %v38_v9 = vmul.f32 %v36_v6, %v36_v6 }
  0x97   :  { %v37_v10 = vsub.f32 %v25_v1, %v35_v8  ;;  %v40_v11 = vsel %vm26_vm0, %v38_v9, 0.0 }
  0x98   :  { %41 = vadd.xlane.f32.xlu1 %v40_v11 }
  0x99   :  { %v39_v12 = vmul.f32 %v37_v10, %v37_v10 }
  0x9b   :  { %v43_v13 = vsel %vm26_vm0, %v39_v12, 0.0 }
  0x9c   :  { %44 = vadd.xlane.f32.xlu1 %v43_v13 }
 0x125   :  { %v42_v20 = vpop.xlane.xlu1 %41 }
 0x126   :  { %v46_v21 = vmul.f32 0.03125, %v42_v20 }
 0x128   :  { %v48_v22 = vadd.f32 1e-05, %v46_v21 }
 0x129   :  { %v45_v23 = vpop.xlane.xlu1 %44 }
 0x12a   :  { %206 = vrsqrt.f32 %v48_v22  ;;  %v47_v24 = vmul.f32 0.03125, %v45_v23 }
 0x12c   :  { %v49_v25 = vadd.f32 1e-05, %v47_v24 }
 0x12e   :  { %208 = vrsqrt.f32 %v49_v25 }
 0x134   :  { %v207_v26 = vpop.eup %206 }
 0x135   :  { %v52_v28 = vmul.f32 %v207_v26, %v36_v6 }
 0x137   :  { %v61_v30 = vmul.f32 %v176_v27, %v52_v28 }
 0x138   :  { %v209_v31 = vpop.eup %208 }
 0x139   :  { %v70_v32 = vadd.f32 %v177_v29, %v61_v30  ;;  %v53_v33 = vmul.f32 %v209_v31, %v37_v10 }
 0x13b   :  { %72 = vst.msk [vmem:[#allocation2] sm:$0xff] %vm26_vm0, %v70_v32  ;;  %v62_v34 = vmul.f32 %v176_v27, %v53_v33 }
 0x13d   :  { %v71_v35 = vadd.f32 %v177_v29, %v62_v34 }
 0x13f   :  { %73 = vst.msk [vmem:[#allocation2 + $0x8] sm:$0xff] %vm26_vm0, %v71_v35 }
 0x142   :  { %v74_v36 = vld [vmem:[#allocation2] sm:$0xff] }
 0x143   :  { %195 = vmatprep.mubr.msk.f32.mxu0 %vm26_vm0, %v74_v36 }
 0x146   :  { %v75_v37 = vld [vmem:[#allocation2 + $0x8] sm:$0xff] }
 0x147   :  { %196 = vmatmul.mubr.msk.f32.vlgmr.msra.gmra.mrb[0].mxu0 %vm26_vm0, %v75_v37 }
 0x21a   :  { %v197_v39 = vpop.f32.mrb[0].mxu0 }
 0x21b   :  { %v166_v40 = vadd.f32 %v197_v39, %v178_v38  ;;  %v160_v41 = vpop.f32.mrb[1].mxu0 }
 0x21c   :  { %v161_v42 = vadd.f32 %v178_v38, %v160_v41 }
 0x21d   :  { %171 = vst.msk [vmem:[%s286_s5 + $0x8] sm:$0xff] %vm169_vm1, %v166_v40 }
 0x21e   :  { %170 = vst.msk [vmem:[%s286_s5] sm:$0xff] %vm169_vm1, %v161_v42 }

// kernel: transformer_forward.31
= control target key start
LH: loop header
LB: loop body
LE: loop exit
PB: predicated region body
PF: predicated region fallthrough
CT: control target
= control target key end

     0   :  { %vm21_vm0 = vcmask 261120   ;;  %v171_v3 = vmov 0.0   ;;  %s262_s1 = inlined_call_operand.vmem [shape: f32[32,32], index: 1, kind: input, shape index: {}]   ;;  %s263_s0 = inlined_call_operand.vmem [shape: f32[16,32], index: 0, kind: input, shape index: {}]   ;;  %s264_s4 = inlined_call_operand.vmem [shape: f32[16,32], index: 4, kind: output, shape index: {}]   ;;  %s265_s2 = inlined_call_operand.vmem [shape: f32[1,32], index: 2, kind: input, shape index: {}]   ;;  %s266_s3 = inlined_call_operand.vmem [shape: f32[16,32], index: 3, kind: input, shape index: {}]  }
   0x1   :  { %v28_v0 = vld [vmem:[%s262_s1] sm:$0xff]  ;;  %v29_v1 = vld [vmem:[%s262_s1 + $0x8] sm:$0xff]  ;;  %v30_v2 = vld [vmem:[%s262_s1 + $0x10] sm:$0xff]  ;;  %23 = vst.msk [vmem:[%s264_s4 + $0x8] sm:$0xff] %vm21_vm0, %v171_v3 }
   0x2   :  { %22 = vst.msk [vmem:[%s264_s4] sm:$0xff] %vm21_vm0, %v171_v3  ;;  %v162_v4 = vpack.c.bf16 %v29_v1, %v28_v0  ;;  %v31_v5 = vld [vmem:[%s262_s1 + $0x18] sm:$0xff]  ;;  %v26_v6 = vld [vmem:[%s263_s0] sm:$0xff]  ;;  %v27_v8 = vld [vmem:[%s263_s0 + $0x8] sm:$0xff] }
   0x3   :  { %v166_v7 = vpack.c.bf16 %v31_v5, %v30_v2  ;;  %159 = vmatprep.mubr.msk.f32.mxu0 %vm21_vm0, %v26_v6  ;;  %v144_v15 = vld [vmem:[%s265_s2] ss:$0 sm:$0xff]  ;;  %v133_v17 = vld [vmem:[%s266_s3 + $0x8] sm:$0xff] }
   0x4   :  { %163 = vmatprep.subr.bf16.mxu0 %v162_v4  ;;  %v132_v20 = vld [vmem:[%s266_s3] sm:$0xff] }
   0x5   :  { %165 = vmatpush3.bf16.msra.mxu0 %v162_v4 }
   0x6   :  { %167 = vmatprep.subr.bf16.mxu0 %v166_v7 }
   0x8   :  { %v25_v9 = vld [vmem:[%s264_s4 + $0x8] sm:$0xff] }
   0x9   :  { %169 = vmatpush3.bf16.msra.mxu0 %v166_v7  ;;  %v24_v10 = vld [vmem:[%s264_s4] sm:$0xff] }
   0xc   :  { %160 = vmatmul.mubr.msk.f32.vlgmr.msra.gmra.mrb[0].mxu0 %vm21_vm0, %v27_v8 }
  0xdf   :  { %v161_v11 = vpop.f32.mrb[0].mxu0 }
  0xe0   :  { %v115_v12 = vadd.f32 %v161_v11, %v25_v9  ;;  %v105_v13 = vpop.f32.mrb[1].mxu0 }
  0xe1   :  { %v114_v14 = vadd.f32 %v105_v13, %v24_v10 }
  0xe2   :  { %117 = vst.msk [vmem:[%s264_s4 + $0x8] sm:$0xff] %vm21_vm0, %v115_v12 }
  0xe3   :  { %116 = vst.msk [vmem:[%s264_s4] sm:$0xff] %vm21_vm0, %v114_v14 }
  0xe9   :  { %v122_v16 = vld [vmem:[%s264_s4 + $0x8] sm:$0xff] }
  0xea   :  { %v131_v18 = vadd.f32 %v144_v15, %v122_v16  ;;  %v121_v19 = vld [vmem:[%s264_s4] sm:$0xff] }
  0xeb   :  { %v130_v21 = vadd.f32 %v144_v15, %v121_v19 }
  0xec   :  { %v135_v22 = vadd.f32 %v133_v17, %v131_v18 }
  0xed   :  { %v134_v23 = vadd.f32 %v132_v20, %v130_v21 }
  0xee   :  { %137 = vst.msk [vmem:[%s264_s4 + $0x8] sm:$0xff] %vm21_vm0, %v135_v22 }
  0xef   :  { %136 = vst.msk [vmem:[%s264_s4] sm:$0xff] %vm21_vm0, %v134_v23 }

// kernel: transformer_forward.30
= control target key start
LH: loop header
LB: loop body
LE: loop exit
PB: predicated region body
PF: predicated region fallthrough
CT: control target
= control target key end

     0   :  { %s1415_s12 = smov 0   ;;  %s1417_s13 = smov 0   ;;  %s1577_s0 = inlined_call_operand.vmem [shape: f32[2,8,96], index: 0, kind: input, shape index: {}, may-alias: {0,1}]   ;;  %s1578_s1 = inlined_call_operand.vmem [shape: f32[2,8,96], index: 1, kind: input, shape index: {}, may-alias: {0,1}]   ;;  %s1579_s2 = inlined_call_operand.vmem [shape: f32[2,1,8], index: 2, kind: input, shape index: {}]   ;;  %s1580_s3 = inlined_call_operand.vmem [shape: f32[2,8,32], index: 3, kind: output, shape index: {}]  }
   0x1   :  { %s1419_s14 = smov 0  }
   0x2 LB: > { %s32_s15 = sadd.s32 1, %s1371_s13  ;;  %p1210_p0 = scmp.ge.s32.totalorder %s1375_s14, 1  ;;  %s1375_s14 = sphi %s1419_s14, %s13_s14   ;;  %s1371_s13 = sphi %s1417_s13, %s1582_s13   ;;  %s1367_s12 = sphi %s1415_s12, %s1581_s12  }
   0x3   : > { %p34_p1 = scmp.ge.s32.totalorder %s32_s15, 2  ;;  %p189_p2 = scmp.lt.s32.totalorder %s1375_s14, 3 }
   0x5   : > { %s1584_s15 = smov (%p34_p1, %s32_s15), 0  ;;  %p190_p3 = pnand %p1210_p0, %p189_p2 }
   0x6   : > { %p230_p4 = scmp.lt.s32.totalorder (!%p190_p3), %s1367_s12, 1  ;;  %vm261_vm0 = vcmask (!%p190_p3), 64512   ;;  %v1377_v0 = vmov (!%p190_p3), 0.0   ;;  %vm1378_vm1 = vmmov (!%p190_p3), 0   ;;  %s1379_s20 = smov (!%p190_p3), 96   ;;  %vm266_vm2 = vcmask (!%p190_p3), 7168  }
   0x7   : > { %193 = sbr.rel (%p190_p3) target bundleno = 1563 (0x61b), region = 32  ;;  %1245 = vmatprep.subr.mxu0 (!%p190_p3), %v1377_v0  ;;  %262 = vst.msk [vmem:[#allocation2] sm:$0xff] (!%p190_p3), %vm261_vm0, %v1377_v0  ;;  %263 = vst.msk [vmem:[#allocation2 + $0x8] sm:$0xff] (!%p190_p3), %vm261_vm0, %v1377_v0  ;;  %1247 = vmatprep.mubr.msk.f32.mxu0 (!%p190_p3), %vm1378_vm1, %v1377_v0  ;;  %v1380_v5 = vmov (!%p190_p3), -1e+30   ;;  %v1381_v11 = vmov (!%p190_p3), 0  }
   0x8   : > { %264 = vst.msk [vmem:[#allocation2 + $0x10] sm:$0xff] (!%p190_p3), %vm261_vm0, %v1377_v0  ;;  %265 = vst.msk [vmem:[#allocation2 + $0x18] sm:$0xff] (!%p190_p3), %vm261_vm0, %v1377_v0  ;;  %1250 = vmatprep.subr.mxu1 (!%p190_p3), %v1377_v0  ;;  %1252 = vmatprep.mubr.msk.f32.mxu1 (!%p190_p3), %vm1378_vm1, %v1377_v0  ;;  %s1382_s27 = smov (!%p190_p3), 64   ;;  %s1383_s28 = smov (!%p190_p3), 88   ;;  %vm1070_vm3 = vcmask (!%p190_p3), 130112   ;;  %vm1085_vm4 = vcmask (!%p190_p3), 195712  }
   0x9   : > { %267 = vst.msk [vmem:[#allocation3] sm:$0xff] (!%p190_p3), %vm266_vm2, %v1380_v5  ;;  %268 = vst.msk [vmem:[#allocation3 + $0x8] sm:$0xff] (!%p190_p3), %vm266_vm2, %v1380_v5  ;;  %1327 = vset.pattern.permute.xlu1 (!%p190_p3), %v1381_v11  ;;  %1328 = vset.pattern.permute.xlu0 (!%p190_p3), %v1381_v11  ;;  %s1384_s29 = smov (!%p190_p3), 120   ;;  %s1385_s30 = smov (!%p190_p3), 80   ;;  %vm1100_vm5 = vcmask (!%p190_p3), 261312  }
   0xa   : > { %269 = vst.msk [vmem:[#allocation3 + $0x10] sm:$0xff] (!%p190_p3), %vm266_vm2, %v1380_v5  ;;  %270 = vst.msk [vmem:[#allocation3 + $0x18] sm:$0xff] (!%p190_p3), %vm266_vm2, %v1380_v5  ;;  %s1386_s4 = smov (!%p190_p3), 112   ;;  %s1387_s5 = smov (!%p190_p3), 72  }
   0xb   : > { %271 = vst.msk [vmem:[#allocation4] sm:$0xff] (!%p190_p3), %vm266_vm2, %v1377_v0  ;;  %272 = vst.msk [vmem:[#allocation4 + $0x8] sm:$0xff] (!%p190_p3), %vm266_vm2, %v1377_v0  ;;  %s1388_s6 = smov (!%p190_p3), 104   ;;  %s1389_s7 = smov (!%p190_p3), 56  }
   0xc   : > { %273 = vst.msk [vmem:[#allocation4 + $0x10] sm:$0xff] (!%p190_p3), %vm266_vm2, %v1377_v0  ;;  %274 = vst.msk [vmem:[#allocation4 + $0x18] sm:$0xff] (!%p190_p3), %vm266_vm2, %v1377_v0  ;;  %s1390_s8 = smov (!%p190_p3), 40   ;;  %s1391_s9 = smov (!%p190_p3), 48  }
   0xd   : > { %s1393_s17 = smov (!%p190_p3), 16   ;;  %s1394_s18 = smov (!%p190_p3), 24  }
   0xe   : > { %s1586_s12 = smov (!%p230_p4, %s1367_s12), 1 }
   0xf   : > { %s1447_s16 = sshll.u32 %s1586_s12, 3  ;;  %s249_s26 = scalar_lea.vmem %s1579_s2, %s1586_s12 }
  0x10   : > { %s243_s19 = scalar_lea.vmem %s1578_s1, %s1447_s16  ;;  %s236_s23 = scalar_lea.vmem %s1577_s0, %s1447_s16  ;;  %v1480_v6 = vld [vmem:[%s249_s26] ss:$0 sm:$0xff]  ;;  %v553_v41 = vld [vmem:[#allocation3 + $0x8] sm:$0xff] }
  0x11   : > { %v1453_v1 = vld [vmem:[%s243_s19] sm:$0xff]  ;;  %v1522_v44 = vld [vmem:[#allocation3 + $0x10] sm:$0xff]  ;;  %v933_v49 = vld [vmem:[#allocation3 + $0x18] sm:$0xff]  ;;  %s1558_s12 = scalar_lea.vmem %s1580_s3, %s1447_s16  ;;  %s1392_s16 = smov 8  }
  0x12   : > { %286 = vrot.lane.b32.xlu0 %v1453_v1, %s1379_s20  ;;  %v275_v2 = vld [vmem:[%s236_s23] sm:$0xff] }
  0x13   : > { %v276_v4 = vmul.f32 0.35355338, %v275_v2  ;;  %v1484_v12 = vld [vmem:[#allocation3] sm:$0xff] }
  0x84   : > { %v287_v3 = vpop.permute.xlu0 %286 }
  0x85   : > { %1246 = vmatpush3.xpose.msk.msra.mxu0 %vm261_vm0, %v287_v3 }
  0x86   : > { %1260 = vmatprep.subr.mxu0 %v1377_v0 }
  0x88   : > { %1248 = vmatmul.mubr.msk.f32.vlgmr.msra.gmra.mrb[0].mxu0 %vm261_vm0, %v276_v4 }
  0x89   : > { %1262 = vmatprep.mubr.msk.f32.mxu0 %vm1378_vm1, %v1377_v0 }
 0x15b   : > { %v360_v7 = vpop.f32.mrb[0].mxu0 }
 0x15c   : > { %v361_v8 = vadd.f32 %v1480_v6, %v360_v7  ;;  %v1249_v9 = vpop.f32.mrb[1].mxu0 }
 0x15e   : > { %v365_v10 = vsel %vm261_vm0, %v361_v8, -inf }
 0x15f   : > { %366 = vmax.xlane.f32.xlu0 %v365_v10 }
 0x1ec   : > { %v367_v13 = vpop.xlane.xlu0 %366 }
 0x1ed   : > { %v1487_v14 = vmax.f32 %v1484_v12, %v367_v13 }
 0x1ef   : > { %v369_v15 = vsub.f32 %v1484_v12, %v1487_v14  ;;  %473 = vst.msk [vmem:[#allocation3] sm:$0xff] %vm266_vm2, %v1487_v14  ;;  %374 = vperm.xlu1 %1327, %v1487_v14   ;;  %v570_v12 = vld [vmem:[#allocation4 + $0x8] sm:$0xff] }
 0x1f1   : > { %v370_v11 = vmul.f32 1.442695, %v369_v15 }
 0x1f3   : > { %395 = vrot.lane.b32.xlu1 %v1453_v1, %s1382_s27 }
 0x1f7   : > { %476 = vrot.lane.b32.xlu1 %v1453_v1, %s1383_s28 }
 0x1fb   : > { %474 = vrot.lane.b32.xlu1 %v276_v4, %s1384_s29 }
 0x1ff   : > { %666 = vrot.lane.b32.xlu1 %v1453_v1, %s1385_s30 }
 0x203   : > { %664 = vrot.lane.b32.xlu1 %v276_v4, %s1386_s4 }
 0x207   : > { %856 = vrot.lane.b32.xlu1 %v1453_v1, %s1387_s5 }
 0x20b   : > { %854 = vrot.lane.b32.xlu1 %v276_v4, %s1388_s6 }
 0x26e   : > { %v375_v16 = vpop.permute.xlu1 %374 }
 0x26f   : > { %v377_v17 = vsub.f32 %v361_v8, %v375_v16 }
 0x271   : > { %v378_v18 = vmul.f32 1.442695, %v377_v17 }
 0x272   : > { %v396_v19 = vpop.permute.xlu1 %395 }
 0x273   : > { %1329 = vpow2.f32 %v378_v18  ;;  %1251 = vmatpush3.msra.mxu1 %v396_v19  ;;  %v380_v19 = vld [vmem:[#allocation4] sm:$0xff] }
 0x274   : > { %1255 = vmatprep.subr.mxu1 %v1377_v0 }
 0x276   : > { %v477_v20 = vpop.permute.xlu1 %476 }
 0x27a   : > { %v475_v21 = vpop.permute.xlu1 %474 }
 0x27d   : > { %v1330_v22 = vpop.eup %1329 }
 0x27e   : > { %1253 = vmatmul.mubr.msk.f32.vlgmr.msra.gmra.mrb[0].mxu1 %vm261_vm0, %v1330_v22  ;;  %v667_v23 = vpop.permute.xlu1 %666  ;;  %v382_v53 = vsel %vm261_vm0, %v1330_v22, 0.0 }
 0x27f   : > { %1256 = vmatpush3.xpose.msk.msra.mxu1 %vm261_vm0, %v477_v20  ;;  %1257 = vmatprep.mubr.msk.f32.mxu1 %vm1378_vm1, %v1377_v0 }
 0x280   : > { %1265 = vmatprep.subr.mxu1 %v1377_v0 }
 0x282   : > { %1258 = vmatmul.mubr.msk.f32.vlgmr.msra.gmra.mrb[2].mxu1 %vm261_vm0, %v475_v21  ;;  %v665_v24 = vpop.permute.xlu1 %664 }
 0x283   : > { %1266 = vmatpush3.xpose.msk.msra.mxu1 %vm261_vm0, %v667_v23  ;;  %1267 = vmatprep.mubr.msk.f32.mxu1 %vm1378_vm1, %v1377_v0 }
 0x284   : > { %1275 = vmatprep.subr.mxu1 %v1377_v0 }
 0x286   : > { %1268 = vmatmul.mubr.msk.f32.vlgmr.msra.gmra.mrb[4].mxu1 %vm261_vm0, %v665_v24  ;;  %v857_v25 = vpop.permute.xlu1 %856  ;;  %v760_v24 = vld [vmem:[#allocation4 + $0x10] sm:$0xff] }
 0x287   : > { %1276 = vmatpush3.xpose.msk.msra.mxu1 %vm261_vm0, %v857_v25  ;;  %1277 = vmatprep.mubr.msk.f32.mxu1 %vm1378_vm1, %v1377_v0 }
 0x28a   : > { %v855_v26 = vpop.permute.xlu1 %854 }
 0x28b   : > { %1278 = vmatmul.mubr.msk.f32.vlgmr.msra.gmra.mrb[6].mxu1 %vm261_vm0, %v855_v26 }
 0x351   : > { %v1514_v27 = vpop.f32.mrb[0].mxu1 }
 0x352   : > { %v1254_v28 = vpop.f32.mrb[1].mxu1 }
 0x355   : > { %v548_v29 = vpop.f32.mrb[2].mxu1 }
 0x356   : > { %v549_v30 = vadd.f32 %v1480_v6, %v548_v29  ;;  %v1259_v31 = vpop.f32.mrb[3].mxu1 }
 0x358   : > { %v554_v32 = vsel %vm261_vm0, %v549_v30, -inf }
 0x359   : > { %555 = vmax.xlane.f32.xlu1 %v554_v32  ;;  %v738_v33 = vpop.f32.mrb[4].mxu1 }
 0x35a   : > { %v739_v34 = vadd.f32 %v1480_v6, %v738_v33  ;;  %v1269_v35 = vpop.f32.mrb[5].mxu1 }
 0x35c   : > { %v744_v36 = vsel %vm261_vm0, %v739_v34, -inf }
 0x35d   : > { %745 = vmax.xlane.f32.xlu0 %v744_v36  ;;  %v388_v36 = vld [vmem:[#allocation2] sm:$0xff] }
 0x35e   : > { %v928_v37 = vpop.f32.mrb[6].mxu1 }
 0x35f   : > { %v929_v38 = vadd.f32 %v1480_v6, %v928_v37  ;;  %v1279_v39 = vpop.f32.mrb[7].mxu1 }
 0x361   : > { %v934_v40 = vsel %vm261_vm0, %v929_v38, -inf }
 0x362   : > { %935 = vmax.xlane.f32.xlu0 %v934_v40 }
 0x3e6   : > { %v556_v42 = vpop.xlane.xlu1 %555 }
 0x3e7   : > { %v557_v43 = vmax.f32 %v553_v41, %v556_v42 }
 0x3e9   : > { %v558_v45 = vsub.f32 %v553_v41, %v557_v43  ;;  %663 = vst.msk [vmem:[#allocation3 + $0x8] sm:$0xff] %vm266_vm2, %v557_v43  ;;  %563 = vperm.xlu0 %1328, %v557_v43  }
 0x3ea   : > { %v746_v46 = vpop.xlane.xlu0 %745 }
 0x3eb   : > { %v747_v47 = vmax.f32 %v1522_v44, %v746_v46  ;;  %v559_v7 = vmul.f32 1.442695, %v558_v45 }
 0x3ed   : > { %v748_v48 = vsub.f32 %v1522_v44, %v747_v47  ;;  %853 = vst.msk [vmem:[#allocation3 + $0x10] sm:$0xff] %vm266_vm2, %v747_v47  ;;  %753 = vperm.xlu1 %1327, %v747_v47   ;;  %585 = vrot.lane.b32.xlu0 %v1453_v1, %s1389_s7  ;;  %v578_v47 = vld [vmem:[#allocation2 + $0x8] sm:$0xff] }
 0x3ef   : > { %v936_v50 = vpop.xlane.xlu0 %935  ;;  %v749_v16 = vmul.f32 1.442695, %v748_v48  ;;  %v768_v48 = vld [vmem:[#allocation2 + $0x10] sm:$0xff] }
 0x3f0   : > { %v937_v51 = vmax.f32 %v933_v49, %v936_v50 }
 0x3f1   : > { %965 = vrot.lane.b32.xlu0 %v1453_v1, %s1390_s8 }
 0x3f2   : > { %v938_v52 = vsub.f32 %v933_v49, %v937_v51  ;;  %1043 = vst.msk [vmem:[#allocation3 + $0x18] sm:$0xff] %vm266_vm2, %v937_v51  ;;  %943 = vperm.xlu1 %1327, %v937_v51  }
 0x3f4   : > { %v939_v10 = vmul.f32 1.442695, %v938_v52 }
 0x3f6   : > { %775 = vrot.lane.b32.xlu1 %v1453_v1, %s1391_s9 }
 0x41a   : > { %383 = vadd.xlane.f32.xlu1 %v382_v53 }
 0x468   : > { %v564_v54 = vpop.permute.xlu0 %563 }
 0x469   : > { %v566_v55 = vsub.f32 %v549_v30, %v564_v54  ;;  %v950_v30 = vld [vmem:[#allocation4 + $0x18] sm:$0xff] }
 0x46b   : > { %v567_v56 = vmul.f32 1.442695, %v566_v55  ;;  %v958_v55 = vld [vmem:[#allocation2 + $0x18] sm:$0xff] }
 0x46c   : > { %v754_v57 = vpop.permute.xlu1 %753  ;;  %v586_v58 = vpop.permute.xlu0 %585 }
 0x46d   : > { %1331 = vpow2.f32 %v567_v56  ;;  %v756_v59 = vsub.f32 %v739_v34, %v754_v57  ;;  %1261 = vmatpush3.msra.mxu0 %v586_v58 }
 0x46e   : > { %1270 = vmatprep.subr.mxu0 %v1377_v0 }
 0x46f   : > { %v757_v60 = vmul.f32 1.442695, %v756_v59 }
 0x470   : > { %v966_v4 = vpop.permute.xlu0 %965 }
 0x471   : > { %1333 = vpow2.f32 %v757_v60  ;;  %v944_v61 = vpop.permute.xlu1 %943 }
 0x472   : > { %v946_v62 = vsub.f32 %v929_v38, %v944_v61 }
 0x474   : > { %v947_v63 = vmul.f32 1.442695, %v946_v62 }
 0x475   : > { %v776_v1 = vpop.permute.xlu1 %775 }
 0x476   : > { %1335 = vpow2.f32 %v947_v63 }
 0x477   : > { %v1332_v2 = vpop.eup %1331  ;;  %1337 = vpow2.f32 %v559_v7 }
 0x478   : > { %1263 = vmatmul.mubr.msk.f32.vlgmr.msra.gmra.mrb[2].mxu0 %vm261_vm0, %v1332_v2  ;;  %v572_v3 = vsel %vm261_vm0, %v1332_v2, 0.0  ;;  %1339 = vpow2.f32 %v939_v10 }
 0x479   : > { %573 = vadd.xlane.f32.xlu0 %v572_v3  ;;  %1271 = vmatpush3.msra.mxu0 %v776_v1  ;;  %1341 = vpow2.f32 %v370_v11 }
 0x47a   : > { %1272 = vmatprep.mubr.msk.f32.mxu0 %vm1378_vm1, %v1377_v0  ;;  %1280 = vmatprep.subr.mxu0 %v1377_v0  ;;  %1343 = vpow2.f32 %v749_v16 }
 0x47b   : > { %v1334_v5 = vpop.eup %1333 }
 0x47c   : > { %1273 = vmatmul.mubr.msk.f32.vlgmr.msra.gmra.mrb[4].mxu0 %vm261_vm0, %v1334_v5  ;;  %v762_v6 = vsel %vm261_vm0, %v1334_v5, 0.0 }
 0x47d   : > { %763 = vadd.xlane.f32.xlu1 %v762_v6  ;;  %1281 = vmatpush3.msra.mxu0 %v966_v4 }
 0x47e   : > { %1282 = vmatprep.mubr.msk.f32.mxu0 %vm1378_vm1, %v1377_v0 }
 0x480   : > { %v1336_v8 = vpop.eup %1335 }
 0x481   : > { %1283 = vmatmul.mubr.msk.f32.vlgmr.msra.gmra.mrb[6].mxu0 %vm261_vm0, %v1336_v8  ;;  %v952_v9 = vsel %vm261_vm0, %v1336_v8, 0.0  ;;  %v1338_v13 = vpop.eup %1337 }
 0x482   : > { %953 = vadd.xlane.f32.xlu0 %v952_v9  ;;  %v1340_v17 = vpop.eup %1339  ;;  %v571_v14 = vmul.f32 %v1338_v13, %v570_v12 }
 0x483   : > { %v1342_v0 = vpop.eup %1341  ;;  %v951_v31 = vmul.f32 %v1340_v17, %v950_v30 }
 0x484   : > { %v1344_v18 = vpop.eup %1343  ;;  %v381_v20 = vmul.f32 %v1342_v0, %v380_v19 }
 0x485   : > { %v761_v26 = vmul.f32 %v1344_v18, %v760_v24 }
 0x48e   : > { %581 = vperm.xlu1 %1327, %v1338_v13  }
 0x492   : > { %961 = vperm.xlu1 %1327, %v1340_v17  }
 0x498   : > { %391 = vperm.xlu0 %1328, %v1342_v0  }
 0x49c   : > { %771 = vperm.xlu0 %1328, %v1344_v18  }
 0x4a7   : > { %v384_v21 = vpop.xlane.xlu1 %383 }
 0x4a8   : > { %v385_v22 = vadd.f32 %v384_v21, %v381_v20 }
 0x4aa   : > { %387 = vst.msk [vmem:[#allocation4] sm:$0xff] %vm266_vm2, %v385_v22 }
 0x4b1   : > { %v1048_v23 = vld [vmem:[#allocation4] sm:$0xff] }
 0x4b2   : > { %1051 = vperm.xlu1 %1327, %v1048_v23  }
 0x506   : > { %v574_v15 = vpop.xlane.xlu0 %573 }
 0x507   : > { %v575_v25 = vadd.f32 %v574_v15, %v571_v14 }
 0x509   : > { %576 = vst.msk [vmem:[#allocation4 + $0x8] sm:$0xff] %vm266_vm2, %v575_v25 }
 0x50a   : > { %v764_v28 = vpop.xlane.xlu1 %763 }
 0x50b   : > { %v765_v29 = vadd.f32 %v764_v28, %v761_v26 }
 0x50d   : > { %766 = vst.msk [vmem:[#allocation4 + $0x10] sm:$0xff] %vm266_vm2, %v765_v29 }
 0x50e   : > { %v582_v41 = vpop.permute.xlu1 %581 }
 0x50f   : > { %v954_v32 = vpop.xlane.xlu0 %953 }
 0x510   : > { %v955_v33 = vadd.f32 %v954_v32, %v951_v31  ;;  %v1058_v34 = vld [vmem:[#allocation4 + $0x8] sm:$0xff] }
 0x511   : > { %1061 = vperm.xlu0 %1328, %v1058_v34  }
 0x512   : > { %956 = vst.msk [vmem:[#allocation4 + $0x18] sm:$0xff] %vm266_vm2, %v955_v33  ;;  %v962_v42 = vpop.permute.xlu1 %961 }
 0x513   : > { %v964_v58 = vmul.f32 %v962_v42, %v958_v55 }
 0x514   : > { %v1073_v35 = vld [vmem:[#allocation4 + $0x10] sm:$0xff] }
 0x515   : > { %1076 = vperm.xlu0 %1328, %v1073_v35  }
 0x517   : > { %v392_v37 = vpop.permute.xlu0 %391 }
 0x518   : > { %v394_v38 = vmul.f32 %v392_v37, %v388_v36 }
 0x519   : > { %v1088_v39 = vld [vmem:[#allocation4 + $0x18] sm:$0xff] }
 0x51a   : > { %v471_v40 = vadd.f32 %v1514_v27, %v394_v38  ;;  %1091 = vperm.xlu1 %1327, %v1088_v39   ;;  %v584_v27 = vmul.f32 %v582_v41, %v578_v47 }
 0x51b   : > { %v772_v49 = vpop.permute.xlu0 %771 }
 0x51c   : > { %472 = vst.msk [vmem:[#allocation2] sm:$0xff] %vm261_vm0, %v471_v40  ;;  %v774_v53 = vmul.f32 %v772_v49, %v768_v48 }
 0x523   : > { %v1047_v45 = vld [vmem:[#allocation2] sm:$0xff] }
 0x531   : > { %v1052_v43 = vpop.permute.xlu1 %1051 }
 0x532   : > { %1345 = vrcp.f32 %v1052_v43 }
 0x53c   : > { %v1346_v44 = vpop.eup %1345 }
 0x53d   : > { %v1055_v46 = vmul.f32 %v1346_v44, %v1047_v45 }
 0x53f   : > { %1056 = vst.msk [vmem:[%s1558_s12] sm:$0xff] %vm261_vm0, %v1055_v46 }
 0x54b   : > { %v657_v50 = vpop.f32.mrb[2].mxu0 }
 0x54c   : > { %v661_v51 = vadd.f32 %v657_v50, %v584_v27  ;;  %v1264_v52 = vpop.f32.mrb[3].mxu0 }
 0x54e   : > { %662 = vst.msk [vmem:[#allocation2 + $0x8] sm:$0xff] %vm261_vm0, %v661_v51 }
 0x54f   : > { %v847_v54 = vpop.f32.mrb[4].mxu0 }
 0x550   : > { %v851_v56 = vadd.f32 %v847_v54, %v774_v53  ;;  %v1274_v57 = vpop.f32.mrb[5].mxu0 }
 0x552   : > { %852 = vst.msk [vmem:[#allocation2 + $0x10] sm:$0xff] %vm261_vm0, %v851_v56 }
 0x554   : > { %v1037_v59 = vpop.f32.mrb[6].mxu0 }
 0x555   : > { %v1041_v60 = vadd.f32 %v1037_v59, %v964_v58  ;;  %v1284_v61 = vpop.f32.mrb[7].mxu0  ;;  %v1057_v3 = vld [vmem:[#allocation2 + $0x8] sm:$0xff] }
 0x557   : > { %1042 = vst.msk [vmem:[#allocation2 + $0x18] sm:$0xff] %vm261_vm0, %v1041_v60 }
 0x559   : > { %v1072_v6 = vld [vmem:[#allocation2 + $0x10] sm:$0xff] }
 0x55e   : > { %v1087_v9 = vld [vmem:[#allocation2 + $0x18] sm:$0xff] }
 0x590   : > { %v1062_v62 = vpop.permute.xlu0 %1061 }
 0x591   : > { %1347 = vrcp.f32 %v1062_v62 }
 0x594   : > { %v1077_v63 = vpop.permute.xlu0 %1076 }
 0x595   : > { %1349 = vrcp.f32 %v1077_v63 }
 0x599   : > { %v1092_v1 = vpop.permute.xlu1 %1091 }
 0x59a   : > { %1351 = vrcp.f32 %v1092_v1 }
 0x59b   : > { %v1348_v2 = vpop.eup %1347 }
 0x59c   : > { %v1065_v4 = vmul.f32 %v1348_v2, %v1057_v3 }
 0x59e   : > { %1067 = vrot.lane.b32.xlu1 %v1065_v4, %s1392_s16 }
 0x59f   : > { %v1350_v5 = vpop.eup %1349 }
 0x5a0   : > { %v1080_v7 = vmul.f32 %v1350_v5, %v1072_v6 }
 0x5a2   : > { %1082 = vrot.lane.b32.xlu0 %v1080_v7, %s1393_s17 }
 0x5a4   : > { %v1352_v8 = vpop.eup %1351 }
 0x5a5   : > { %v1095_v10 = vmul.f32 %v1352_v8, %v1087_v9 }
 0x5a7   : > { %1097 = vrot.lane.b32.xlu1 %v1095_v10, %s1394_s18 }
 0x610   : > { %v1068_v11 = vpop.permute.xlu1 %1067 }
 0x611   : > { %1071 = vst.msk [vmem:[%s1558_s12] sm:$0xff] %vm1070_vm3, %v1068_v11 }
 0x614   : > { %v1083_v13 = vpop.permute.xlu0 %1082 }
 0x615   : > { %1086 = vst.msk [vmem:[%s1558_s12] sm:$0xff] %vm1085_vm4, %v1083_v13 }
 0x619   : > { %v1098_v16 = vpop.permute.xlu1 %1097 }
 0x61a   : > { %1101 = vst.msk [vmem:[%s1558_s12] sm:$0xff] %vm1100_vm5, %v1098_v16 }
 0x61b PF: > { %s13_s14 = sadd.s32 1, %s1375_s14   ;;  %s1581_s12 = smov %s1371_s13 }
 0x61c   : > { %p10_p5 = scmp.ge.s32.totalorder %s13_s14, 4   ;;  %s1582_s13 = smov %s1584_s15 }
 0x61e   :  { %12 = sbr.rel (!%p10_p5) target bundleno = 2 (0x2), region = 85 }

// kernel: transformer_forward.33
= control target key start
LH: loop header
LB: loop body
LE: loop exit
PB: predicated region body
PF: predicated region fallthrough
CT: control target
= control target key end

     0   :  { %vm21_vm0 = vcmask 261120   ;;  %vm36_vm1 = vcmask 523264   ;;  %v196_v3 = vmov 0.0   ;;  %s299_s1 = inlined_call_operand.vmem [shape: f32[64,32], index: 1, kind: input, shape index: {}]   ;;  %s300_s0 = inlined_call_operand.vmem [shape: f32[16,64], index: 0, kind: input, shape index: {}]   ;;  %s301_s4 = inlined_call_operand.vmem [shape: f32[16,32], index: 4, kind: output, shape index: {}]   ;;  %s302_s2 = inlined_call_operand.vmem [shape: f32[1,32], index: 2, kind: input, shape index: {}]   ;;  %s303_s3 = inlined_call_operand.vmem [shape: f32[16,32], index: 3, kind: input, shape index: {}]  }
   0x1   :  { %v28_v0 = vld [vmem:[%s299_s1] sm:$0xff]  ;;  %v29_v1 = vld [vmem:[%s299_s1 + $0x8] sm:$0xff]  ;;  %v30_v2 = vld [vmem:[%s299_s1 + $0x10] sm:$0xff]  ;;  %23 = vst.msk [vmem:[%s301_s4 + $0x8] sm:$0xff] %vm21_vm0, %v196_v3 }
   0x2   :  { %22 = vst.msk [vmem:[%s301_s4] sm:$0xff] %vm21_vm0, %v196_v3  ;;  %v179_v4 = vpack.c.bf16 %v29_v1, %v28_v0  ;;  %v31_v5 = vld [vmem:[%s299_s1 + $0x18] sm:$0xff]  ;;  %v32_v7 = vld [vmem:[%s299_s1 + $0x20] sm:$0xff]  ;;  %v33_v8 = vld [vmem:[%s299_s1 + $0x28] sm:$0xff] }
   0x3   :  { %v183_v6 = vpack.c.bf16 %v31_v5, %v30_v2  ;;  %v26_v9 = vld [vmem:[%s300_s0] sm:$0xff]  ;;  %v187_v10 = vpack.c.bf16 %v33_v8, %v32_v7  ;;  %v34_v11 = vld [vmem:[%s299_s1 + $0x30] sm:$0xff]  ;;  %v35_v12 = vld [vmem:[%s299_s1 + $0x38] sm:$0xff] }
   0x4   :  { %180 = vmatprep.subr.bf16.mxu0 %v179_v4  ;;  %176 = vmatprep.mubr.msk.f32.mxu0 %vm36_vm1, %v26_v9  ;;  %v191_v13 = vpack.c.bf16 %v35_v12, %v34_v11  ;;  %v27_v14 = vld [vmem:[%s300_s0 + $0x8] sm:$0xff]  ;;  %v149_v21 = vld [vmem:[%s302_s2] ss:$0 sm:$0xff] }
   0x5   :  { %182 = vmatpush3.bf16.msra.mxu0 %v179_v4  ;;  %v138_v23 = vld [vmem:[%s303_s3 + $0x8] sm:$0xff]  ;;  %v137_v26 = vld [vmem:[%s303_s3] sm:$0xff] }
   0x6   :  { %184 = vmatprep.subr.bf16.mxu0 %v183_v6 }
   0x8   :  { %v25_v15 = vld [vmem:[%s301_s4 + $0x8] sm:$0xff] }
   0x9   :  { %186 = vmatpush3.bf16.msra.mxu0 %v183_v6  ;;  %v24_v16 = vld [vmem:[%s301_s4] sm:$0xff] }
   0xa   :  { %188 = vmatprep.subr.bf16.mxu0 %v187_v10 }
   0xd   :  { %190 = vmatpush3.bf16.msra.mxu0 %v187_v10 }
   0xe   :  { %192 = vmatprep.subr.bf16.mxu0 %v191_v13 }
  0x11   :  { %194 = vmatpush3.bf16.msra.mxu0 %v191_v13 }
  0x14   :  { %177 = vmatmul.mubr.msk.f32.vlgmr.msra.gmra.mrb[0].mxu0 %vm36_vm1, %v27_v14 }
  0xe7   :  { %v178_v17 = vpop.f32.mrb[0].mxu0 }
  0xe8   :  { %v119_v18 = vadd.f32 %v178_v17, %v25_v15  ;;  %v109_v19 = vpop.f32.mrb[1].mxu0 }
  0xe9   :  { %v118_v20 = vadd.f32 %v109_v19, %v24_v16 }
  0xea   :  { %122 = vst.msk [vmem:[%s301_s4 + $0x8] sm:$0xff] %vm21_vm0, %v119_v18 }
  0xeb   :  { %121 = vst.msk [vmem:[%s301_s4] sm:$0xff] %vm21_vm0, %v118_v20 }
  0xf1   :  { %v127_v22 = vld [vmem:[%s301_s4 + $0x8] sm:$0xff] }
  0xf2   :  { %v136_v24 = vadd.f32 %v149_v21, %v127_v22  ;;  %v126_v25 = vld [vmem:[%s301_s4] sm:$0xff] }
  0xf3   :  { %v135_v27 = vadd.f32 %v149_v21, %v126_v25 }
  0xf4   :  { %v140_v28 = vadd.f32 %v138_v23, %v136_v24 }
  0xf5   :  { %v139_v29 = vadd.f32 %v137_v26, %v135_v27 }
  0xf6   :  { %142 = vst.msk [vmem:[%s301_s4 + $0x8] sm:$0xff] %vm21_vm0, %v140_v28 }
  0xf7   :  { %141 = vst.msk [vmem:[%s301_s4] sm:$0xff] %vm21_vm0, %v139_v29 }

// kernel: transformer_forward.43
= control target key start
LH: loop header
LB: loop body
LE: loop exit
PB: predicated region body
PF: predicated region fallthrough
CT: control target
= control target key end

     0   :  { %vm26_vm0 = vcmask 261120   ;;  %vm169_vm1 = vcmask 523264   ;;  %s281_s0 = inlined_call_operand.vmem [shape: f32[16,32], index: 0, kind: input, shape index: {}]   ;;  %s282_s3 = inlined_call_operand.vmem [shape: f32[32,64], index: 3, kind: input, shape index: {}]   ;;  %s283_s1 = inlined_call_operand.vmem [shape: f32[1,32], index: 1, kind: input, shape index: {}]   ;;  %s284_s2 = inlined_call_operand.vmem [shape: f32[1,32], index: 2, kind: input, shape index: {}]   ;;  %s285_s4 = inlined_call_operand.vmem [shape: f32[1,64], index: 4, kind: input, shape index: {}]   ;;  %s286_s5 = inlined_call_operand.vmem [shape: f32[16,64], index: 5, kind: output, shape index: {}]  }
   0x1   :  { %v24_v0 = vld [vmem:[%s281_s0] sm:$0xff]  ;;  %v25_v1 = vld [vmem:[%s281_s0 + $0x8] sm:$0xff]  ;;  %v78_v17 = vld [vmem:[%s282_s3 + $0x10] sm:$0xff] }
   0x2   :  { %v27_v2 = vsel %vm26_vm0, %v24_v0, 0.0  ;;  %v30_v3 = vsel %vm26_vm0, %v25_v1, 0.0  ;;  %v76_v14 = vld [vmem:[%s282_s3] sm:$0xff]  ;;  %v77_v15 = vld [vmem:[%s282_s3 + $0x8] sm:$0xff]  ;;  %v79_v18 = vld [vmem:[%s282_s3 + $0x18] sm:$0xff] }
   0x3   :  { %28 = vadd.xlane.f32.xlu0 %v27_v2  ;;  %v198_v16 = vpack.c.bf16 %v77_v15, %v76_v14  ;;  %v202_v19 = vpack.c.bf16 %v79_v18, %v78_v17  ;;  %v176_v27 = vld [vmem:[%s283_s1] ss:$0 sm:$0xff] }
   0x4   :  { %v177_v29 = vld [vmem:[%s284_s2] ss:$0 sm:$0xff] }
   0x5   :  { %199 = vmatprep.subr.bf16.mxu0 %v198_v16  ;;  %v178_v38 = vld [vmem:[%s285_s4] ss:$0 sm:$0xff] }
   0x6   :  { %201 = vmatpush3.bf16.msra.mxu0 %v198_v16 }
   0x7   :  { %31 = vadd.xlane.f32.xlu0 %v30_v3  ;;  %203 = vmatprep.subr.bf16.mxu0 %v202_v19 }
   0xa   :  { %205 = vmatpush3.bf16.msra.mxu0 %v202_v19 }
  0x90   :  { %v29_v4 = vpop.xlane.xlu0 %28 }
  0x91   :  { %v34_v5 = vmul.f32 0.03125, %v29_v4 }
  0x93   :  { %v36_v6 = vsub.f32 %v24_v0, %v34_v5 }
  0x94   :  { %v32_v7 = vpop.xlane.xlu0 %31 }
  0x95   :  { %v35_v8 = vmul.f32 0.03125, %v32_v7  ;;  %v38_v9 = vmul.f32 %v36_v6, %v36_v6 }
  0x97   :  { %v37_v10 = vsub.f32 %v25_v1, %v35_v8  ;;  %v40_v11 = vsel %vm26_vm0, %v38_v9, 0.0 }
  0x98   :  { %41 = vadd.xlane.f32.xlu1 %v40_v11 }
  0x99   :  { %v39_v12 = vmul.f32 %v37_v10, %v37_v10 }
  0x9b   :  { %v43_v13 = vsel %vm26_vm0, %v39_v12, 0.0 }
  0x9c   :  { %44 = vadd.xlane.f32.xlu1 %v43_v13 }
 0x125   :  { %v42_v20 = vpop.xlane.xlu1 %41 }
 0x126   :  { %v46_v21 = vmul.f32 0.03125, %v42_v20 }
 0x128   :  { %v48_v22 = vadd.f32 1e-05, %v46_v21 }
 0x129   :  { %v45_v23 = vpop.xlane.xlu1 %44 }
 0x12a   :  { %206 = vrsqrt.f32 %v48_v22  ;;  %v47_v24 = vmul.f32 0.03125, %v45_v23 }
 0x12c   :  { %v49_v25 = vadd.f32 1e-05, %v47_v24 }
 0x12e   :  { %208 = vrsqrt.f32 %v49_v25 }
 0x134   :  { %v207_v26 = vpop.eup %206 }
 0x135   :  { %v52_v28 = vmul.f32 %v207_v26, %v36_v6 }
 0x137   :  { %v61_v30 = vmul.f32 %v176_v27, %v52_v28 }
 0x138   :  { %v209_v31 = vpop.eup %208 }
 0x139   :  { %v70_v32 = vadd.f32 %v177_v29, %v61_v30  ;;  %v53_v33 = vmul.f32 %v209_v31, %v37_v10 }
 0x13b   :  { %72 = vst.msk [vmem:[#allocation2] sm:$0xff] %vm26_vm0, %v70_v32  ;;  %v62_v34 = vmul.f32 %v176_v27, %v53_v33 }
 0x13d   :  { %v71_v35 = vadd.f32 %v177_v29, %v62_v34 }
 0x13f   :  { %73 = vst.msk [vmem:[#allocation2 + $0x8] sm:$0xff] %vm26_vm0, %v71_v35 }
 0x142   :  { %v74_v36 = vld [vmem:[#allocation2] sm:$0xff] }
 0x143   :  { %195 = vmatprep.mubr.msk.f32.mxu0 %vm26_vm0, %v74_v36 }
 0x146   :  { %v75_v37 = vld [vmem:[#allocation2 + $0x8] sm:$0xff] }
 0x147   :  { %196 = vmatmul.mubr.msk.f32.vlgmr.msra.gmra.mrb[0].mxu0 %vm26_vm0, %v75_v37 }
 0x21a   :  { %v197_v39 = vpop.f32.mrb[0].mxu0 }
 0x21b   :  { %v166_v40 = vadd.f32 %v197_v39, %v178_v38  ;;  %v160_v41 = vpop.f32.mrb[1].mxu0 }
 0x21c   :  { %v161_v42 = vadd.f32 %v178_v38, %v160_v41 }
 0x21d   :  { %171 = vst.msk [vmem:[%s286_s5 + $0x8] sm:$0xff] %vm169_vm1, %v166_v40 }
 0x21e   :  { %170 = vst.msk [vmem:[%s286_s5] sm:$0xff] %vm169_vm1, %v161_v42 }

// kernel: transformer_forward.42
= control target key start
LH: loop header
LB: loop body
LE: loop exit
PB: predicated region body
PF: predicated region fallthrough
CT: control target
= control target key end

     0   :  { %vm26_vm0 = vcmask 261120   ;;  %s282_s0 = inlined_call_operand.vmem [shape: f32[16,32], index: 0, kind: input, shape index: {}]   ;;  %s283_s3 = inlined_call_operand.vmem [shape: f32[32,32], index: 3, kind: input, shape index: {}]   ;;  %s284_s1 = inlined_call_operand.vmem [shape: f32[1,32], index: 1, kind: input, shape index: {}]   ;;  %s285_s2 = inlined_call_operand.vmem [shape: f32[1,32], index: 2, kind: input, shape index: {}]   ;;  %s286_s4 = inlined_call_operand.vmem [shape: f32[1,32], index: 4, kind: input, shape index: {}]   ;;  %s287_s5 = inlined_call_operand.vmem [shape: f32[16,32], index: 5, kind: output, shape index: {}]  }
   0x1   :  { %v24_v0 = vld [vmem:[%s282_s0] sm:$0xff]  ;;  %v25_v1 = vld [vmem:[%s282_s0 + $0x8] sm:$0xff]  ;;  %v78_v17 = vld [vmem:[%s283_s3 + $0x10] sm:$0xff] }
   0x2   :  { %v27_v2 = vsel %vm26_vm0, %v24_v0, 0.0  ;;  %v30_v3 = vsel %vm26_vm0, %v25_v1, 0.0  ;;  %v76_v14 = vld [vmem:[%s283_s3] sm:$0xff]  ;;  %v77_v15 = vld [vmem:[%s283_s3 + $0x8] sm:$0xff]  ;;  %v79_v18 = vld [vmem:[%s283_s3 + $0x18] sm:$0xff] }
   0x3   :  { %28 = vadd.xlane.f32.xlu0 %v27_v2  ;;  %v197_v16 = vpack.c.bf16 %v77_v15, %v76_v14  ;;  %v201_v19 = vpack.c.bf16 %v79_v18, %v78_v17  ;;  %v175_v27 = vld [vmem:[%s284_s1] ss:$0 sm:$0xff] }
   0x4   :  { %v176_v29 = vld [vmem:[%s285_s2] ss:$0 sm:$0xff] }
   0x5   :  { %198 = vmatprep.subr.bf16.mxu0 %v197_v16  ;;  %v177_v38 = vld [vmem:[%s286_s4] ss:$0 sm:$0xff] }
   0x6   :  { %200 = vmatpush3.bf16.msra.mxu0 %v197_v16 }
   0x7   :  { %31 = vadd.xlane.f32.xlu0 %v30_v3  ;;  %202 = vmatprep.subr.bf16.mxu0 %v201_v19 }
   0xa   :  { %204 = vmatpush3.bf16.msra.mxu0 %v201_v19 }
  0x90   :  { %v29_v4 = vpop.xlane.xlu0 %28 }
  0x91   :  { %v34_v5 = vmul.f32 0.03125, %v29_v4 }
  0x93   :  { %v36_v6 = vsub.f32 %v24_v0, %v34_v5 }
  0x94   :  { %v32_v7 = vpop.xlane.xlu0 %31 }
  0x95   :  { %v35_v8 = vmul.f32 0.03125, %v32_v7  ;;  %v38_v9 = vmul.f32 %v36_v6, %v36_v6 }
  0x97   :  { %v37_v10 = vsub.f32 %v25_v1, %v35_v8  ;;  %v40_v11 = vsel %vm26_vm0, %v38_v9, 0.0 }
  0x98   :  { %41 = vadd.xlane.f32.xlu1 %v40_v11 }
  0x99   :  { %v39_v12 = vmul.f32 %v37_v10, %v37_v10 }
  0x9b   :  { %v43_v13 = vsel %vm26_vm0, %v39_v12, 0.0 }
  0x9c   :  { %44 = vadd.xlane.f32.xlu1 %v43_v13 }
 0x125   :  { %v42_v20 = vpop.xlane.xlu1 %41 }
 0x126   :  { %v46_v21 = vmul.f32 0.03125, %v42_v20 }
 0x128   :  { %v48_v22 = vadd.f32 1e-05, %v46_v21 }
 0x129   :  { %v45_v23 = vpop.xlane.xlu1 %44 }
 0x12a   :  { %205 = vrsqrt.f32 %v48_v22  ;;  %v47_v24 = vmul.f32 0.03125, %v45_v23 }
 0x12c   :  { %v49_v25 = vadd.f32 1e-05, %v47_v24 }
 0x12e   :  { %207 = vrsqrt.f32 %v49_v25 }
 0x134   :  { %v206_v26 = vpop.eup %205 }
 0x135   :  { %v52_v28 = vmul.f32 %v206_v26, %v36_v6 }
 0x137   :  { %v61_v30 = vmul.f32 %v175_v27, %v52_v28 }
 0x138   :  { %v208_v31 = vpop.eup %207 }
 0x139   :  { %v70_v32 = vadd.f32 %v176_v29, %v61_v30  ;;  %v53_v33 = vmul.f32 %v208_v31, %v37_v10 }
 0x13b   :  { %72 = vst.msk [vmem:[#allocation2] sm:$0xff] %vm26_vm0, %v70_v32  ;;  %v62_v34 = vmul.f32 %v175_v27, %v53_v33 }
 0x13d   :  { %v71_v35 = vadd.f32 %v176_v29, %v62_v34 }
 0x13f   :  { %73 = vst.msk [vmem:[#allocation2 + $0x8] sm:$0xff] %vm26_vm0, %v71_v35 }
 0x142   :  { %v74_v36 = vld [vmem:[#allocation2] sm:$0xff] }
 0x143   :  { %194 = vmatprep.mubr.msk.f32.mxu0 %vm26_vm0, %v74_v36 }
 0x146   :  { %v75_v37 = vld [vmem:[#allocation2 + $0x8] sm:$0xff] }
 0x147   :  { %195 = vmatmul.mubr.msk.f32.vlgmr.msra.gmra.mrb[0].mxu0 %vm26_vm0, %v75_v37 }
 0x21a   :  { %v196_v39 = vpop.f32.mrb[0].mxu0 }
 0x21b   :  { %v166_v40 = vadd.f32 %v196_v39, %v177_v38  ;;  %v160_v41 = vpop.f32.mrb[1].mxu0 }
 0x21c   :  { %v161_v42 = vadd.f32 %v177_v38, %v160_v41 }
 0x21d   :  { %170 = vst.msk [vmem:[%s287_s5 + $0x8] sm:$0xff] %vm26_vm0, %v166_v40 }
 0x21e   :  { %169 = vst.msk [vmem:[%s287_s5] sm:$0xff] %vm26_vm0, %v161_v42 }

// kernel: transformer_forward.57
= control target key start
LH: loop header
LB: loop body
LE: loop exit
PB: predicated region body
PF: predicated region fallthrough
CT: control target
= control target key end

     0   :  { %vm26_vm0 = vcmask 261120   ;;  %s280_s0 = inlined_call_operand.vmem [shape: f32[16,32], index: 0, kind: input, shape index: {}]   ;;  %s281_s3 = inlined_call_operand.vmem [shape: f32[32,128], index: 3, kind: input, shape index: {}]   ;;  %s282_s1 = inlined_call_operand.vmem [shape: f32[1,32], index: 1, kind: input, shape index: {}]   ;;  %s283_s2 = inlined_call_operand.vmem [shape: f32[1,32], index: 2, kind: input, shape index: {}]   ;;  %s284_s4 = inlined_call_operand.vmem [shape: f32[1,128], index: 4, kind: input, shape index: {}]   ;;  %s285_s5 = inlined_call_operand.vmem [shape: f32[16,128], index: 5, kind: output, shape index: {}]  }
   0x1   :  { %v24_v0 = vld [vmem:[%s280_s0] sm:$0xff]  ;;  %v25_v1 = vld [vmem:[%s280_s0 + $0x8] sm:$0xff]  ;;  %v78_v17 = vld [vmem:[%s281_s3 + $0x10] sm:$0xff] }
   0x2   :  { %v27_v2 = vsel %vm26_vm0, %v24_v0, 0.0  ;;  %v30_v3 = vsel %vm26_vm0, %v25_v1, 0.0  ;;  %v76_v14 = vld [vmem:[%s281_s3] sm:$0xff]  ;;  %v77_v15 = vld [vmem:[%s281_s3 + $0x8] sm:$0xff]  ;;  %v79_v18 = vld [vmem:[%s281_s3 + $0x18] sm:$0xff] }
   0x3   :  { %28 = vadd.xlane.f32.xlu0 %v27_v2  ;;  %v197_v16 = vpack.c.bf16 %v77_v15, %v76_v14  ;;  %v201_v19 = vpack.c.bf16 %v79_v18, %v78_v17  ;;  %v175_v27 = vld [vmem:[%s282_s1] ss:$0 sm:$0xff] }
   0x4   :  { %v176_v29 = vld [vmem:[%s283_s2] ss:$0 sm:$0xff] }
   0x5   :  { %198 = vmatprep.subr.bf16.mxu0 %v197_v16  ;;  %v177_v38 = vld [vmem:[%s284_s4] ss:$0 sm:$0xff] }
   0x6   :  { %200 = vmatpush3.bf16.msra.mxu0 %v197_v16 }
   0x7   :  { %31 = vadd.xlane.f32.xlu0 %v30_v3  ;;  %202 = vmatprep.subr.bf16.mxu0 %v201_v19 }
   0xa   :  { %204 = vmatpush3.bf16.msra.mxu0 %v201_v19 }
  0x90   :  { %v29_v4 = vpop.xlane.xlu0 %28 }
  0x91   :  { %v34_v5 = vmul.f32 0.03125, %v29_v4 }
  0x93   :  { %v36_v6 = vsub.f32 %v24_v0, %v34_v5 }
  0x94   :  { %v32_v7 = vpop.xlane.xlu0 %31 }
  0x95   :  { %v35_v8 = vmul.f32 0.03125, %v32_v7  ;;  %v38_v9 = vmul.f32 %v36_v6, %v36_v6 }
  0x97   :  { %v37_v10 = vsub.f32 %v25_v1, %v35_v8  ;;  %v40_v11 = vsel %vm26_vm0, %v38_v9, 0.0 }
  0x98   :  { %41 = vadd.xlane.f32.xlu1 %v40_v11 }
  0x99   :  { %v39_v12 = vmul.f32 %v37_v10, %v37_v10 }
  0x9b   :  { %v43_v13 = vsel %vm26_vm0, %v39_v12, 0.0 }
  0x9c   :  { %44 = vadd.xlane.f32.xlu1 %v43_v13 }
 0x125   :  { %v42_v20 = vpop.xlane.xlu1 %41 }
 0x126   :  { %v46_v21 = vmul.f32 0.03125, %v42_v20 }
 0x128   :  { %v48_v22 = vadd.f32 1e-05, %v46_v21 }
 0x129   :  { %v45_v23 = vpop.xlane.xlu1 %44 }
 0x12a   :  { %205 = vrsqrt.f32 %v48_v22  ;;  %v47_v24 = vmul.f32 0.03125, %v45_v23 }
 0x12c   :  { %v49_v25 = vadd.f32 1e-05, %v47_v24 }
 0x12e   :  { %207 = vrsqrt.f32 %v49_v25 }
 0x134   :  { %v206_v26 = vpop.eup %205 }
 0x135   :  { %v52_v28 = vmul.f32 %v206_v26, %v36_v6 }
 0x137   :  { %v61_v30 = vmul.f32 %v175_v27, %v52_v28 }
 0x138   :  { %v208_v31 = vpop.eup %207 }
 0x139   :  { %v70_v32 = vadd.f32 %v176_v29, %v61_v30  ;;  %v53_v33 = vmul.f32 %v208_v31, %v37_v10 }
 0x13b   :  { %72 = vst.msk [vmem:[#allocation2] sm:$0xff] %vm26_vm0, %v70_v32  ;;  %v62_v34 = vmul.f32 %v175_v27, %v53_v33 }
 0x13d   :  { %v71_v35 = vadd.f32 %v176_v29, %v62_v34 }
 0x13f   :  { %73 = vst.msk [vmem:[#allocation2 + $0x8] sm:$0xff] %vm26_vm0, %v71_v35 }
 0x142   :  { %v74_v36 = vld [vmem:[#allocation2] sm:$0xff] }
 0x143   :  { %194 = vmatprep.mubr.msk.f32.mxu0 %vm26_vm0, %v74_v36 }
 0x146   :  { %v75_v37 = vld [vmem:[#allocation2 + $0x8] sm:$0xff] }
 0x147   :  { %195 = vmatmul.mubr.msk.f32.vlgmr.msra.gmra.mrb[0].mxu0 %vm26_vm0, %v75_v37 }
 0x21a   :  { %v196_v39 = vpop.f32.mrb[0].mxu0 }
 0x21b   :  { %v166_v40 = vadd.f32 %v196_v39, %v177_v38  ;;  %v160_v41 = vpop.f32.mrb[1].mxu0 }
 0x21c   :  { %v161_v42 = vadd.f32 %v177_v38, %v160_v41 }
 0x21d   :  { %170 = vst [vmem:[%s285_s5 + $0x8] sm:$0xff] %v166_v40 }
 0x21e   :  { %169 = vst [vmem:[%s285_s5] sm:$0xff] %v161_v42 }

// kernel: transformer_forward.40
= control target key start
LH: loop header
LB: loop body
LE: loop exit
PB: predicated region body
PF: predicated region fallthrough
CT: control target
= control target key end

     0   :  { %s1419_s12 = smov 0   ;;  %s1421_s13 = smov 0   ;;  %s1581_s0 = inlined_call_operand.vmem [shape: f32[2,8,96], index: 0, kind: input, shape index: {}, may-alias: {0,1}]   ;;  %s1582_s1 = inlined_call_operand.vmem [shape: f32[2,8,96], index: 1, kind: input, shape index: {}, may-alias: {0,1}]   ;;  %s1583_s2 = inlined_call_operand.vmem [shape: f32[1,8,8], index: 2, kind: input, shape index: {}]   ;;  %s1584_s3 = inlined_call_operand.vmem [shape: f32[2,8,32], index: 3, kind: output, shape index: {}]  }
   0x1   :  { %s1423_s14 = smov 0  }
   0x2 LB: > { %s32_s15 = sadd.s32 1, %s1375_s13  ;;  %p1215_p0 = scmp.ge.s32.totalorder %s1379_s14, 1  ;;  %s1379_s14 = sphi %s1423_s14, %s13_s14   ;;  %s1375_s13 = sphi %s1421_s13, %s1586_s13   ;;  %s1371_s12 = sphi %s1419_s12, %s1585_s12  }
   0x3   : > { %p34_p1 = scmp.ge.s32.totalorder %s32_s15, 2  ;;  %p190_p2 = scmp.lt.s32.totalorder %s1379_s14, 3 }
   0x5   : > { %s1588_s15 = smov (%p34_p1, %s32_s15), 0  ;;  %p191_p3 = pnand %p1215_p0, %p190_p2 }
   0x6   : > { %p232_p4 = scmp.lt.s32.totalorder (!%p191_p3), %s1371_s12, 1  ;;  %vm264_vm0 = vcmask (!%p191_p3), 64512   ;;  %v1381_v0 = vmov (!%p191_p3), 0.0   ;;  %vm1382_vm1 = vmmov (!%p191_p3), 0   ;;  %s1383_s20 = smov (!%p191_p3), 96   ;;  %vm269_vm2 = vcmask (!%p191_p3), 7168  }
   0x7   : > { %194 = sbr.rel (%p191_p3) target bundleno = 1563 (0x61b), region = 32  ;;  %1249 = vmatprep.subr.mxu0 (!%p191_p3), %v1381_v0  ;;  %265 = vst.msk [vmem:[#allocation2] sm:$0xff] (!%p191_p3), %vm264_vm0, %v1381_v0  ;;  %266 = vst.msk [vmem:[#allocation2 + $0x8] sm:$0xff] (!%p191_p3), %vm264_vm0, %v1381_v0  ;;  %1251 = vmatprep.mubr.msk.f32.mxu0 (!%p191_p3), %vm1382_vm1, %v1381_v0  ;;  %v1384_v5 = vmov (!%p191_p3), -1e+30   ;;  %v1484_v6 = vld [vmem:[%s1583_s2] sm:$0xff] (!%p191_p3) }
   0x8   : > { %267 = vst.msk [vmem:[#allocation2 + $0x10] sm:$0xff] (!%p191_p3), %vm264_vm0, %v1381_v0  ;;  %268 = vst.msk [vmem:[#allocation2 + $0x18] sm:$0xff] (!%p191_p3), %vm264_vm0, %v1381_v0  ;;  %1254 = vmatprep.subr.mxu1 (!%p191_p3), %v1381_v0  ;;  %1256 = vmatprep.mubr.msk.f32.mxu1 (!%p191_p3), %vm1382_vm1, %v1381_v0  ;;  %v1385_v11 = vmov (!%p191_p3), 0   ;;  %s1386_s26 = smov (!%p191_p3), 64   ;;  %s1387_s27 = smov (!%p191_p3), 88   ;;  %vm1067_vm3 = vcmask (!%p191_p3), 130112  }
   0x9   : > { %270 = vst.msk [vmem:[#allocation3] sm:$0xff] (!%p191_p3), %vm269_vm2, %v1384_v5  ;;  %271 = vst.msk [vmem:[#allocation3 + $0x8] sm:$0xff] (!%p191_p3), %vm269_vm2, %v1384_v5  ;;  %1331 = vset.pattern.permute.xlu1 (!%p191_p3), %v1385_v11  ;;  %1332 = vset.pattern.permute.xlu0 (!%p191_p3), %v1385_v11  ;;  %s1388_s28 = smov (!%p191_p3), 120   ;;  %s1389_s29 = smov (!%p191_p3), 80   ;;  %vm1082_vm4 = vcmask (!%p191_p3), 195712   ;;  %vm1097_vm5 = vcmask (!%p191_p3), 261312  }
   0xa   : > { %272 = vst.msk [vmem:[#allocation3 + $0x10] sm:$0xff] (!%p191_p3), %vm269_vm2, %v1384_v5  ;;  %273 = vst.msk [vmem:[#allocation3 + $0x18] sm:$0xff] (!%p191_p3), %vm269_vm2, %v1384_v5  ;;  %s1390_s30 = smov (!%p191_p3), 112   ;;  %s1391_s4 = smov (!%p191_p3), 72  }
   0xb   : > { %274 = vst.msk [vmem:[#allocation4] sm:$0xff] (!%p191_p3), %vm269_vm2, %v1381_v0  ;;  %275 = vst.msk [vmem:[#allocation4 + $0x8] sm:$0xff] (!%p191_p3), %vm269_vm2, %v1381_v0  ;;  %s1392_s5 = smov (!%p191_p3), 104   ;;  %s1393_s6 = smov (!%p191_p3), 56  }
   0xc   : > { %276 = vst.msk [vmem:[#allocation4 + $0x10] sm:$0xff] (!%p191_p3), %vm269_vm2, %v1381_v0  ;;  %277 = vst.msk [vmem:[#allocation4 + $0x18] sm:$0xff] (!%p191_p3), %vm269_vm2, %v1381_v0  ;;  %s1394_s7 = smov (!%p191_p3), 40   ;;  %s1395_s8 = smov (!%p191_p3), 48  }
   0xd   : > { %s1398_s17 = smov (!%p191_p3), 24  }
   0xe   : > { %s1590_s12 = smov (!%p232_p4, %s1371_s12), 1 }
   0xf   : > { %s1451_s16 = sshll.u32 %s1590_s12, 3  ;;  %s1396_s12 = smov 8  }
  0x10   : > { %s245_s19 = scalar_lea.vmem %s1582_s1, %s1451_s16  ;;  %s238_s23 = scalar_lea.vmem %s1581_s0, %s1451_s16  ;;  %v1488_v12 = vld [vmem:[#allocation3] sm:$0xff]  ;;  %v550_v41 = vld [vmem:[#allocation3 + $0x8] sm:$0xff] }
  0x11   : > { %v1457_v1 = vld [vmem:[%s245_s19] sm:$0xff]  ;;  %v1526_v44 = vld [vmem:[#allocation3 + $0x10] sm:$0xff]  ;;  %v930_v49 = vld [vmem:[#allocation3 + $0x18] sm:$0xff]  ;;  %s1562_s11 = scalar_lea.vmem %s1584_s3, %s1451_s16  ;;  %s1397_s16 = smov 16  }
  0x12   : > { %283 = vrot.lane.b32.xlu0 %v1457_v1, %s1383_s20  ;;  %v278_v2 = vld [vmem:[%s238_s23] sm:$0xff] }
  0x13   : > { %v279_v4 = vmul.f32 0.35355338, %v278_v2 }
  0x84   : > { %v284_v3 = vpop.permute.xlu0 %283 }
  0x85   : > { %1250 = vmatpush3.xpose.msk.msra.mxu0 %vm264_vm0, %v284_v3 }
  0x86   : > { %1264 = vmatprep.subr.mxu0 %v1381_v0 }
  0x88   : > { %1252 = vmatmul.mubr.msk.f32.vlgmr.msra.gmra.mrb[0].mxu0 %vm264_vm0, %v279_v4 }
  0x89   : > { %1266 = vmatprep.mubr.msk.f32.mxu0 %vm1382_vm1, %v1381_v0 }
 0x15b   : > { %v357_v7 = vpop.f32.mrb[0].mxu0 }
 0x15c   : > { %v358_v8 = vadd.f32 %v357_v7, %v1484_v6  ;;  %v1253_v9 = vpop.f32.mrb[1].mxu0 }
 0x15e   : > { %v362_v10 = vsel %vm264_vm0, %v358_v8, -inf }
 0x15f   : > { %363 = vmax.xlane.f32.xlu0 %v362_v10 }
 0x1ec   : > { %v364_v13 = vpop.xlane.xlu0 %363 }
 0x1ed   : > { %v1491_v14 = vmax.f32 %v1488_v12, %v364_v13 }
 0x1ef   : > { %v366_v15 = vsub.f32 %v1488_v12, %v1491_v14  ;;  %470 = vst.msk [vmem:[#allocation3] sm:$0xff] %vm269_vm2, %v1491_v14  ;;  %371 = vperm.xlu1 %1331, %v1491_v14   ;;  %v567_v12 = vld [vmem:[#allocation4 + $0x8] sm:$0xff] }
 0x1f1   : > { %v367_v11 = vmul.f32 1.442695, %v366_v15 }
 0x1f3   : > { %392 = vrot.lane.b32.xlu1 %v1457_v1, %s1386_s26 }
 0x1f7   : > { %473 = vrot.lane.b32.xlu1 %v1457_v1, %s1387_s27 }
 0x1fb   : > { %471 = vrot.lane.b32.xlu1 %v279_v4, %s1388_s28 }
 0x1ff   : > { %663 = vrot.lane.b32.xlu1 %v1457_v1, %s1389_s29 }
 0x203   : > { %661 = vrot.lane.b32.xlu1 %v279_v4, %s1390_s30 }
 0x207   : > { %853 = vrot.lane.b32.xlu1 %v1457_v1, %s1391_s4 }
 0x20b   : > { %851 = vrot.lane.b32.xlu1 %v279_v4, %s1392_s5 }
 0x26e   : > { %v372_v16 = vpop.permute.xlu1 %371 }
 0x26f   : > { %v374_v17 = vsub.f32 %v358_v8, %v372_v16 }
 0x271   : > { %v375_v18 = vmul.f32 1.442695, %v374_v17 }
 0x272   : > { %v393_v19 = vpop.permute.xlu1 %392 }
 0x273   : > { %1333 = vpow2.f32 %v375_v18  ;;  %1255 = vmatpush3.msra.mxu1 %v393_v19  ;;  %v377_v19 = vld [vmem:[#allocation4] sm:$0xff] }
 0x274   : > { %1259 = vmatprep.subr.mxu1 %v1381_v0 }
 0x276   : > { %v474_v20 = vpop.permute.xlu1 %473 }
 0x27a   : > { %v472_v21 = vpop.permute.xlu1 %471 }
 0x27d   : > { %v1334_v22 = vpop.eup %1333 }
 0x27e   : > { %1257 = vmatmul.mubr.msk.f32.vlgmr.msra.gmra.mrb[0].mxu1 %vm264_vm0, %v1334_v22  ;;  %v664_v23 = vpop.permute.xlu1 %663  ;;  %v379_v53 = vsel %vm264_vm0, %v1334_v22, 0.0 }
 0x27f   : > { %1260 = vmatpush3.xpose.msk.msra.mxu1 %vm264_vm0, %v474_v20  ;;  %1261 = vmatprep.mubr.msk.f32.mxu1 %vm1382_vm1, %v1381_v0 }
 0x280   : > { %1269 = vmatprep.subr.mxu1 %v1381_v0 }
 0x282   : > { %1262 = vmatmul.mubr.msk.f32.vlgmr.msra.gmra.mrb[2].mxu1 %vm264_vm0, %v472_v21  ;;  %v662_v24 = vpop.permute.xlu1 %661 }
 0x283   : > { %1270 = vmatpush3.xpose.msk.msra.mxu1 %vm264_vm0, %v664_v23  ;;  %1271 = vmatprep.mubr.msk.f32.mxu1 %vm1382_vm1, %v1381_v0 }
 0x284   : > { %1279 = vmatprep.subr.mxu1 %v1381_v0 }
 0x286   : > { %1272 = vmatmul.mubr.msk.f32.vlgmr.msra.gmra.mrb[4].mxu1 %vm264_vm0, %v662_v24  ;;  %v854_v25 = vpop.permute.xlu1 %853  ;;  %v757_v24 = vld [vmem:[#allocation4 + $0x10] sm:$0xff] }
 0x287   : > { %1280 = vmatpush3.xpose.msk.msra.mxu1 %vm264_vm0, %v854_v25  ;;  %1281 = vmatprep.mubr.msk.f32.mxu1 %vm1382_vm1, %v1381_v0 }
 0x28a   : > { %v852_v26 = vpop.permute.xlu1 %851 }
 0x28b   : > { %1282 = vmatmul.mubr.msk.f32.vlgmr.msra.gmra.mrb[6].mxu1 %vm264_vm0, %v852_v26 }
 0x351   : > { %v1518_v27 = vpop.f32.mrb[0].mxu1 }
 0x352   : > { %v1258_v28 = vpop.f32.mrb[1].mxu1 }
 0x355   : > { %v545_v29 = vpop.f32.mrb[2].mxu1 }
 0x356   : > { %v546_v30 = vadd.f32 %v545_v29, %v1484_v6  ;;  %v1263_v31 = vpop.f32.mrb[3].mxu1 }
 0x358   : > { %v551_v32 = vsel %vm264_vm0, %v546_v30, -inf }
 0x359   : > { %552 = vmax.xlane.f32.xlu1 %v551_v32  ;;  %v735_v33 = vpop.f32.mrb[4].mxu1 }
 0x35a   : > { %v736_v34 = vadd.f32 %v735_v33, %v1484_v6  ;;  %v1273_v35 = vpop.f32.mrb[5].mxu1 }
 0x35c   : > { %v741_v36 = vsel %vm264_vm0, %v736_v34, -inf }
 0x35d   : > { %742 = vmax.xlane.f32.xlu0 %v741_v36  ;;  %v385_v36 = vld [vmem:[#allocation2] sm:$0xff] }
 0x35e   : > { %v925_v37 = vpop.f32.mrb[6].mxu1 }
 0x35f   : > { %v926_v38 = vadd.f32 %v925_v37, %v1484_v6  ;;  %v1283_v39 = vpop.f32.mrb[7].mxu1 }
 0x361   : > { %v931_v40 = vsel %vm264_vm0, %v926_v38, -inf }
 0x362   : > { %932 = vmax.xlane.f32.xlu0 %v931_v40 }
 0x3e6   : > { %v553_v42 = vpop.xlane.xlu1 %552 }
 0x3e7   : > { %v554_v43 = vmax.f32 %v550_v41, %v553_v42 }
 0x3e9   : > { %v555_v45 = vsub.f32 %v550_v41, %v554_v43  ;;  %660 = vst.msk [vmem:[#allocation3 + $0x8] sm:$0xff] %vm269_vm2, %v554_v43  ;;  %560 = vperm.xlu0 %1332, %v554_v43  }
 0x3ea   : > { %v743_v46 = vpop.xlane.xlu0 %742 }
 0x3eb   : > { %v744_v47 = vmax.f32 %v1526_v44, %v743_v46  ;;  %v556_v7 = vmul.f32 1.442695, %v555_v45 }
 0x3ed   : > { %v745_v48 = vsub.f32 %v1526_v44, %v744_v47  ;;  %850 = vst.msk [vmem:[#allocation3 + $0x10] sm:$0xff] %vm269_vm2, %v744_v47  ;;  %750 = vperm.xlu1 %1331, %v744_v47   ;;  %582 = vrot.lane.b32.xlu0 %v1457_v1, %s1393_s6  ;;  %v575_v47 = vld [vmem:[#allocation2 + $0x8] sm:$0xff] }
 0x3ef   : > { %v933_v50 = vpop.xlane.xlu0 %932  ;;  %v746_v16 = vmul.f32 1.442695, %v745_v48  ;;  %v765_v48 = vld [vmem:[#allocation2 + $0x10] sm:$0xff] }
 0x3f0   : > { %v934_v51 = vmax.f32 %v930_v49, %v933_v50 }
 0x3f1   : > { %962 = vrot.lane.b32.xlu0 %v1457_v1, %s1394_s7 }
 0x3f2   : > { %v935_v52 = vsub.f32 %v930_v49, %v934_v51  ;;  %1040 = vst.msk [vmem:[#allocation3 + $0x18] sm:$0xff] %vm269_vm2, %v934_v51  ;;  %940 = vperm.xlu1 %1331, %v934_v51  }
 0x3f4   : > { %v936_v10 = vmul.f32 1.442695, %v935_v52 }
 0x3f6   : > { %772 = vrot.lane.b32.xlu1 %v1457_v1, %s1395_s8 }
 0x41a   : > { %380 = vadd.xlane.f32.xlu1 %v379_v53 }
 0x468   : > { %v561_v54 = vpop.permute.xlu0 %560 }
 0x469   : > { %v563_v55 = vsub.f32 %v546_v30, %v561_v54  ;;  %v947_v30 = vld [vmem:[#allocation4 + $0x18] sm:$0xff] }
 0x46b   : > { %v564_v56 = vmul.f32 1.442695, %v563_v55  ;;  %v955_v55 = vld [vmem:[#allocation2 + $0x18] sm:$0xff] }
 0x46c   : > { %v751_v57 = vpop.permute.xlu1 %750  ;;  %v583_v58 = vpop.permute.xlu0 %582 }
 0x46d   : > { %1335 = vpow2.f32 %v564_v56  ;;  %v753_v59 = vsub.f32 %v736_v34, %v751_v57  ;;  %1265 = vmatpush3.msra.mxu0 %v583_v58 }
 0x46e   : > { %1274 = vmatprep.subr.mxu0 %v1381_v0 }
 0x46f   : > { %v754_v60 = vmul.f32 1.442695, %v753_v59 }
 0x470   : > { %v963_v4 = vpop.permute.xlu0 %962 }
 0x471   : > { %1337 = vpow2.f32 %v754_v60  ;;  %v941_v61 = vpop.permute.xlu1 %940 }
 0x472   : > { %v943_v62 = vsub.f32 %v926_v38, %v941_v61 }
 0x474   : > { %v944_v63 = vmul.f32 1.442695, %v943_v62 }
 0x475   : > { %v773_v1 = vpop.permute.xlu1 %772 }
 0x476   : > { %1339 = vpow2.f32 %v944_v63 }
 0x477   : > { %v1336_v2 = vpop.eup %1335  ;;  %1341 = vpow2.f32 %v556_v7 }
 0x478   : > { %1267 = vmatmul.mubr.msk.f32.vlgmr.msra.gmra.mrb[2].mxu0 %vm264_vm0, %v1336_v2  ;;  %v569_v3 = vsel %vm264_vm0, %v1336_v2, 0.0  ;;  %1343 = vpow2.f32 %v936_v10 }
 0x479   : > { %570 = vadd.xlane.f32.xlu0 %v569_v3  ;;  %1275 = vmatpush3.msra.mxu0 %v773_v1  ;;  %1345 = vpow2.f32 %v367_v11 }
 0x47a   : > { %1276 = vmatprep.mubr.msk.f32.mxu0 %vm1382_vm1, %v1381_v0  ;;  %1284 = vmatprep.subr.mxu0 %v1381_v0  ;;  %1347 = vpow2.f32 %v746_v16 }
 0x47b   : > { %v1338_v5 = vpop.eup %1337 }
 0x47c   : > { %1277 = vmatmul.mubr.msk.f32.vlgmr.msra.gmra.mrb[4].mxu0 %vm264_vm0, %v1338_v5  ;;  %v759_v6 = vsel %vm264_vm0, %v1338_v5, 0.0 }
 0x47d   : > { %760 = vadd.xlane.f32.xlu1 %v759_v6  ;;  %1285 = vmatpush3.msra.mxu0 %v963_v4 }
 0x47e   : > { %1286 = vmatprep.mubr.msk.f32.mxu0 %vm1382_vm1, %v1381_v0 }
 0x480   : > { %v1340_v8 = vpop.eup %1339 }
 0x481   : > { %1287 = vmatmul.mubr.msk.f32.vlgmr.msra.gmra.mrb[6].mxu0 %vm264_vm0, %v1340_v8  ;;  %v949_v9 = vsel %vm264_vm0, %v1340_v8, 0.0  ;;  %v1342_v13 = vpop.eup %1341 }
 0x482   : > { %950 = vadd.xlane.f32.xlu0 %v949_v9  ;;  %v1344_v17 = vpop.eup %1343  ;;  %v568_v14 = vmul.f32 %v1342_v13, %v567_v12 }
 0x483   : > { %v1346_v0 = vpop.eup %1345  ;;  %v948_v31 = vmul.f32 %v1344_v17, %v947_v30 }
 0x484   : > { %v1348_v18 = vpop.eup %1347  ;;  %v378_v20 = vmul.f32 %v1346_v0, %v377_v19 }
 0x485   : > { %v758_v26 = vmul.f32 %v1348_v18, %v757_v24 }
 0x48e   : > { %578 = vperm.xlu1 %1331, %v1342_v13  }
 0x492   : > { %958 = vperm.xlu1 %1331, %v1344_v17  }
 0x498   : > { %388 = vperm.xlu0 %1332, %v1346_v0  }
 0x49c   : > { %768 = vperm.xlu0 %1332, %v1348_v18  }
 0x4a7   : > { %v381_v21 = vpop.xlane.xlu1 %380 }
 0x4a8   : > { %v382_v22 = vadd.f32 %v381_v21, %v378_v20 }
 0x4aa   : > { %384 = vst.msk [vmem:[#allocation4] sm:$0xff] %vm269_vm2, %v382_v22 }
 0x4b1   : > { %v1045_v23 = vld [vmem:[#allocation4] sm:$0xff] }
 0x4b2   : > { %1048 = vperm.xlu1 %1331, %v1045_v23  }
 0x506   : > { %v571_v15 = vpop.xlane.xlu0 %570 }
 0x507   : > { %v572_v25 = vadd.f32 %v571_v15, %v568_v14 }
 0x509   : > { %573 = vst.msk [vmem:[#allocation4 + $0x8] sm:$0xff] %vm269_vm2, %v572_v25 }
 0x50a   : > { %v761_v28 = vpop.xlane.xlu1 %760 }
 0x50b   : > { %v762_v29 = vadd.f32 %v761_v28, %v758_v26 }
 0x50d   : > { %763 = vst.msk [vmem:[#allocation4 + $0x10] sm:$0xff] %vm269_vm2, %v762_v29 }
 0x50e   : > { %v579_v41 = vpop.permute.xlu1 %578 }
 0x50f   : > { %v951_v32 = vpop.xlane.xlu0 %950 }
 0x510   : > { %v952_v33 = vadd.f32 %v951_v32, %v948_v31  ;;  %v1055_v34 = vld [vmem:[#allocation4 + $0x8] sm:$0xff] }
 0x511   : > { %1058 = vperm.xlu0 %1332, %v1055_v34  }
 0x512   : > { %953 = vst.msk [vmem:[#allocation4 + $0x18] sm:$0xff] %vm269_vm2, %v952_v33  ;;  %v959_v42 = vpop.permute.xlu1 %958 }
 0x513   : > { %v961_v58 = vmul.f32 %v959_v42, %v955_v55 }
 0x514   : > { %v1070_v35 = vld [vmem:[#allocation4 + $0x10] sm:$0xff] }
 0x515   : > { %1073 = vperm.xlu0 %1332, %v1070_v35  }
 0x517   : > { %v389_v37 = vpop.permute.xlu0 %388 }
 0x518   : > { %v391_v38 = vmul.f32 %v389_v37, %v385_v36 }
 0x519   : > { %v1085_v39 = vld [vmem:[#allocation4 + $0x18] sm:$0xff] }
 0x51a   : > { %v468_v40 = vadd.f32 %v1518_v27, %v391_v38  ;;  %1088 = vperm.xlu1 %1331, %v1085_v39   ;;  %v581_v27 = vmul.f32 %v579_v41, %v575_v47 }
 0x51b   : > { %v769_v49 = vpop.permute.xlu0 %768 }
 0x51c   : > { %469 = vst.msk [vmem:[#allocation2] sm:$0xff] %vm264_vm0, %v468_v40  ;;  %v771_v53 = vmul.f32 %v769_v49, %v765_v48 }
 0x523   : > { %v1044_v45 = vld [vmem:[#allocation2] sm:$0xff] }
 0x531   : > { %v1049_v43 = vpop.permute.xlu1 %1048 }
 0x532   : > { %1349 = vrcp.f32 %v1049_v43 }
 0x53c   : > { %v1350_v44 = vpop.eup %1349 }
 0x53d   : > { %v1052_v46 = vmul.f32 %v1350_v44, %v1044_v45 }
 0x53f   : > { %1053 = vst.msk [vmem:[%s1562_s11] sm:$0xff] %vm264_vm0, %v1052_v46 }
 0x54b   : > { %v654_v50 = vpop.f32.mrb[2].mxu0 }
 0x54c   : > { %v658_v51 = vadd.f32 %v654_v50, %v581_v27  ;;  %v1268_v52 = vpop.f32.mrb[3].mxu0 }
 0x54e   : > { %659 = vst.msk [vmem:[#allocation2 + $0x8] sm:$0xff] %vm264_vm0, %v658_v51 }
 0x54f   : > { %v844_v54 = vpop.f32.mrb[4].mxu0 }
 0x550   : > { %v848_v56 = vadd.f32 %v844_v54, %v771_v53  ;;  %v1278_v57 = vpop.f32.mrb[5].mxu0 }
 0x552   : > { %849 = vst.msk [vmem:[#allocation2 + $0x10] sm:$0xff] %vm264_vm0, %v848_v56 }
 0x554   : > { %v1034_v59 = vpop.f32.mrb[6].mxu0 }
 0x555   : > { %v1038_v60 = vadd.f32 %v1034_v59, %v961_v58  ;;  %v1288_v61 = vpop.f32.mrb[7].mxu0  ;;  %v1054_v3 = vld [vmem:[#allocation2 + $0x8] sm:$0xff] }
 0x557   : > { %1039 = vst.msk [vmem:[#allocation2 + $0x18] sm:$0xff] %vm264_vm0, %v1038_v60 }
 0x559   : > { %v1069_v6 = vld [vmem:[#allocation2 + $0x10] sm:$0xff] }
 0x55e   : > { %v1084_v9 = vld [vmem:[#allocation2 + $0x18] sm:$0xff] }
 0x590   : > { %v1059_v62 = vpop.permute.xlu0 %1058 }
 0x591   : > { %1351 = vrcp.f32 %v1059_v62 }
 0x594   : > { %v1074_v63 = vpop.permute.xlu0 %1073 }
 0x595   : > { %1353 = vrcp.f32 %v1074_v63 }
 0x599   : > { %v1089_v1 = vpop.permute.xlu1 %1088 }
 0x59a   : > { %1355 = vrcp.f32 %v1089_v1 }
 0x59b   : > { %v1352_v2 = vpop.eup %1351 }
 0x59c   : > { %v1062_v4 = vmul.f32 %v1352_v2, %v1054_v3 }
 0x59e   : > { %1064 = vrot.lane.b32.xlu1 %v1062_v4, %s1396_s12 }
 0x59f   : > { %v1354_v5 = vpop.eup %1353 }
 0x5a0   : > { %v1077_v7 = vmul.f32 %v1354_v5, %v1069_v6 }
 0x5a2   : > { %1079 = vrot.lane.b32.xlu0 %v1077_v7, %s1397_s16 }
 0x5a4   : > { %v1356_v8 = vpop.eup %1355 }
 0x5a5   : > { %v1092_v10 = vmul.f32 %v1356_v8, %v1084_v9 }
 0x5a7   : > { %1094 = vrot.lane.b32.xlu1 %v1092_v10, %s1398_s17 }
 0x610   : > { %v1065_v11 = vpop.permute.xlu1 %1064 }
 0x611   : > { %1068 = vst.msk [vmem:[%s1562_s11] sm:$0xff] %vm1067_vm3, %v1065_v11 }
 0x614   : > { %v1080_v13 = vpop.permute.xlu0 %1079 }
 0x615   : > { %1083 = vst.msk [vmem:[%s1562_s11] sm:$0xff] %vm1082_vm4, %v1080_v13 }
 0x619   : > { %v1095_v16 = vpop.permute.xlu1 %1094 }
 0x61a   : > { %1098 = vst.msk [vmem:[%s1562_s11] sm:$0xff] %vm1097_vm5, %v1095_v16 }
 0x61b PF: > { %s13_s14 = sadd.s32 1, %s1379_s14   ;;  %s1585_s12 = smov %s1375_s13 }
 0x61c   : > { %p10_p5 = scmp.ge.s32.totalorder %s13_s14, 4   ;;  %s1586_s13 = smov %s1588_s15 }
 0x61e   :  { %12 = sbr.rel (!%p10_p5) target bundleno = 2 (0x2), region = 85 }

// kernel: transformer_forward.44
= control target key start
LH: loop header
LB: loop body
LE: loop exit
PB: predicated region body
PF: predicated region fallthrough
CT: control target
= control target key end

     0   :  { %s1405_s12 = smov 0   ;;  %s1407_s13 = smov 0   ;;  %s1572_s0 = inlined_call_operand.vmem [shape: f32[2,8,32], index: 0, kind: input, shape index: {}]   ;;  %s1573_s1 = inlined_call_operand.vmem [shape: f32[2,8,64], index: 1, kind: input, shape index: {}]   ;;  %s1574_s2 = inlined_call_operand.vmem [shape: f32[2,1,8], index: 2, kind: input, shape index: {}]   ;;  %s1575_s3 = inlined_call_operand.vmem [shape: f32[2,8,32], index: 3, kind: output, shape index: {}]  }
   0x1   :  { %s1409_s14 = smov 0  }
   0x2 LB: > { %s32_s15 = sadd.s32 1, %s1365_s13  ;;  %p1208_p0 = scmp.ge.s32.totalorder %s1369_s14, 1  ;;  %s1369_s14 = sphi %s1409_s14, %s13_s14   ;;  %s1365_s13 = sphi %s1407_s13, %s1577_s13   ;;  %s1361_s12 = sphi %s1405_s12, %s1576_s12  }
   0x3   : > { %p34_p1 = scmp.ge.s32.totalorder %s32_s15, 2  ;;  %p189_p2 = scmp.lt.s32.totalorder %s1369_s14, 3 }
   0x5   : > { %s1579_s15 = smov (%p34_p1, %s32_s15), 0  ;;  %p190_p3 = pnand %p1208_p0, %p189_p2 }
   0x6   : > { %p230_p4 = scmp.lt.s32.totalorder (!%p190_p3), %s1361_s12, 1  ;;  %vm261_vm0 = vcmask (!%p190_p3), 64512   ;;  %v1371_v0 = vmov (!%p190_p3), 0.0   ;;  %vm1372_vm1 = vmmov (!%p190_p3), 0   ;;  %vm266_vm2 = vcmask (!%p190_p3), 7168   ;;  %s1375_s26 = smov (!%p190_p3), 96  }
   0x7   : > { %193 = sbr.rel (%p190_p3) target bundleno = 1447 (0x5a7), region = 32  ;;  %1243 = vmatprep.subr.mxu0 (!%p190_p3), %v1371_v0  ;;  %262 = vst.msk [vmem:[#allocation2] sm:$0xff] (!%p190_p3), %vm261_vm0, %v1371_v0  ;;  %263 = vst.msk [vmem:[#allocation2 + $0x8] sm:$0xff] (!%p190_p3), %vm261_vm0, %v1371_v0  ;;  %1245 = vmatprep.mubr.msk.f32.mxu0 (!%p190_p3), %vm1372_vm1, %v1371_v0  ;;  %v1373_v4 = vmov (!%p190_p3), -1e+30   ;;  %v1374_v10 = vmov (!%p190_p3), 0  }
   0x8   : > { %264 = vst.msk [vmem:[#allocation2 + $0x10] sm:$0xff] (!%p190_p3), %vm261_vm0, %v1371_v0  ;;  %265 = vst.msk [vmem:[#allocation2 + $0x18] sm:$0xff] (!%p190_p3), %vm261_vm0, %v1371_v0  ;;  %1248 = vmatprep.subr.mxu1 (!%p190_p3), %v1371_v0  ;;  %1250 = vmatprep.mubr.msk.f32.mxu1 (!%p190_p3), %vm1372_vm1, %v1371_v0  ;;  %s1376_s27 = smov (!%p190_p3), 120   ;;  %s1377_s28 = smov (!%p190_p3), 112   ;;  %vm1068_vm3 = vcmask (!%p190_p3), 130112   ;;  %vm1083_vm4 = vcmask (!%p190_p3), 195712  }
   0x9   : > { %267 = vst.msk [vmem:[#allocation3] sm:$0xff] (!%p190_p3), %vm266_vm2, %v1373_v4  ;;  %268 = vst.msk [vmem:[#allocation3 + $0x8] sm:$0xff] (!%p190_p3), %vm266_vm2, %v1373_v4  ;;  %1321 = vset.pattern.permute.xlu0 (!%p190_p3), %v1374_v10  ;;  %1322 = vset.pattern.permute.xlu1 (!%p190_p3), %v1374_v10  ;;  %s1378_s29 = smov (!%p190_p3), 104   ;;  %s1379_s30 = smov (!%p190_p3), 88   ;;  %vm1098_vm5 = vcmask (!%p190_p3), 261312  }
   0xa   : > { %269 = vst.msk [vmem:[#allocation3 + $0x10] sm:$0xff] (!%p190_p3), %vm266_vm2, %v1373_v4  ;;  %270 = vst.msk [vmem:[#allocation3 + $0x18] sm:$0xff] (!%p190_p3), %vm266_vm2, %v1373_v4  ;;  %s1380_s4 = smov (!%p190_p3), 80   ;;  %s1381_s5 = smov (!%p190_p3), 72  }
   0xb   : > { %271 = vst.msk [vmem:[#allocation4] sm:$0xff] (!%p190_p3), %vm266_vm2, %v1371_v0  ;;  %272 = vst.msk [vmem:[#allocation4 + $0x8] sm:$0xff] (!%p190_p3), %vm266_vm2, %v1371_v0  ;;  %s1382_s9 = smov (!%p190_p3), 8   ;;  %s1383_s10 = smov (!%p190_p3), 16  }
   0xc   : > { %273 = vst.msk [vmem:[#allocation4 + $0x10] sm:$0xff] (!%p190_p3), %vm266_vm2, %v1371_v0  ;;  %274 = vst.msk [vmem:[#allocation4 + $0x18] sm:$0xff] (!%p190_p3), %vm266_vm2, %v1371_v0  ;;  %s1384_s11 = smov (!%p190_p3), 24  }
   0xe   : > { %s1581_s12 = smov (!%p230_p4, %s1361_s12), 1 }
   0xf   : > { %s1437_s16 = sshll.u32 %s1581_s12, 3  ;;  %s249_s25 = scalar_lea.vmem %s1574_s2, %s1581_s12 }
  0x10   : > { %s243_s19 = scalar_lea.vmem %s1573_s1, %s1437_s16  ;;  %s236_s22 = scalar_lea.vmem %s1572_s0, %s1437_s16  ;;  %v1470_v5 = vld [vmem:[%s249_s25] ss:$0 sm:$0xff]  ;;  %v1512_v40 = vld [vmem:[#allocation3 + $0x8] sm:$0xff] }
  0x11   : > { %v1447_v1 = vld [vmem:[%s243_s19] sm:$0xff]  ;;  %v741_v43 = vld [vmem:[#allocation3 + $0x10] sm:$0xff]  ;;  %v931_v47 = vld [vmem:[#allocation3 + $0x18] sm:$0xff]  ;;  %s1553_s8 = scalar_lea.vmem %s1575_s3, %s1437_s16 }
  0x12   : > { %v275_v2 = vld [vmem:[%s236_s22] sm:$0xff]  ;;  %1244 = vmatpush3.xpose.msk.msra.mxu0 %vm261_vm0, %v1447_v1  ;;  %393 = vrot.lane.b32.xlu1 %v1447_v1, %s1375_s26 }
  0x13   : > { %v276_v3 = vmul.f32 0.35355338, %v275_v2  ;;  %1258 = vmatprep.subr.mxu0 %v1371_v0  ;;  %v1478_v11 = vld [vmem:[#allocation3] sm:$0xff] }
  0x15   : > { %1246 = vmatmul.mubr.msk.f32.vlgmr.msra.gmra.mrb[0].mxu0 %vm261_vm0, %v276_v3 }
  0x16   : > { %1260 = vmatprep.mubr.msk.f32.mxu0 %vm1372_vm1, %v1371_v0  ;;  %474 = vrot.lane.b32.xlu1 %v1447_v1, %s1376_s27 }
  0x1a   : > { %472 = vrot.lane.b32.xlu1 %v276_v3, %s1376_s27 }
  0x1e   : > { %664 = vrot.lane.b32.xlu1 %v1447_v1, %s1377_s28 }
  0x22   : > { %662 = vrot.lane.b32.xlu1 %v276_v3, %s1377_s28 }
  0x26   : > { %854 = vrot.lane.b32.xlu1 %v1447_v1, %s1378_s29 }
  0x2a   : > { %852 = vrot.lane.b32.xlu1 %v276_v3, %s1378_s29 }
  0x84   : > { %v394_v15 = vpop.permute.xlu1 %393 }
  0x85   : > { %1249 = vmatpush3.msra.mxu1 %v394_v15 }
  0x86   : > { %1253 = vmatprep.subr.mxu1 %v1371_v0 }
  0x88   : > { %v475_v16 = vpop.permute.xlu1 %474 }
  0x8c   : > { %v473_v19 = vpop.permute.xlu1 %472 }
  0x90   : > { %v665_v21 = vpop.permute.xlu1 %664 }
  0x94   : > { %v663_v22 = vpop.permute.xlu1 %662 }
  0x98   : > { %v855_v24 = vpop.permute.xlu1 %854 }
  0x9c   : > { %v853_v25 = vpop.permute.xlu1 %852 }
  0xe8   : > { %v358_v6 = vpop.f32.mrb[0].mxu0 }
  0xe9   : > { %v359_v7 = vadd.f32 %v1470_v5, %v358_v6  ;;  %v1247_v8 = vpop.f32.mrb[1].mxu0 }
  0xeb   : > { %v363_v9 = vsel %vm261_vm0, %v359_v7, -inf }
  0xec   : > { %364 = vmax.xlane.f32.xlu0 %v363_v9 }
 0x179   : > { %v365_v12 = vpop.xlane.xlu0 %364 }
 0x17a   : > { %v1481_v13 = vmax.f32 %v1478_v11, %v365_v12 }
 0x17c   : > { %v367_v14 = vsub.f32 %v1478_v11, %v1481_v13  ;;  %471 = vst.msk [vmem:[#allocation3] sm:$0xff] %vm266_vm2, %v1481_v13  ;;  %372 = vperm.xlu0 %1321, %v1481_v13  }
 0x17e   : > { %v368_v4 = vmul.f32 1.442695, %v367_v14 }
 0x1fb   : > { %v373_v17 = vpop.permute.xlu0 %372 }
 0x1fc   : > { %v375_v18 = vsub.f32 %v359_v7, %v373_v17 }
 0x1fe   : > { %v376_v20 = vmul.f32 1.442695, %v375_v18 }
 0x200   : > { %1323 = vpow2.f32 %v376_v20  ;;  %v568_v20 = vld [vmem:[#allocation4 + $0x8] sm:$0xff] }
 0x20a   : > { %v1324_v23 = vpop.eup %1323 }
 0x20b   : > { %1251 = vmatmul.mubr.msk.f32.vlgmr.msra.gmra.mrb[0].mxu1 %vm261_vm0, %v1324_v23  ;;  %v380_v52 = vsel %vm261_vm0, %v1324_v23, 0.0  ;;  %v758_v23 = vld [vmem:[#allocation4 + $0x10] sm:$0xff] }
 0x20c   : > { %1254 = vmatpush3.xpose.msk.msra.mxu1 %vm261_vm0, %v475_v16  ;;  %1255 = vmatprep.mubr.msk.f32.mxu1 %vm1372_vm1, %v1371_v0 }
 0x20d   : > { %1263 = vmatprep.subr.mxu1 %v1371_v0 }
 0x20f   : > { %1256 = vmatmul.mubr.msk.f32.vlgmr.msra.gmra.mrb[2].mxu1 %vm261_vm0, %v473_v19 }
 0x210   : > { %1264 = vmatpush3.xpose.msk.msra.mxu1 %vm261_vm0, %v665_v21  ;;  %1265 = vmatprep.mubr.msk.f32.mxu1 %vm1372_vm1, %v1371_v0 }
 0x211   : > { %1273 = vmatprep.subr.mxu1 %v1371_v0 }
 0x213   : > { %1266 = vmatmul.mubr.msk.f32.vlgmr.msra.gmra.mrb[4].mxu1 %vm261_vm0, %v663_v22 }
 0x214   : > { %1274 = vmatpush3.xpose.msk.msra.mxu1 %vm261_vm0, %v855_v24  ;;  %1275 = vmatprep.mubr.msk.f32.mxu1 %vm1372_vm1, %v1371_v0 }
 0x217   : > { %1276 = vmatmul.mubr.msk.f32.vlgmr.msra.gmra.mrb[6].mxu1 %vm261_vm0, %v853_v25  ;;  %v386_v25 = vld [vmem:[#allocation2] sm:$0xff] }
 0x2de   : > { %v1504_v26 = vpop.f32.mrb[0].mxu1 }
 0x2df   : > { %v1252_v27 = vpop.f32.mrb[1].mxu1 }
 0x2e2   : > { %v546_v28 = vpop.f32.mrb[2].mxu1 }
 0x2e3   : > { %v547_v29 = vadd.f32 %v1470_v5, %v546_v28  ;;  %v1257_v30 = vpop.f32.mrb[3].mxu1 }
 0x2e4   : > { %v948_v30 = vld [vmem:[#allocation4 + $0x18] sm:$0xff] }
 0x2e5   : > { %v552_v31 = vsel %vm261_vm0, %v547_v29, -inf }
 0x2e6   : > { %553 = vmax.xlane.f32.xlu1 %v552_v31  ;;  %v736_v32 = vpop.f32.mrb[4].mxu1 }
 0x2e7   : > { %v737_v33 = vadd.f32 %v1470_v5, %v736_v32  ;;  %v1267_v34 = vpop.f32.mrb[5].mxu1 }
 0x2e9   : > { %v742_v35 = vsel %vm261_vm0, %v737_v33, -inf }
 0x2ea   : > { %743 = vmax.xlane.f32.xlu0 %v742_v35  ;;  %v926_v36 = vpop.f32.mrb[6].mxu1 }
 0x2eb   : > { %v927_v37 = vadd.f32 %v1470_v5, %v926_v36  ;;  %v1277_v38 = vpop.f32.mrb[7].mxu1 }
 0x2ed   : > { %v932_v39 = vsel %vm261_vm0, %v927_v37, -inf }
 0x2ee   : > { %933 = vmax.xlane.f32.xlu1 %v932_v39 }
 0x373   : > { %v554_v41 = vpop.xlane.xlu1 %553 }
 0x374   : > { %v1515_v42 = vmax.f32 %v1512_v40, %v554_v41 }
 0x376   : > { %v556_v44 = vsub.f32 %v1512_v40, %v1515_v42  ;;  %661 = vst.msk [vmem:[#allocation3 + $0x8] sm:$0xff] %vm266_vm2, %v1515_v42  ;;  %561 = vperm.xlu1 %1322, %v1515_v42  }
 0x377   : > { %v744_v45 = vpop.xlane.xlu0 %743 }
 0x378   : > { %v745_v46 = vmax.f32 %v741_v43, %v744_v45  ;;  %v557_v11 = vmul.f32 1.442695, %v556_v44  ;;  %v576_v44 = vld [vmem:[#allocation2 + $0x8] sm:$0xff] }
 0x37a   : > { %v746_v48 = vsub.f32 %v741_v43, %v745_v46  ;;  %851 = vst.msk [vmem:[#allocation3 + $0x10] sm:$0xff] %vm266_vm2, %v745_v46  ;;  %751 = vperm.xlu0 %1321, %v745_v46  }
 0x37b   : > { %v934_v49 = vpop.xlane.xlu1 %933 }
 0x37c   : > { %v935_v50 = vmax.f32 %v931_v47, %v934_v49  ;;  %v747_v8 = vmul.f32 1.442695, %v746_v48 }
 0x37e   : > { %v936_v51 = vsub.f32 %v931_v47, %v935_v50  ;;  %1041 = vst.msk [vmem:[#allocation3 + $0x18] sm:$0xff] %vm266_vm2, %v935_v50  ;;  %941 = vperm.xlu1 %1322, %v935_v50   ;;  %v766_v47 = vld [vmem:[#allocation2 + $0x10] sm:$0xff] }
 0x380   : > { %v937_v10 = vmul.f32 1.442695, %v936_v51 }
 0x382   : > { %583 = vrot.lane.b32.xlu1 %v1447_v1, %s1379_s30 }
 0x386   : > { %773 = vrot.lane.b32.xlu1 %v1447_v1, %s1380_s4 }
 0x38a   : > { %963 = vrot.lane.b32.xlu1 %v1447_v1, %s1381_s5 }
 0x399   : > { %381 = vadd.xlane.f32.xlu0 %v380_v52  ;;  %v956_v52 = vld [vmem:[#allocation2 + $0x18] sm:$0xff] }
 0x3f5   : > { %v562_v53 = vpop.permute.xlu1 %561 }
 0x3f6   : > { %v564_v54 = vsub.f32 %v547_v29, %v562_v53 }
 0x3f8   : > { %v565_v55 = vmul.f32 1.442695, %v564_v54 }
 0x3f9   : > { %v752_v56 = vpop.permute.xlu0 %751 }
 0x3fa   : > { %1325 = vpow2.f32 %v565_v55  ;;  %v754_v57 = vsub.f32 %v737_v33, %v752_v56 }
 0x3fc   : > { %v755_v58 = vmul.f32 1.442695, %v754_v57 }
 0x3fd   : > { %v942_v59 = vpop.permute.xlu1 %941 }
 0x3fe   : > { %1327 = vpow2.f32 %v755_v58  ;;  %v944_v60 = vsub.f32 %v927_v37, %v942_v59 }
 0x400   : > { %v945_v61 = vmul.f32 1.442695, %v944_v60 }
 0x401   : > { %v584_v62 = vpop.permute.xlu1 %583 }
 0x402   : > { %1329 = vpow2.f32 %v945_v61  ;;  %1259 = vmatpush3.msra.mxu0 %v584_v62 }
 0x403   : > { %1268 = vmatprep.subr.mxu0 %v1371_v0  ;;  %1331 = vpow2.f32 %v368_v4 }
 0x404   : > { %v1326_v63 = vpop.eup %1325  ;;  %1333 = vpow2.f32 %v747_v8 }
 0x405   : > { %1261 = vmatmul.mubr.msk.f32.vlgmr.msra.gmra.mrb[2].mxu0 %vm261_vm0, %v1326_v63  ;;  %v570_v1 = vsel %vm261_vm0, %v1326_v63, 0.0  ;;  %v774_v2 = vpop.permute.xlu1 %773  ;;  %1335 = vpow2.f32 %v937_v10 }
 0x406   : > { %571 = vadd.xlane.f32.xlu1 %v570_v1  ;;  %1269 = vmatpush3.msra.mxu0 %v774_v2  ;;  %1337 = vpow2.f32 %v557_v11 }
 0x407   : > { %1270 = vmatprep.mubr.msk.f32.mxu0 %vm1372_vm1, %v1371_v0  ;;  %1278 = vmatprep.subr.mxu0 %v1371_v0 }
 0x408   : > { %v1328_v3 = vpop.eup %1327 }
 0x409   : > { %1271 = vmatmul.mubr.msk.f32.vlgmr.msra.gmra.mrb[4].mxu0 %vm261_vm0, %v1328_v3  ;;  %v760_v5 = vsel %vm261_vm0, %v1328_v3, 0.0  ;;  %v964_v6 = vpop.permute.xlu1 %963 }
 0x40a   : > { %761 = vadd.xlane.f32.xlu0 %v760_v5  ;;  %1279 = vmatpush3.msra.mxu0 %v964_v6 }
 0x40b   : > { %1280 = vmatprep.mubr.msk.f32.mxu0 %vm1372_vm1, %v1371_v0  ;;  %v378_v0 = vld [vmem:[#allocation4] sm:$0xff] }
 0x40c   : > { %v1330_v7 = vpop.eup %1329 }
 0x40d   : > { %1281 = vmatmul.mubr.msk.f32.vlgmr.msra.gmra.mrb[6].mxu0 %vm261_vm0, %v1330_v7  ;;  %v950_v9 = vsel %vm261_vm0, %v1330_v7, 0.0  ;;  %v1332_v12 = vpop.eup %1331 }
 0x40e   : > { %951 = vadd.xlane.f32.xlu0 %v950_v9  ;;  %v1334_v13 = vpop.eup %1333  ;;  %v379_v16 = vmul.f32 %v1332_v12, %v378_v0 }
 0x40f   : > { %v1336_v14 = vpop.eup %1335  ;;  %v759_v27 = vmul.f32 %v1334_v13, %v758_v23 }
 0x410   : > { %v1338_v15 = vpop.eup %1337  ;;  %v949_v34 = vmul.f32 %v1336_v14, %v948_v30 }
 0x411   : > { %v569_v21 = vmul.f32 %v1338_v15, %v568_v20 }
 0x417   : > { %389 = vperm.xlu1 %1322, %v1332_v12  }
 0x41b   : > { %769 = vperm.xlu1 %1322, %v1334_v13  }
 0x41f   : > { %959 = vperm.xlu1 %1322, %v1336_v14  }
 0x424   : > { %579 = vperm.xlu0 %1321, %v1338_v15  }
 0x426   : > { %v382_v17 = vpop.xlane.xlu0 %381 }
 0x427   : > { %v383_v18 = vadd.f32 %v382_v17, %v379_v16 }
 0x429   : > { %385 = vst.msk [vmem:[#allocation4] sm:$0xff] %vm266_vm2, %v383_v18 }
 0x430   : > { %v1046_v19 = vld [vmem:[#allocation4] sm:$0xff] }
 0x431   : > { %1049 = vperm.xlu0 %1321, %v1046_v19  }
 0x493   : > { %v572_v22 = vpop.xlane.xlu1 %571 }
 0x494   : > { %v573_v24 = vadd.f32 %v572_v22, %v569_v21 }
 0x496   : > { %574 = vst.msk [vmem:[#allocation4 + $0x8] sm:$0xff] %vm266_vm2, %v573_v24 }
 0x497   : > { %v762_v28 = vpop.xlane.xlu0 %761  ;;  %v390_v29 = vpop.permute.xlu1 %389 }
 0x498   : > { %v763_v31 = vadd.f32 %v762_v28, %v759_v27  ;;  %v392_v32 = vmul.f32 %v390_v29, %v386_v25 }
 0x49a   : > { %764 = vst.msk [vmem:[#allocation4 + $0x10] sm:$0xff] %vm266_vm2, %v763_v31  ;;  %v469_v33 = vadd.f32 %v1504_v26, %v392_v32 }
 0x49b   : > { %v952_v35 = vpop.xlane.xlu0 %951  ;;  %v770_v45 = vpop.permute.xlu1 %769 }
 0x49c   : > { %470 = vst.msk [vmem:[#allocation2] sm:$0xff] %vm261_vm0, %v469_v33  ;;  %v953_v36 = vadd.f32 %v952_v35, %v949_v34  ;;  %v772_v51 = vmul.f32 %v770_v45, %v766_v47 }
 0x49d   : > { %v1056_v37 = vld [vmem:[#allocation4 + $0x8] sm:$0xff] }
 0x49e   : > { %954 = vst.msk [vmem:[#allocation4 + $0x18] sm:$0xff] %vm266_vm2, %v953_v36  ;;  %1059 = vperm.xlu1 %1322, %v1056_v37  }
 0x49f   : > { %v960_v53 = vpop.permute.xlu1 %959 }
 0x4a0   : > { %v962_v57 = vmul.f32 %v960_v53, %v956_v52 }
 0x4a1   : > { %v1071_v38 = vld [vmem:[#allocation4 + $0x10] sm:$0xff] }
 0x4a2   : > { %1074 = vperm.xlu1 %1322, %v1071_v38  }
 0x4a3   : > { %v580_v40 = vpop.permute.xlu0 %579  ;;  %v1045_v43 = vld [vmem:[#allocation2] sm:$0xff] }
 0x4a4   : > { %v582_v46 = vmul.f32 %v580_v40, %v576_v44 }
 0x4a5   : > { %v1086_v39 = vld [vmem:[#allocation4 + $0x18] sm:$0xff] }
 0x4a6   : > { %1089 = vperm.xlu0 %1321, %v1086_v39  }
 0x4b0   : > { %v1050_v41 = vpop.permute.xlu0 %1049 }
 0x4b1   : > { %1339 = vrcp.f32 %v1050_v41 }
 0x4bb   : > { %v1340_v42 = vpop.eup %1339 }
 0x4bc   : > { %v1053_v26 = vmul.f32 %v1340_v42, %v1045_v43 }
 0x4be   : > { %1054 = vst.msk [vmem:[%s1553_s8] sm:$0xff] %vm261_vm0, %v1053_v26 }
 0x4d8   : > { %v655_v48 = vpop.f32.mrb[2].mxu0 }
 0x4d9   : > { %v659_v49 = vadd.f32 %v655_v48, %v582_v46  ;;  %v1262_v50 = vpop.f32.mrb[3].mxu0 }
 0x4db   : > { %660 = vst.msk [vmem:[#allocation2 + $0x8] sm:$0xff] %vm261_vm0, %v659_v49 }
 0x4dc   : > { %v845_v54 = vpop.f32.mrb[4].mxu0 }
 0x4dd   : > { %v849_v55 = vadd.f32 %v845_v54, %v772_v51  ;;  %v1272_v56 = vpop.f32.mrb[5].mxu0 }
 0x4df   : > { %850 = vst.msk [vmem:[#allocation2 + $0x10] sm:$0xff] %vm261_vm0, %v849_v55 }
 0x4e0   : > { %v1035_v58 = vpop.f32.mrb[6].mxu0 }
 0x4e1   : > { %v1039_v59 = vadd.f32 %v1035_v58, %v962_v57  ;;  %v1282_v60 = vpop.f32.mrb[7].mxu0 }
 0x4e2   : > { %v1055_v2 = vld [vmem:[#allocation2 + $0x8] sm:$0xff] }
 0x4e3   : > { %1040 = vst.msk [vmem:[#allocation2 + $0x18] sm:$0xff] %vm261_vm0, %v1039_v59 }
 0x4e6   : > { %v1070_v5 = vld [vmem:[#allocation2 + $0x10] sm:$0xff] }
 0x4ea   : > { %v1085_v8 = vld [vmem:[#allocation2 + $0x18] sm:$0xff] }
 0x51d   : > { %v1060_v61 = vpop.permute.xlu1 %1059 }
 0x51e   : > { %1341 = vrcp.f32 %v1060_v61 }
 0x521   : > { %v1075_v62 = vpop.permute.xlu1 %1074 }
 0x522   : > { %1343 = vrcp.f32 %v1075_v62 }
 0x525   : > { %v1090_v63 = vpop.permute.xlu0 %1089 }
 0x526   : > { %1345 = vrcp.f32 %v1090_v63 }
 0x528   : > { %v1342_v1 = vpop.eup %1341 }
 0x529   : > { %v1063_v3 = vmul.f32 %v1342_v1, %v1055_v2 }
 0x52b   : > { %1065 = vrot.lane.b32.xlu0 %v1063_v3, %s1382_s9 }
 0x52c   : > { %v1344_v4 = vpop.eup %1343 }
 0x52d   : > { %v1078_v6 = vmul.f32 %v1344_v4, %v1070_v5 }
 0x52f   : > { %1080 = vrot.lane.b32.xlu1 %v1078_v6, %s1383_s10 }
 0x530   : > { %v1346_v7 = vpop.eup %1345 }
 0x531   : > { %v1093_v9 = vmul.f32 %v1346_v7, %v1085_v8 }
 0x533   : > { %1095 = vrot.lane.b32.xlu0 %v1093_v9, %s1384_s11 }
 0x59d   : > { %v1066_v10 = vpop.permute.xlu0 %1065 }
 0x59e   : > { %1069 = vst.msk [vmem:[%s1553_s8] sm:$0xff] %vm1068_vm3, %v1066_v10 }
 0x5a1   : > { %v1081_v11 = vpop.permute.xlu1 %1080 }
 0x5a2   : > { %1084 = vst.msk [vmem:[%s1553_s8] sm:$0xff] %vm1083_vm4, %v1081_v11 }
 0x5a5   : > { %v1096_v12 = vpop.permute.xlu0 %1095 }
 0x5a6   : > { %1099 = vst.msk [vmem:[%s1553_s8] sm:$0xff] %vm1098_vm5, %v1096_v12 }
 0x5a7 PF: > { %s13_s14 = sadd.s32 1, %s1369_s14   ;;  %s1576_s12 = smov %s1365_s13 }
 0x5a8   : > { %p10_p5 = scmp.ge.s32.totalorder %s13_s14, 4   ;;  %s1577_s13 = smov %s1579_s15 }
 0x5aa   :  { %12 = sbr.rel (!%p10_p5) target bundleno = 2 (0x2), region = 85 }

</bundles_post_ra>
